<compile_context>
chip_gen: v7x
topology: tpu7x:2x2x1
jax: 0.10.0
libtpu: 0.0.40
codegen_flags: <defaults>
</compile_context>

<pallas_src>
import jax
import jax.numpy as jnp
from jax.experimental import pallas as pl
from jax.experimental.pallas import tpu as pltpu

H1, H2 = 256, 512
TILE_N = 256       # MXU-aligned M on v6e/v7x (2x128 on v5e)
LANE = 128


def _round_up(n, m):
    return ((n + m - 1) // m) * m


def pos2weight_kernel(x_ref, w1_ref, b1_ref, w2_ref, b2_ref, w3_ref, b3_ref, o_ref):
    # ---- layer 1: K=3 contraction on the VPU (broadcast FMAs), f32 ----------
    x = x_ref[...]                                   # (TILE_N, 3)   f32
    w1 = w1_ref[...]                                 # (3, 256)      f32
    h1 = (x[:, 0:1] * w1[0:1, :]
          + x[:, 1:2] * w1[1:2, :]
          + x[:, 2:3] * w1[2:3, :]
          + b1_ref[...])
    h1 = jnp.maximum(h1, 0.0)                        # (TILE_N, 256) f32

    # ---- layer 2: bf16 MXU matmul, f32 accumulation, f32 epilogue -----------
    h2 = jnp.dot(h1.astype(jnp.bfloat16), w2_ref[...],
                 preferred_element_type=jnp.float32) + b2_ref[...]
    h2 = jnp.maximum(h2, 0.0)                        # (TILE_N, 512) f32

    # ---- layer 3: bf16 MXU matmul into the lane-dense (padded) output -------
    out = jnp.dot(h2.astype(jnp.bfloat16), w3_ref[...],
                  preferred_element_type=jnp.float32) + b3_ref[...]
    o_ref[...] = out.astype(o_ref.dtype)


def pos2weight(x, params, *, tile_n=TILE_N):
    """x: (N, 3) float32. params: w1,b1 f32; w2,w3 bf16 (in,out); b2,b3 f32 (1,out)."""
    w1, b1 = params["w1"], params["b1"]
    w2, b2 = params["w2"], params["b2"]
    w3, b3 = params["w3"], params["b3"]

    N = x.shape[0]
    out_dim = w3.shape[1]
    out_pad = _round_up(out_dim, LANE)     # lane-dense output (multiple of 128)
    n_pad = _round_up(max(N, 1), tile_n)   # no partial row blocks

    if out_pad != out_dim:
        w3 = jnp.pad(w3, ((0, 0), (0, out_pad - out_dim)))
        b3 = jnp.pad(b3, ((0, 0), (0, out_pad - out_dim)))
    if n_pad != N:
        x = jnp.pad(x, ((0, n_pad - N), (0, 0)))

    grid = (n_pad // tile_n,)

    row = lambda shape: pl.BlockSpec(shape, lambda i: (i, 0))     # streamed tiles
    fixed = lambda shape: pl.BlockSpec(shape, lambda i: (0, 0))   # resident weights

    flops = 2 * n_pad * (3 * H1 + H1 * H2 + H2 * out_pad)
    bytes_accessed = (x.size * 4 + w1.size * 4 + b1.size * 4
                      + w2.size * 2 + b2.size * 4
                      + w3.size * 2 + b3.size * 4
                      + n_pad * out_pad * 4)

    # NOTE: for very large out_dim (e.g. inC=64 -> out_dim ~ 1728+) on v7x's
    # 64 MiB VMEM, add a second grid axis over 512-wide column panels of
    # w3/b3/out; unnecessary at these sizes.
    out = pl.pallas_call(
        pos2weight_kernel,
        out_shape=jax.ShapeDtypeStruct((n_pad, out_pad), jnp.float32),
        grid_spec=pltpu.PrefetchScalarGridSpec(
            num_scalar_prefetch=0,
            grid=grid,
            in_specs=[
                row((tile_n, 3)),
                fixed(w1.shape), fixed(b1.shape),
                fixed(w2.shape), fixed(b2.shape),
                fixed(w3.shape), fixed(b3.shape),
            ],
            out_specs=row((tile_n, out_pad)),
        ),
        compiler_params=pltpu.CompilerParams(
            dimension_semantics=("parallel",),
            vmem_limit_bytes=64 << 20,
        ),
        cost_estimate=pl.CostEstimate(
            flops=flops, transcendentals=0, bytes_accessed=bytes_accessed),
    )(x, w1, b1, w2, b2, w3, b3)

    return out[:N, :out_dim]


def init_pos2weight_params(key, inC, kernel_size=3, outC=3):
    """Mimics torch.nn.Linear default init (U(-1/sqrt(fan_in), +)). w2/w3 -> bf16."""
    out_dim = kernel_size * kernel_size * inC * outC
    dims = [(3, H1), (H1, H2), (H2, out_dim)]
    params = {}
    for i, (fan_in, fan_out) in enumerate(dims, start=1):
        key, kw, kb = jax.random.split(key, 3)
        bound = 1.0 / (fan_in ** 0.5)
        w = jax.random.uniform(kw, (fan_in, fan_out), jnp.float32,
                               minval=-bound, maxval=bound)
        b = jax.random.uniform(kb, (1, fan_out), jnp.float32,
                               minval=-bound, maxval=bound)
        params[f"w{i}"] = w if i == 1 else w.astype(jnp.bfloat16)
        params[f"b{i}"] = b
    return params


def pos2weight_ref(x, params):
    """Pure-JAX reference with the same numerics (bf16 MXU inputs, f32 accumulation)."""
    h1 = jnp.maximum(x @ params["w1"].astype(jnp.float32) + params["b1"], 0.0)
    h2 = jnp.maximum(
        jnp.dot(h1.astype(jnp.bfloat16), params["w2"],
                preferred_element_type=jnp.float32) + params["b2"], 0.0)
    return jnp.dot(h2.astype(jnp.bfloat16), params["w3"],
                   preferred_element_type=jnp.float32) + params["b3"]


if __name__ == "__main__":
    key = jax.random.PRNGKey(0)
    kp, kx = jax.random.split(key)

    inC, kernel_size, outC = 4, 3, 3          # out_dim = 3*3*4*3 = 108 (-> padded 128)
    params = init_pos2weight_params(kp, inC, kernel_size, outC)

    N = 600                                   # not a tile multiple -> exercises padding
    x = jax.random.uniform(kx, (N, 3), jnp.float32)

    out = pos2weight(x, params)
    out = jax.block_until_ready(out)

    ref = pos2weight_ref(x, params)
    assert out.shape == (N, kernel_size * kernel_size * inC * outC)
    assert jnp.allclose(out, ref, atol=5e-3, rtol=5e-3), "mismatch vs JAX reference"

    print("KERNEL_OK")
</pallas_src>

<mosaic_0001>
module attributes {stable_mosaic.version = 11 : i64} {
  func.func @pos2weight_kernel(%arg0: i32, %arg1: memref<256x3xf32, #tpu.memory_space<vmem>>, %arg2: memref<3x256xf32, #tpu.memory_space<vmem>>, %arg3: memref<1x256xf32, #tpu.memory_space<vmem>>, %arg4: memref<256x512xbf16, #tpu.memory_space<vmem>>, %arg5: memref<1x512xf32, #tpu.memory_space<vmem>>, %arg6: memref<512x128xbf16, #tpu.memory_space<vmem>>, %arg7: memref<1x128xf32, #tpu.memory_space<vmem>>, %arg8: memref<256x128xf32, #tpu.memory_space<vmem>>) attributes {dimension_semantics = [#tpu.dimension_semantics<parallel>], iteration_bounds = array<i64: 3>, scalar_prefetch = 0 : i64, scratch_operands = 0 : i64, tpu.core_type = #tpu.core_type<tc>, window_params = [{transform_indices = @transform_0, window_bounds = array<i64: 256, 3>}, {pipeline_mode = #tpu.pipeline_mode<synchronous>, transform_indices = @transform_1, window_bounds = array<i64: 3, 256>}, {pipeline_mode = #tpu.pipeline_mode<synchronous>, transform_indices = @transform_2, window_bounds = array<i64: 1, 256>}, {pipeline_mode = #tpu.pipeline_mode<synchronous>, transform_indices = @transform_3, window_bounds = array<i64: 256, 512>}, {pipeline_mode = #tpu.pipeline_mode<synchronous>, transform_indices = @transform_4, window_bounds = array<i64: 1, 512>}, {pipeline_mode = #tpu.pipeline_mode<synchronous>, transform_indices = @transform_5, window_bounds = array<i64: 512, 128>}, {pipeline_mode = #tpu.pipeline_mode<synchronous>, transform_indices = @transform_6, window_bounds = array<i64: 1, 128>}, {transform_indices = @transform_7, window_bounds = array<i64: 256, 128>}]} {
    %c0 = arith.constant 0 : index
    %c0_0 = arith.constant 0 : index
    %0 = vector.load %arg1[%c0, %c0_0] : memref<256x3xf32, #tpu.memory_space<vmem>>, vector<256x3xf32>
    %c0_1 = arith.constant 0 : index
    %c0_2 = arith.constant 0 : index
    %1 = vector.load %arg2[%c0_1, %c0_2] : memref<3x256xf32, #tpu.memory_space<vmem>>, vector<3x256xf32>
    %2 = vector.extract_strided_slice %0 {offsets = [0, 0], sizes = [256, 1], strides = [1, 1]} : vector<256x3xf32> to vector<256x1xf32>
    %3 = vector.extract_strided_slice %1 {offsets = [0, 0], sizes = [1, 256], strides = [1, 1]} : vector<3x256xf32> to vector<1x256xf32>
    %4 = vector.broadcast %2 : vector<256x1xf32> to vector<256x256xf32>
    %5 = vector.broadcast %3 : vector<1x256xf32> to vector<256x256xf32>
    %6 = arith.mulf %4, %5 : vector<256x256xf32>
    %7 = vector.extract_strided_slice %0 {offsets = [0, 1], sizes = [256, 1], strides = [1, 1]} : vector<256x3xf32> to vector<256x1xf32>
    %8 = vector.extract_strided_slice %1 {offsets = [1, 0], sizes = [1, 256], strides = [1, 1]} : vector<3x256xf32> to vector<1x256xf32>
    %9 = vector.broadcast %7 : vector<256x1xf32> to vector<256x256xf32>
    %10 = vector.broadcast %8 : vector<1x256xf32> to vector<256x256xf32>
    %11 = arith.mulf %9, %10 : vector<256x256xf32>
    %12 = arith.addf %6, %11 : vector<256x256xf32>
    %13 = vector.extract_strided_slice %0 {offsets = [0, 2], sizes = [256, 1], strides = [1, 1]} : vector<256x3xf32> to vector<256x1xf32>
    %14 = vector.extract_strided_slice %1 {offsets = [2, 0], sizes = [1, 256], strides = [1, 1]} : vector<3x256xf32> to vector<1x256xf32>
    %15 = vector.broadcast %13 : vector<256x1xf32> to vector<256x256xf32>
    %16 = vector.broadcast %14 : vector<1x256xf32> to vector<256x256xf32>
    %17 = arith.mulf %15, %16 : vector<256x256xf32>
    %18 = arith.addf %12, %17 : vector<256x256xf32>
    %c0_3 = arith.constant 0 : index
    %c0_4 = arith.constant 0 : index
    %19 = vector.load %arg3[%c0_3, %c0_4] : memref<1x256xf32, #tpu.memory_space<vmem>>, vector<1x256xf32>
    %20 = vector.broadcast %19 : vector<1x256xf32> to vector<256x256xf32>
    %21 = arith.addf %18, %20 : vector<256x256xf32>
    %cst = arith.constant 0.000000e+00 : f32
    %22 = vector.broadcast %cst : f32 to vector<256x256xf32>
    %23 = arith.maximumf %21, %22 : vector<256x256xf32>
    %24 = arith.truncf %23 : vector<256x256xf32> to vector<256x256xbf16>
    %c0_5 = arith.constant 0 : index
    %c0_6 = arith.constant 0 : index
    %25 = vector.load %arg4[%c0_5, %c0_6] : memref<256x512xbf16, #tpu.memory_space<vmem>>, vector<256x512xbf16>
    %cst_7 = arith.constant dense<0.000000e+00> : vector<256x512xf32>
    %26 = tpu.matmul %24, %25, %cst_7 {dimension_numbers = #tpu.dot_dimension_numbers<[1], [0], [0], [1], [0, 0, 1, 1], [], []>} : vector<256x256xbf16>, vector<256x512xbf16>, vector<256x512xf32> -> vector<256x512xf32>
    %c0_8 = arith.constant 0 : index
    %c0_9 = arith.constant 0 : index
    %27 = vector.load %arg5[%c0_8, %c0_9] : memref<1x512xf32, #tpu.memory_space<vmem>>, vector<1x512xf32>
    %28 = vector.broadcast %27 : vector<1x512xf32> to vector<256x512xf32>
    %29 = arith.addf %26, %28 : vector<256x512xf32>
    %cst_10 = arith.constant 0.000000e+00 : f32
    %30 = vector.broadcast %cst_10 : f32 to vector<256x512xf32>
    %31 = arith.maximumf %29, %30 : vector<256x512xf32>
    %32 = arith.truncf %31 : vector<256x512xf32> to vector<256x512xbf16>
    %c0_11 = arith.constant 0 : index
    %c0_12 = arith.constant 0 : index
    %33 = vector.load %arg6[%c0_11, %c0_12] : memref<512x128xbf16, #tpu.memory_space<vmem>>, vector<512x128xbf16>
    %cst_13 = arith.constant dense<0.000000e+00> : vector<256x128xf32>
    %34 = tpu.matmul %32, %33, %cst_13 {dimension_numbers = #tpu.dot_dimension_numbers<[1], [0], [0], [1], [0, 0, 1, 1], [], []>} : vector<256x512xbf16>, vector<512x128xbf16>, vector<256x128xf32> -> vector<256x128xf32>
    %c0_14 = arith.constant 0 : index
    %c0_15 = arith.constant 0 : index
    %35 = vector.load %arg7[%c0_14, %c0_15] : memref<1x128xf32, #tpu.memory_space<vmem>>, vector<1x128xf32>
    %36 = vector.broadcast %35 : vector<1x128xf32> to vector<256x128xf32>
    %37 = arith.addf %34, %36 : vector<256x128xf32>
    %c0_16 = arith.constant 0 : index
    %c0_17 = arith.constant 0 : index
    %38 = vector.load %arg8[%c0_16, %c0_17] : memref<256x128xf32, #tpu.memory_space<vmem>>, vector<256x128xf32>
    tpu.vector_store %arg8[%c0_16, %c0_17], %37 {strides = array<i32>} : memref<256x128xf32, #tpu.memory_space<vmem>>, vector<256x128xf32>,
    return
  }
  func.func @transform_0(%arg0: i32) -> (i32, i32) {
    %c0_i32 = arith.constant 0 : i32
    %c0_i32_0 = arith.constant 0 : i32
    return %arg0, %c0_i32 : i32, i32
  }
  func.func @transform_1(%arg0: i32) -> (i32, i32) {
    %c0_i32 = arith.constant 0 : i32
    %c0_i32_0 = arith.constant 0 : i32
    %c0_i32_1 = arith.constant 0 : i32
    return %c0_i32, %c0_i32_0 : i32, i32
  }
  func.func @transform_2(%arg0: i32) -> (i32, i32) {
    %c0_i32 = arith.constant 0 : i32
    %c0_i32_0 = arith.constant 0 : i32
    %c0_i32_1 = arith.constant 0 : i32
    return %c0_i32, %c0_i32_0 : i32, i32
  }
  func.func @transform_3(%arg0: i32) -> (i32, i32) {
    %c0_i32 = arith.constant 0 : i32
    %c0_i32_0 = arith.constant 0 : i32
    %c0_i32_1 = arith.constant 0 : i32
    return %c0_i32, %c0_i32_0 : i32, i32
  }
  func.func @transform_4(%arg0: i32) -> (i32, i32) {
    %c0_i32 = arith.constant 0 : i32
    %c0_i32_0 = arith.constant 0 : i32
    %c0_i32_1 = arith.constant 0 : i32
    return %c0_i32, %c0_i32_0 : i32, i32
  }
  func.func @transform_5(%arg0: i32) -> (i32, i32) {
    %c0_i32 = arith.constant 0 : i32
    %c0_i32_0 = arith.constant 0 : i32
    %c0_i32_1 = arith.constant 0 : i32
    return %c0_i32, %c0_i32_0 : i32, i32
  }
  func.func @transform_6(%arg0: i32) -> (i32, i32) {
    %c0_i32 = arith.constant 0 : i32
    %c0_i32_0 = arith.constant 0 : i32
    %c0_i32_1 = arith.constant 0 : i32
    return %c0_i32, %c0_i32_0 : i32, i32
  }
  func.func @transform_7(%arg0: i32) -> (i32, i32) {
    %c0_i32 = arith.constant 0 : i32
    %c0_i32_0 = arith.constant 0 : i32
    return %arg0, %c0_i32 : i32, i32
  }
}

</mosaic_0001>

<bundles_post_ra>
// kernel: tpu_custom_call.1
= control target key start
LH: loop header
LB: loop body
LE: loop exit
PB: predicated region body
PF: predicated region fallthrough
CT: control target
= control target key end

     0   :  { %s5237_s0 = inlined_call_operand.hbm [shape: f32[768,3], index: 0, kind: input, shape index: {}]   ;;  %s5238_s1 = inlined_call_operand.hbm [shape: f32[3,256], index: 1, kind: input, shape index: {}]   ;;  %s5239_s2 = inlined_call_operand.hbm [shape: f32[1,256], index: 2, kind: input, shape index: {}]   ;;  %s5240_s3 = inlined_call_operand.hbm [shape: bf16[256,512], index: 3, kind: input, shape index: {}]   ;;  %s5241_s4 = inlined_call_operand.hbm [shape: f32[1,512], index: 4, kind: input, shape index: {}]   ;;  %s5242_s5 = inlined_call_operand.hbm [shape: bf16[512,128], index: 5, kind: input, shape index: {}]   ;;  %s5243_s6 = inlined_call_operand.hbm [shape: f32[1,128], index: 6, kind: input, shape index: {}]   ;;  %s5244_s7 = inlined_call_operand.hbm [shape: f32[768,128], index: 7, kind: output, shape index: {}]  }
   0x1   :  { %5248 = sst [smem:[#allocation20_spill]] %s5238_s1 }
   0x2   :  { %12 = vsyncpa [#allocation3], 0 }
   0x3   :  { %14 = vsyncpa [#allocation3 + $0x1], 0 }
   0x4   :  { %15 = vsyncpa [#allocation6], 0 }
   0x5   :  { %16 = vsyncpa [#allocation9], 0 }
   0x6   :  { %17 = vsyncpa [#allocation12], 0 }
   0x7   :  { %18 = vsyncpa [#allocation4], 0 }
   0x8   :  { %20 = vsyncpa [#allocation4 + $0x1], 0  ;;  %s4106_s24 = smov 0   ;;  %s4108_s25 = smov 0  }
   0x9   :  { %s4110_s26 = smov 0   ;;  %s4112_s27 = smov 0  }
   0xa LB: > { %s4047_s28 = smov [#allocation5]   ;;  %s4127_s30 = sadd.s32 4294967295, %s4045_s27   ;;  %s4045_s27 = sphi %s4112_s27, %s5271_s27   ;;  %s4041_s26 = sphi %s4110_s26, %s5270_s26   ;;  %s4037_s25 = sphi %s4108_s25, %s5269_s25   ;;  %s4033_s24 = sphi %s4106_s24, %s5268_s24  }
   0xb   : > { %s222_s29 = sshll.u32 %s4047_s28, 4  ;;  %p3121_p0 = scmp.ge.s32.totalorder %s4045_s27, 1  ;;  %s223_s29 = int_to_ptr.vmem [resolvable:$true] %s222_s29 }
   0xc   : > { %p5245_p1 = scmp.eq.s32.totalorder %s4127_s30, 0  ;;  %p209_p2 = scmp.lt.s32.totalorder %s4045_s27, 4 }
   0xd   : > { %s4048_s9 = smov [#allocation8]   ;;  %s4049_s12 = smov [#allocation11]  }
   0xe   : > { %p4132_p3 = pnand %p3121_p0, %p209_p2  ;;  %s243_s10 = sshll.u32 %s4048_s9, 4  ;;  %s4138_s10 = int_to_ptr.vmem [resolvable:$true] %s243_s10 }
   0xf   : > { %s267_s13 = sshll.u32 %s4049_s12, 4  ;;  %s5251_s1 = sld [smem:[#allocation20_spill]]  ;;  %s4146_s13 = int_to_ptr.vmem [resolvable:$true] %s267_s13 }
  0x10   : > { %s5249_s8 = scalar_select %p4132_p3, 1, 0 }
  0x11   : > { %p3497_p4 = pneg %p4132_p3 }
  0x13   : > { %p4142_p5 = pnand %p3497_p4, %p5245_p1 }
  0x15   : > { %s3769_s16 = scalar_lea.hbm %s5251_s1, 128  ;;  %p4156_p7 = pneg %p4142_p5 }
  0x16   : > { %p3770_p6 = scmp.ne.s32.totalorder %s5251_s1, %s3769_s16  ;;  %p3776_p10 = scmp.lt.u32.totalorder %s3769_s16, %s5251_s1 }
  0x18   : > { %p3772_p8 = pnand %p4156_p7, %p3770_p6 }
  0x1a   : > { %p3773_p9 = pneg %p3772_p8 }
  0x1c   : > { %p3778_p11 = pnand %p3776_p10, %p3773_p9 }
  0x1e   : > { %3781 = shalt.err (!%p3778_p11)
}
  0x1f   : > { %s3782_s22 = scalar_lea.vmem %s223_s29, 128  ;;  %p3790_p2 = scmp.lt.s32.totalorder %s223_s29, %s223_s29 }
  0x20   : > { %p3783_p12 = scmp.ne.s32.totalorder %s223_s29, %s3782_s22  ;;  %p3791_p4 = scmp.lt.s32.totalorder %s3782_s22, %s3782_s22 }
  0x22   : > { %p3785_p13 = pnand %p3783_p12, %p4156_p7  ;;  %p3792_p1 = por %p3791_p4, %p3790_p2 }
  0x24   : > { %p3786_p0 = pneg %p3785_p13 }
  0x26   : > { %p3793_p3 = pnand %p3792_p1, %p3786_p0 }
  0x28   : > { %3796 = shalt.err (!%p3793_p3)
}
  0x29   : > { %3500 = dma.hbm_to_vmem [thread:$0]  (!%p4142_p5), %s5251_s1, 128, %s223_s29, [#allocation6]  }
  0x2a   : > { %s3797_s14 = scalar_lea.hbm %s5240_s3, 8192 }
  0x2b   : > { %p3798_p6 = scmp.ne.s32.totalorder %s5240_s3, %s3797_s14  ;;  %p3804_p1 = scmp.lt.u32.totalorder %s3797_s14, %s5240_s3 }
  0x2d   : > { %p3800_p8 = pnand %p3798_p6, %p4156_p7 }
  0x2f   : > { %p3801_p9 = pneg %p3800_p8 }
  0x31   : > { %p3806_p3 = pnand %p3804_p1, %p3801_p9 }
  0x33   : > { %3809 = shalt.err (!%p3806_p3)
}
  0x34   : > { %s3810_s29 = scalar_lea.vmem %s4138_s10, 8192  ;;  %p3818_p13 = scmp.lt.s32.totalorder %s4138_s10, %s4138_s10 }
  0x35   : > { %p3811_p10 = scmp.ne.s32.totalorder %s4138_s10, %s3810_s29  ;;  %p3819_p0 = scmp.lt.s32.totalorder %s3810_s29, %s3810_s29 }
  0x37   : > { %p3813_p11 = pnand %p3811_p10, %p4156_p7  ;;  %p3820_p2 = por %p3819_p0, %p3818_p13 }
  0x39   : > { %p3814_p12 = pneg %p3813_p11 }
  0x3b   : > { %p3821_p4 = pnand %p3820_p2, %p3814_p12 }
  0x3d   : > { %3824 = shalt.err (!%p3821_p4)
}
  0x3e   : > { %s4050_s20 = smov 256   ;;  %s4051_s21 = smov 16  }
  0x3f   : > { %3506 = dma.hbm_to_vmem [thread:$0]  (!%p4142_p5), %s5240_s3, 8192, %s4138_s10, [#allocation9], %s4050_s20, %s4050_s20, %s4051_s21  }
  0x40   : > { %s3825_s12 = scalar_lea.hbm %s5242_s5, 4096 }
  0x41   : > { %p3826_p6 = scmp.ne.s32.totalorder %s5242_s5, %s3825_s12  ;;  %p3832_p1 = scmp.lt.u32.totalorder %s3825_s12, %s5242_s5 }
  0x43   : > { %p3828_p8 = pnand %p3826_p6, %p4156_p7 }
  0x45   : > { %p3829_p9 = pneg %p3828_p8 }
  0x47   : > { %p3834_p3 = pnand %p3832_p1, %p3829_p9 }
  0x49   : > { %3837 = shalt.err (!%p3834_p3)
}
  0x4a   : > { %s3838_s10 = scalar_lea.vmem %s4146_s13, 4096  ;;  %p3846_p13 = scmp.lt.s32.totalorder %s4146_s13, %s4146_s13 }
  0x4b   : > { %p3839_p10 = scmp.ne.s32.totalorder %s4146_s13, %s3838_s10  ;;  %p3847_p0 = scmp.lt.s32.totalorder %s3838_s10, %s3838_s10 }
  0x4d   : > { %p3841_p11 = pnand %p3839_p10, %p4156_p7  ;;  %p3848_p2 = por %p3847_p0, %p3846_p13 }
  0x4f   : > { %p3842_p12 = pneg %p3841_p11 }
  0x51   : > { %p3849_p4 = pnand %p3848_p2, %p3842_p12 }
  0x53   : > { %3852 = shalt.err (!%p3849_p4)
}
  0x54   : > { %s4052_s18 = smov 64   ;;  %s4053_s29 = smov 4  }
  0x55   : > { %3512 = dma.hbm_to_vmem [thread:$0]  (!%p4142_p5), %s5242_s5, 4096, %s4146_s13, [#allocation12], %s4052_s18, %s4052_s18, %s4053_s29  }
  0x56   : > { %s4054_s22 = smov [#allocation7]   ;;  %s4055_s28 = smov [#allocation10]  }
  0x57   : > { %s233_s23 = sshll.u32 %s4054_s22, 4  ;;  %s257_s9 = sshll.u32 %s4055_s28, 4  ;;  %s234_s23 = int_to_ptr.vmem [resolvable:$true] %s233_s23  ;;  %s258_s9 = int_to_ptr.vmem [resolvable:$true] %s257_s9 }
  0x58   : > { %s3853_s15 = scalar_lea.hbm %s5239_s2, 32 }
  0x59   : > { %p3854_p6 = scmp.ne.s32.totalorder %s5239_s2, %s3853_s15  ;;  %p3860_p1 = scmp.lt.u32.totalorder %s3853_s15, %s5239_s2 }
  0x5b   : > { %p3856_p8 = pnand %p3854_p6, %p4156_p7 }
  0x5d   : > { %p3857_p9 = pneg %p3856_p8 }
  0x5f   : > { %p3862_p3 = pnand %p3860_p1, %p3857_p9 }
  0x61   : > { %3865 = shalt.err (!%p3862_p3)
}
  0x62   : > { %s3866_s13 = scalar_lea.vmem %s234_s23, 32  ;;  %p3874_p13 = scmp.lt.s32.totalorder %s234_s23, %s234_s23 }
  0x63   : > { %p3867_p10 = scmp.ne.s32.totalorder %s234_s23, %s3866_s13  ;;  %p3875_p0 = scmp.lt.s32.totalorder %s3866_s13, %s3866_s13 }
  0x65   : > { %p3869_p11 = pnand %p3867_p10, %p4156_p7  ;;  %p3876_p2 = por %p3875_p0, %p3874_p13 }
  0x67   : > { %p3870_p12 = pneg %p3869_p11 }
  0x69   : > { %p3877_p4 = pnand %p3876_p2, %p3870_p12 }
  0x6b   : > { %3880 = shalt.err (!%p3877_p4)
}
  0x6c   : > { %3503 = dma.hbm_to_vmem [thread:$0]  (!%p4142_p5), %s5239_s2, 32, %s234_s23, [#allocation6]  }
  0x6d   : > { %s3881_s21 = scalar_lea.hbm %s5241_s4, 64 }
  0x6e   : > { %p3882_p6 = scmp.ne.s32.totalorder %s5241_s4, %s3881_s21  ;;  %p3888_p1 = scmp.lt.u32.totalorder %s3881_s21, %s5241_s4 }
  0x70   : > { %p3884_p8 = pnand %p3882_p6, %p4156_p7 }
  0x72   : > { %p3885_p9 = pneg %p3884_p8 }
  0x74   : > { %p3890_p3 = pnand %p3888_p1, %p3885_p9 }
  0x76   : > { %3893 = shalt.err (!%p3890_p3)
}
  0x77   : > { %s3894_s15 = scalar_lea.vmem %s258_s9, 64  ;;  %p3902_p13 = scmp.lt.s32.totalorder %s258_s9, %s258_s9 }
  0x78   : > { %p3895_p10 = scmp.ne.s32.totalorder %s258_s9, %s3894_s15  ;;  %p3903_p0 = scmp.lt.s32.totalorder %s3894_s15, %s3894_s15 }
  0x7a   : > { %p3897_p11 = pnand %p3895_p10, %p4156_p7  ;;  %p3904_p2 = por %p3903_p0, %p3902_p13 }
  0x7c   : > { %p3898_p12 = pneg %p3897_p11 }
  0x7e   : > { %p3905_p4 = pnand %p3904_p2, %p3898_p12 }
  0x80   : > { %3908 = shalt.err (!%p3905_p4)
}
  0x81   : > { %3509 = dma.hbm_to_vmem [thread:$0]  (!%p4142_p5), %s5241_s4, 64, %s258_s9, [#allocation9]  }
  0x82   : > { %s4056_s17 = smov [#allocation13]   ;;  %s3909_s29 = scalar_lea.hbm %s5243_s6, 16 }
  0x83   : > { %s281_s10 = sshll.u32 %s4056_s17, 4  ;;  %p3910_p6 = scmp.ne.s32.totalorder %s5243_s6, %s3909_s29  ;;  %s282_s10 = int_to_ptr.vmem [resolvable:$true] %s281_s10 }
  0x84   : > { %p3916_p1 = scmp.lt.u32.totalorder %s3909_s29, %s5243_s6 }
  0x85   : > { %p3912_p8 = pnand %p3910_p6, %p4156_p7 }
  0x87   : > { %p3913_p9 = pneg %p3912_p8 }
  0x89   : > { %p3918_p3 = pnand %p3916_p1, %p3913_p9 }
  0x8b   : > { %3921 = shalt.err (!%p3918_p3)
}
  0x8c   : > { %s3922_s9 = scalar_lea.vmem %s282_s10, 16  ;;  %s3929_s28 = scalar_lea.vmem %s282_s10, 32 }
  0x8d   : > { %p3923_p10 = scmp.ne.s32.totalorder %s282_s10, %s3922_s9  ;;  %p3930_p13 = scmp.lt.s32.totalorder %s282_s10, %s282_s10 }
  0x8e   : > { %p3931_p0 = scmp.lt.s32.totalorder %s3929_s28, %s3922_s9 }
  0x8f   : > { %p3925_p11 = pnand %p3923_p10, %p4156_p7 }
  0x90   : > { %p3932_p2 = por %p3931_p0, %p3930_p13 }
  0x91   : > { %p3926_p12 = pneg %p3925_p11 }
  0x93   : > { %p3933_p4 = pnand %p3932_p2, %p3926_p12 }
  0x95   : > { %3936 = shalt.err (!%p3933_p4)
}
  0x96   : > { %3515 = dma.hbm_to_vmem [thread:$0]  (!%p4142_p5), %s5243_s6, 16, %s282_s10, [#allocation12]  }
  0x97   : > { %s3120_s19 = sadd.s32 4294967294, %s4045_s27   ;;  %s4274_s11 = sadd.s32 1, %s4045_s27  }
  0x98   : > { %s30_s15 = ssub.s32 %s4045_s27, %s4274_s11  ;;  %s33_s23 = sadd.s32 1, %s4041_s26 }
  0x99   : > { %p31_p7 = scmp.eq.s32.totalorder %s30_s15, 0  ;;  %p40_p6 = scmp.ne.s32.totalorder %s4041_s26, %s4037_s25 }
  0x9a   : > { %p41_p8 = scmp.eq.s32.totalorder %s4045_s27, 0  ;;  %p46_p9 = scmp.ne.s32.totalorder %s4037_s25, %s4033_s24 }
  0x9b   : > { %s4285_s16 = scalar_select %p31_p7, %s4041_s26, %s33_s23  }
  0x9c   : > { %p4287_p1 = por %p41_p8, %p40_p6  ;;  %p5254_p3 = scmp.eq.s32.totalorder %s4127_s30, 0 }
  0x9d   : > { %p196_p10 = scmp.eq.s32.totalorder %s4127_s30, 2  ;;  %p202_p11 = scmp.eq.s32.totalorder %s3120_s19, 2 }
  0x9e   : > { %p4293_p5 = por %p5254_p3, %p46_p9  ;;  %p3530_p12 = scmp.lt.s32.totalorder %s4045_s27, 3 }
  0x9f   : > { %s292_s13 = sand.u32 1, %s4041_s26   ;;  %p4300_p13 = por %p196_p10, %p40_p6 }
  0xa0   : > { %p4304_p0 = por %p202_p11, %p46_p9  ;;  %s3129_s1 = sshll.u32 %s292_s13, 8 }
  0xa1   : > { %s5256_s18 = scalar_select %p4300_p13, 1, 0 }
  0xa2   : > { %s5257_s29 = scalar_select %p4304_p0, 1, 0 }
  0xa3   : > { %s3243_s20 = sshll.u32 %s4045_s27, 12  ;;  %s296_s28 = scalar_lea.vmem [#allocation2], %s3129_s1 }
  0xa4   : > { %s4312_s9 = scalar_lea.hbm %s5237_s0, %s3243_s20  ;;  %s303_s12 = sshll.u32 %s296_s28, 4  ;;  %s4314_s12 = int_to_ptr.vmem [resolvable:$true] %s303_s12 }
  0xa5   : > { %p4318_p2 = pnand %p3530_p12, %p4287_p1  ;;  %s4322_s19 = scalar_lea.sflag [#allocation3], %s292_s13 }
  0xa6   : > { %s3937_s15 = scalar_lea.hbm %s4312_s9, 4096  ;;  %s3942_s17 = scalar_lea.hbm %s5237_s0, 12288 }
  0xa7   : > { %p3938_p4 = scmp.ne.s32.totalorder %s4312_s9, %s3937_s15  ;;  %p3939_p7 = pneg %p4318_p2 }
  0xa8   : > { %p3943_p9 = scmp.lt.u32.totalorder %s4312_s9, %s5237_s0  ;;  %p3944_p1 = scmp.lt.u32.totalorder %s3942_s17, %s3937_s15 }
  0xa9   : > { %p3940_p6 = pnand %p3939_p7, %p3938_p4  ;;  %p3946_p10 = scmp.lt.u32.totalorder %s3937_s15, %s4312_s9 }
  0xaa   : > { %p3945_p3 = por %p3944_p1, %p3943_p9 }
  0xab   : > { %p3941_p8 = pneg %p3940_p6 }
  0xac   : > { %p3947_p11 = por %p3946_p10, %p3945_p3 }
  0xae   : > { %p3948_p12 = pnand %p3947_p11, %p3941_p8 }
  0xb0   : > { %3951 = shalt.err (!%p3948_p12)
}
  0xb1   : > { %s3952_s13 = scalar_lea.vmem %s4314_s12, 4096  ;;  %s4057_s22 = smov [#allocation2]  }
  0xb2   : > { %p3953_p4 = scmp.ne.s32.totalorder %s4314_s12, %s3952_s13  ;;  %s3957_s28 = sshll.u32 %s4057_s22, 4  ;;  %s3958_s28 = int_to_ptr.vmem [resolvable:$false] %s3957_s28 }
  0xb3   : > { %s3959_s23 = scalar_lea.vmem %s3958_s28, 8192  ;;  %p3960_p13 = scmp.lt.s32.totalorder %s4314_s12, %s3958_s28 }
  0xb4   : > { %p3955_p6 = pnand %p3953_p4, %p3939_p7  ;;  %p3961_p9 = scmp.lt.s32.totalorder %s3959_s23, %s3952_s13 }
  0xb6   : > { %p3956_p0 = pneg %p3955_p6  ;;  %p3962_p1 = por %p3961_p9, %p3960_p13 }
  0xb8   : > { %p3963_p3 = pnand %p3962_p1, %p3956_p0 }
  0xba   : > { %3966 = shalt.err (!%p3963_p3)
}
  0xbb   : > { %s4058_s15 = smov 128   ;;  %s4059_s1 = smov 8  }
  0xbc   : > { %3519 = dma.hbm_to_vmem [thread:$0]  (!%p4318_p2), %s4312_s9, 4096, %s4314_s12, %s4322_s19, %s4058_s15, %s4058_s15, %s4059_s1  }
  0xbd   : > { %p5259_p7 = scmp.ne.s32.totalorder %s5249_s8, 0 }
  0xbe   : > { %s4353_s17 = sand.u32 (!%p5259_p7), 1, %s4037_s25  }
  0xbf   : > { %315 = sbr.rel (%p5259_p7) target bundleno = 1102 (0x44e), region = 48  ;;  %s3133_s20 = sshll.u32 (!%p5259_p7), %s4353_s17, 8 }
  0xc0   : > { %s318_s21 = scalar_lea.sflag (!%p5259_p7), [#allocation3], %s4353_s17  ;;  %s4359_s13 = scalar_lea.vmem (!%p5259_p7), [#allocation2], %s3133_s20 }
  0xc6   : > { %4012 = dma.done.wait (%p4293_p5), %s318_s21, 4096  }
  0xc7   : > { %4014 = vsyncadd (%p4293_p5), %s318_s21, 4294963200  ;;  %p5260_p13 = scmp.eq.s32.totalorder %s4127_s30, 0 }
  0xc9   : > { %4016 = dma.done.wait (%p5260_p13), [#allocation6], 160   ;;  %p5261_p0 = pmov %p5260_p13 }
  0xcb   : > { %4018 = vsyncadd (%p5261_p0), [#allocation6], 4294967136  ;;  %p5262_p2 = pmov %p5261_p0 }
  0xcc   : > { %p5263_p8 = pmov %p5261_p0 }
  0xcd   : > { %4020 = dma.done.wait (%p5262_p2), [#allocation9], 8256  }
  0xce   : > { %4022 = vsyncadd (%p5263_p8), [#allocation9], 4294959040  ;;  %p5264_p10 = pmov %p5261_p0 }
  0xcf   : > { %p5265_p11 = pmov %p5261_p0 }
  0xd0   : > { %4024 = dma.done.wait (%p5264_p10), [#allocation12], 4112  }
  0xd1   : > { %4026 = vsyncadd (%p5265_p11), [#allocation12], 4294963184  ;;  %v4060_v0 = vmov 2   ;;  %v4061_v1 = vmov 1   ;;  %v379_v2 = vld [vmem:[%s4359_s13] sm:$0xff]  ;;  %v381_v3 = vld [vmem:[%s4359_s13 + $0x10] sm:$0xff] }
  0xd2   : > { %3588 = vset.pattern.permute.xlu0 %v4060_v0  ;;  %3587 = vset.pattern.permute.xlu1 %v4061_v1  ;;  %v380_v4 = vld [vmem:[%s4359_s13 + $0x8] sm:$0xff]  ;;  %v4383_v5 = vld [vmem:[%s4359_s13 + $0x20] sm:$0xff]  ;;  %v4062_v17 = vmov 0   ;;  %v382_v21 = vld [vmem:[%s4359_s13 + $0x18] sm:$0xff]  ;;  %s5123_s8 = scalar_lea.vmem [#allocation14], %s3133_s20  ;;  %s3244_s10 = sshll.u32 %s4127_s30, 12 }
  0xd3   : > { %930 = vperm.xlu0 %3588, %v379_v2   ;;  %656 = vperm.xlu1 %3587, %v379_v2   ;;  %v3641_v6 = vld [vmem:[#allocation8 + $0x4] ss:$16 sps:$4 sm:$0xff]   ;;  %v3643_v7 = vld [vmem:[#allocation8 + $0xc] ss:$16 sps:$4 sm:$0xff]   ;;  %v3645_v8 = vld [vmem:[#allocation8] ss:$16 sps:$4 sm:$0xff]   ;;  %s5190_s19 = scalar_lea.hbm %s5244_s7, %s3244_s10 }
  0xd4   : > { %1781 = vmatprep.subr.bf16.mxu0 %v3641_v6  ;;  %v3646_v9 = vld [vmem:[#allocation8 + $0x8] ss:$16 sps:$4 sm:$0xff]   ;;  %1974 = vmatprep.subr.bf16.mxu1 %v3643_v7  ;;  %v3647_v10 = vld [vmem:[#allocation8 + $0x24] ss:$16 sps:$4 sm:$0xff]   ;;  %v3649_v11 = vld [vmem:[#allocation8 + $0x2c] ss:$16 sps:$4 sm:$0xff]  }
  0xd5   : > { %1782 = vmatpush1.bf16.msra.mxu0 %v3645_v8  ;;  %v3651_v12 = vld [vmem:[#allocation8 + $0x20] ss:$16 sps:$4 sm:$0xff]   ;;  %1975 = vmatpush1.bf16.msra.mxu1 %v3646_v9  ;;  %v3653_v13 = vld [vmem:[#allocation8 + $0x44] ss:$16 sps:$4 sm:$0xff]   ;;  %v3652_v14 = vld [vmem:[#allocation8 + $0x28] ss:$16 sps:$4 sm:$0xff]  }
  0xd6   : > { %1783 = vmatprep.subr.bf16.mxu0 %v3647_v10  ;;  %1976 = vmatprep.subr.bf16.mxu1 %v3649_v11  ;;  %v3655_v15 = vld [vmem:[#allocation8 + $0x4c] ss:$16 sps:$4 sm:$0xff]   ;;  %v3657_v16 = vld [vmem:[#allocation8 + $0x40] ss:$16 sps:$4 sm:$0xff]   ;;  %v3659_v18 = vld [vmem:[#allocation8 + $0x64] ss:$16 sps:$4 sm:$0xff]  }
  0xd7   : > { %938 = vperm.xlu0 %3588, %v381_v3   ;;  %660 = vperm.xlu1 %3587, %v380_v4   ;;  %v3658_v19 = vld [vmem:[#allocation8 + $0x48] ss:$16 sps:$4 sm:$0xff]   ;;  %v3661_v20 = vld [vmem:[#allocation8 + $0x6c] ss:$16 sps:$4 sm:$0xff]   ;;  %v3663_v22 = vld [vmem:[#allocation8 + $0x60] ss:$16 sps:$4 sm:$0xff]  }
  0xd8   : > { %v3665_v23 = vld [vmem:[#allocation8 + $0x84] ss:$16 sps:$4 sm:$0xff]   ;;  %v3664_v24 = vld [vmem:[#allocation8 + $0x68] ss:$16 sps:$4 sm:$0xff]   ;;  %v3667_v25 = vld [vmem:[#allocation8 + $0x8c] ss:$16 sps:$4 sm:$0xff]  }
  0xd9   : > { %1784 = vmatpush1.bf16.msra.mxu0 %v3651_v12  ;;  %1977 = vmatpush1.bf16.msra.mxu1 %v3652_v14  ;;  %v3669_v26 = vld [vmem:[#allocation8 + $0x80] ss:$16 sps:$4 sm:$0xff]   ;;  %v3671_v27 = vld [vmem:[#allocation8 + $0xa4] ss:$16 sps:$4 sm:$0xff]   ;;  %v3670_v29 = vld [vmem:[#allocation8 + $0x88] ss:$16 sps:$4 sm:$0xff]  }
  0xda   : > { %1785 = vmatprep.subr.bf16.mxu0 %v3653_v13  ;;  %1978 = vmatprep.subr.bf16.mxu1 %v3655_v15  ;;  %v4392_v28 = vld [vmem:[%s4359_s13 + $0x28] sm:$0xff]  ;;  %v4395_v31 = vld [vmem:[%s4359_s13 + $0x38] sm:$0xff]  ;;  %v3676_v34 = vld [vmem:[#allocation8 + $0xa8] ss:$16 sps:$4 sm:$0xff]   ;;  %s2990_s9 = sshll.u32 %s5123_s8, 4  ;;  %s2977_s22 = scalar_lea.sflag [#allocation4], %s4353_s17  ;;  %s5192_s9 = int_to_ptr.vmem [resolvable:$true] %s2990_s9 }
  0xdb   : > { %946 = vperm.xlu0 %3588, %v4383_v5   ;;  %3589 = vset.pattern.permute.xlu1 %v4060_v0  ;;  %v3673_v30 = vld [vmem:[#allocation8 + $0xac] ss:$16 sps:$4 sm:$0xff]   ;;  %v3675_v32 = vld [vmem:[#allocation8 + $0xa0] ss:$16 sps:$4 sm:$0xff]   ;;  %v3677_v33 = vld [vmem:[#allocation8 + $0xc4] ss:$16 sps:$4 sm:$0xff]  }
  0xdc   : > { %934 = vperm.xlu1 %3589, %v380_v4   ;;  %v3679_v35 = vld [vmem:[#allocation8 + $0xcc] ss:$16 sps:$4 sm:$0xff]   ;;  %v3681_v36 = vld [vmem:[#allocation8 + $0xc0] ss:$16 sps:$4 sm:$0xff]   ;;  %v3682_v38 = vld [vmem:[#allocation8 + $0xc8] ss:$16 sps:$4 sm:$0xff]  }
  0xdd   : > { %1786 = vmatpush1.bf16.msra.mxu0 %v3657_v16  ;;  %1979 = vmatpush1.bf16.msra.mxu1 %v3658_v19  ;;  %v4401_v37 = vld [vmem:[%s4359_s13 + $0x48] sm:$0xff]  ;;  %v4407_v42 = vld [vmem:[%s4359_s13 + $0x58] sm:$0xff]  ;;  %v3688_v43 = vld [vmem:[#allocation8 + $0xe8] ss:$16 sps:$4 sm:$0xff]   ;;  %s3967_s28 = scalar_lea.vmem %s5192_s9, 4096  ;;  %p5266_p12 = scmp.ne.s32.totalorder %s5256_s18, 0 }
  0xde   : > { %1787 = vmatprep.subr.bf16.mxu0 %v3659_v18  ;;  %1980 = vmatprep.subr.bf16.mxu1 %v3661_v20  ;;  %v3683_v39 = vld [vmem:[#allocation8 + $0xe4] ss:$16 sps:$4 sm:$0xff]   ;;  %v3685_v40 = vld [vmem:[#allocation8 + $0xec] ss:$16 sps:$4 sm:$0xff]   ;;  %v3687_v41 = vld [vmem:[#allocation8 + $0xe0] ss:$16 sps:$4 sm:$0xff]   ;;  %p3968_p5 = scmp.ne.s32.totalorder %s5192_s9, %s3967_s28 }
  0xdf   : > { %3595 = vset.pattern.permute.xlu0 %v4062_v17  ;;  %v3689_v44 = vld [vmem:[#allocation8 + $0x104] ss:$16 sps:$4 sm:$0xff]   ;;  %v3691_v45 = vld [vmem:[#allocation8 + $0x10c] ss:$16 sps:$4 sm:$0xff]   ;;  %v3693_v46 = vld [vmem:[#allocation8 + $0x100] ss:$16 sps:$4 sm:$0xff]  }
  0xe0   : > { %414 = vperm.xlu0 %3595, %v379_v2   ;;  %3590 = vset.pattern.permute.xlu1 %v4062_v17  ;;  %v3695_v47 = vld [vmem:[#allocation8 + $0x124] ss:$16 sps:$4 sm:$0xff]   ;;  %v3694_v49 = vld [vmem:[#allocation8 + $0x108] ss:$16 sps:$4 sm:$0xff]   ;;  %v3697_v50 = vld [vmem:[#allocation8 + $0x12c] ss:$16 sps:$4 sm:$0xff]   ;;  %p3969_p4 = pnand %p3968_p5, %p5266_p12 }
  0xe1   : > { %424 = vperm.xlu1 %3590, %v381_v3   ;;  %1788 = vmatpush1.bf16.msra.mxu0 %v3663_v22  ;;  %v4413_v48 = vld [vmem:[%s4359_s13 + $0x68] sm:$0xff]  ;;  %v4418_v53 = vld [vmem:[%s4359_s13 + $0x78] sm:$0xff]  ;;  %v3700_v54 = vld [vmem:[#allocation8 + $0x128] ss:$16 sps:$4 sm:$0xff]   ;;  %s4063_s30 = smov [#allocation14]  }
  0xe2   : > { %1789 = vmatprep.subr.bf16.mxu0 %v3665_v23  ;;  %1981 = vmatpush1.bf16.msra.mxu1 %v3664_v24  ;;  %v3699_v51 = vld [vmem:[#allocation8 + $0x120] ss:$16 sps:$4 sm:$0xff]   ;;  %v3701_v52 = vld [vmem:[#allocation8 + $0x144] ss:$16 sps:$4 sm:$0xff]   ;;  %v3703_v55 = vld [vmem:[#allocation8 + $0x14c] ss:$16 sps:$4 sm:$0xff]   ;;  %p3970_p6 = pneg %p3969_p4 }
  0xe3   : > { %1982 = vmatprep.subr.bf16.mxu1 %v3667_v25  ;;  %v3705_v56 = vld [vmem:[#allocation8 + $0x140] ss:$16 sps:$4 sm:$0xff]   ;;  %v3707_v57 = vld [vmem:[#allocation8 + $0x164] ss:$16 sps:$4 sm:$0xff]   ;;  %v3706_v58 = vld [vmem:[#allocation8 + $0x148] ss:$16 sps:$4 sm:$0xff]  }
  0xe4   : > { %419 = vperm.xlu0 %3595, %v380_v4   ;;  %v385_v59 = vld [vmem:[%s4359_s13 + $0x30] sm:$0xff]  ;;  %v3711_v61 = vld [vmem:[#allocation8 + $0x160] ss:$16 sps:$4 sm:$0xff]   ;;  %v387_v4 = vld [vmem:[%s4359_s13 + $0x40] sm:$0xff]  ;;  %s3971_s23 = sshll.u32 %s4063_s30, 4  ;;  %s3972_s23 = int_to_ptr.vmem [resolvable:$false] %s3971_s23 }
  0xe5   : > { %3591 = vset.pattern.permute.xlu1 %v4061_v1  ;;  %1790 = vmatpush1.bf16.msra.mxu0 %v3669_v26  ;;  %v3709_v60 = vld [vmem:[#allocation8 + $0x16c] ss:$16 sps:$4 sm:$0xff]   ;;  %v3712_v62 = vld [vmem:[#allocation8 + $0x168] ss:$16 sps:$4 sm:$0xff]   ;;  %v3713_v63 = vld [vmem:[#allocation8 + $0x184] ss:$16 sps:$4 sm:$0xff]   ;;  %p3974_p9 = scmp.lt.s32.totalorder %s5192_s9, %s3972_s23 }
  0xe6   : > { %664 = vperm.xlu1 %3591, %v381_v3   ;;  %1791 = vmatprep.subr.bf16.mxu0 %v3671_v27  ;;  %v3715_v2 = vld [vmem:[#allocation8 + $0x18c] ss:$16 sps:$4 sm:$0xff]   ;;  %v3717_v3 = vld [vmem:[#allocation8 + $0x180] ss:$16 sps:$4 sm:$0xff]   ;;  %v3718_v6 = vld [vmem:[#allocation8 + $0x188] ss:$16 sps:$4 sm:$0xff]  }
  0xe7   : > { %1983 = vmatpush1.bf16.msra.mxu1 %v3670_v29  ;;  %v3721_v7 = vld [vmem:[#allocation8 + $0x1ac] ss:$16 sps:$4 sm:$0xff]   ;;  %v3723_v8 = vld [vmem:[#allocation8 + $0x1a0] ss:$16 sps:$4 sm:$0xff]   ;;  %v3725_v10 = vld [vmem:[#allocation8 + $0x1c4] ss:$16 sps:$4 sm:$0xff]  }
  0xe8   : > { %429 = vperm.xlu0 %3595, %v382_v21   ;;  %1984 = vmatprep.subr.bf16.mxu1 %v3673_v30  ;;  %v389_v9 = vld [vmem:[%s4359_s13 + $0x50] sm:$0xff]  ;;  %v3729_v13 = vld [vmem:[#allocation8 + $0x1c0] ss:$16 sps:$4 sm:$0xff]   ;;  %v4430_v14 = vld [vmem:[%s4359_s13 + $0x60] sm:$0xff]  ;;  %s3973_s15 = scalar_lea.vmem %s3972_s23, 8192 }
  0xe9   : > { %1792 = vmatpush1.bf16.msra.mxu0 %v3675_v32  ;;  %v3724_v11 = vld [vmem:[#allocation8 + $0x1a8] ss:$16 sps:$4 sm:$0xff]   ;;  %v3727_v12 = vld [vmem:[#allocation8 + $0x1cc] ss:$16 sps:$4 sm:$0xff]   ;;  %v3731_v15 = vld [vmem:[#allocation8 + $0x1e4] ss:$16 sps:$4 sm:$0xff]   ;;  %p3975_p1 = scmp.lt.s32.totalorder %s3973_s15, %s3967_s28 }
  0xea   : > { %668 = vperm.xlu1 %3591, %v382_v21   ;;  %1793 = vmatprep.subr.bf16.mxu0 %v3677_v33  ;;  %v3730_v16 = vld [vmem:[#allocation8 + $0x1c8] ss:$16 sps:$4 sm:$0xff]   ;;  %v3733_v18 = vld [vmem:[#allocation8 + $0x1ec] ss:$16 sps:$4 sm:$0xff]   ;;  %v3735_v19 = vld [vmem:[#allocation8 + $0x1e0] ss:$16 sps:$4 sm:$0xff]  }
  0xeb   : > { %1985 = vmatpush1.bf16.msra.mxu1 %v3676_v34  ;;  %v4435_v20 = vld [vmem:[%s4359_s13 + $0x70] sm:$0xff]  ;;  %v4451_v24 = vld [vmem:[%s4359_s13 + $0xa0] sm:$0xff]  ;;  %v4456_v25 = vld [vmem:[%s4359_s13 + $0x88] sm:$0xff]  ;;  %v573_v34 = vlaneseq  ;;  %p3976_p3 = por %p3975_p1, %p3974_p9 }
  0xec   : > { %439 = vperm.xlu0 %3595, %v4392_v28   ;;  %1986 = vmatprep.subr.bf16.mxu1 %v3679_v35  ;;  %v3736_v22 = vld [vmem:[#allocation8 + $0x1e8] ss:$16 sps:$4 sm:$0xff]   ;;  %v4462_v26 = vld [vmem:[%s4359_s13 + $0x98] sm:$0xff]  ;;  %v4467_v27 = vld [vmem:[%s4359_s13 + $0xa8] sm:$0xff] }
  0xed   : > { %1794 = vmatpush1.bf16.msra.mxu0 %v3681_v36  ;;  %v4446_v23 = vld [vmem:[%s4359_s13 + $0x90] sm:$0xff]  ;;  %v4477_v29 = vld [vmem:[%s4359_s13 + $0xc8] sm:$0xff]  ;;  %v4482_v30 = vld [vmem:[%s4359_s13 + $0xd8] sm:$0xff]  ;;  %v4507_v35 = vshrl.u32 %v573_v34, 7  ;;  %p3977_p7 = pnand %p3976_p3, %p3970_p6 }
  0xee   : > { %3592 = vset.pattern.permute.xlu1 %v4060_v0  ;;  %1795 = vmatprep.subr.bf16.mxu0 %v3683_v39  ;;  %v4495_v32 = vld [vmem:[%s4359_s13 + $0xc0] sm:$0xff]  ;;  %v4501_v33 = vld [vmem:[%s4359_s13 + $0xd0] sm:$0xff] }
  0xef   : > { %942 = vperm.xlu1 %3592, %v382_v21   ;;  %1987 = vmatpush1.bf16.msra.mxu1 %v3682_v38  ;;  %v4439_v21 = vld [vmem:[%s4359_s13 + $0x80] sm:$0xff]  ;;  %v4511_v38 = vsub.s32 1, %v4507_v35 }
  0xf0   : > { %449 = vperm.xlu0 %3595, %v4395_v31   ;;  %1988 = vmatprep.subr.bf16.mxu1 %v3685_v40  ;;  %v411_v39 = vld [vmem:[#allocation5] sm:$0x77]  ;;  %v789_v40 = vsub.s32 5, %v4507_v35 }
  0xf1   : > { %1796 = vmatpush1.bf16.msra.mxu0 %v3687_v41  ;;  %v4516_v41 = vsub.s32 0, %v4507_v35 }
  0xf2   : > { %1797 = vmatprep.subr.bf16.mxu0 %v3689_v44 }
  0xf3   : > { %3593 = vset.pattern.permute.xlu1 %v4062_v17  ;;  %1989 = vmatpush1.bf16.msra.mxu1 %v3688_v43  ;;  %v1063_v43 = vsub.s32 6, %v4507_v35 }
  0xf4   : > { %434 = vperm.xlu1 %3593, %v4383_v5   ;;  %459 = vperm.xlu0 %3595, %v4401_v37  }
  0xf5   : > { %1990 = vmatprep.subr.bf16.mxu1 %v3691_v45  ;;  %1798 = vmatpush1.bf16.msra.mxu0 %v3693_v46  ;;  %v786_v46 = vrot.slane %v411_v39, %v4511_v38 }
  0xf6   : > { %1799 = vmatprep.subr.bf16.mxu0 %v3695_v47  ;;  %v4524_v47 = vsub.s32 2, %v4507_v35 }
  0xf7   : > { %1991 = vmatpush1.bf16.msra.mxu1 %v3694_v49  ;;  %v576_v49 = vrot.slane %v411_v39, %v4516_v41 }
  0xf8   : > { %3594 = vset.pattern.permute.xlu1 %v4061_v1  ;;  %469 = vperm.xlu0 %3595, %v4407_v42  }
  0xf9   : > { %672 = vperm.xlu1 %3594, %v4383_v5   ;;  %1992 = vmatprep.subr.bf16.mxu1 %v3697_v50  ;;  %v3719_v5 = vld [vmem:[#allocation8 + $0x1a4] ss:$16 sps:$4 sm:$0xff]  }
  0xfa   : > { %1800 = vmatpush1.bf16.msra.mxu0 %v3699_v51  ;;  %v4530_v51 = vld [vmem:[%s4359_s13 + $0xe0] sm:$0xff] }
  0xfb   : > { %1801 = vmatprep.subr.bf16.mxu0 %v3701_v52  ;;  %1993 = vmatpush1.bf16.msra.mxu1 %v3700_v54  ;;  %v1064_v52 = vrot.slane %v411_v39, %v1063_v43 }
  0xfc   : > { %479 = vperm.xlu0 %3595, %v4413_v48   ;;  %1994 = vmatprep.subr.bf16.mxu1 %v3703_v55  ;;  %v4536_v55 = vrot.slane %v786_v46, %v4511_v38 }
  0xfd   : > { %676 = vperm.xlu1 %3594, %v4392_v28  }
  0xfe   : > { %1802 = vmatpush1.bf16.msra.mxu0 %v3705_v56  ;;  %v1060_v56 = vrot.slane %v411_v39, %v4524_v47 }
  0xff   : > { %1803 = vmatprep.subr.bf16.mxu0 %v3707_v57  ;;  %1995 = vmatpush1.bf16.msra.mxu1 %v3706_v58 }
 0x100   : > { %489 = vperm.xlu0 %3595, %v4418_v53   ;;  %1996 = vmatprep.subr.bf16.mxu1 %v3709_v60 }
 0x101   : > { %3596 = vset.pattern.permute.xlu1 %v4060_v0 }
 0x102   : > { %950 = vperm.xlu1 %3596, %v4392_v28   ;;  %1804 = vmatpush1.bf16.msra.mxu0 %v3711_v61  ;;  %v4472_v28 = vld [vmem:[%s4359_s13 + $0xb8] sm:$0xff]  ;;  %v4550_v61 = vrot.slane %v1064_v52, %v4524_v47 }
 0x103   : > { %1805 = vmatprep.subr.bf16.mxu0 %v3713_v63  ;;  %1997 = vmatpush1.bf16.msra.mxu1 %v3712_v62  ;;  %v4555_v63 = vrot.slane %v1060_v56, %v4524_v47 }
 0x104   : > { %3610 = vset.pattern.permute.xlu0 %v4060_v0  ;;  %1998 = vmatprep.subr.bf16.mxu1 %v3715_v2 }
 0x105   : > { %954 = vperm.xlu0 %3610, %v385_v59  }
 0x106   : > { %3597 = vset.pattern.permute.xlu1 %v4062_v17  ;;  %1806 = vmatpush1.bf16.msra.mxu0 %v3717_v3 }
 0x107   : > { %444 = vperm.xlu1 %3597, %v385_v59   ;;  %1807 = vmatprep.subr.bf16.mxu0 %v3719_v5 }
 0x108   : > { %1999 = vmatpush1.bf16.msra.mxu1 %v3718_v6 }
 0x109   : > { %962 = vperm.xlu0 %3610, %v387_v4   ;;  %2000 = vmatprep.subr.bf16.mxu1 %v3721_v7 }
 0x10a   : > { %1808 = vmatpush1.bf16.msra.mxu0 %v3723_v8  ;;  %v1203_v8 = vld [vmem:[#allocation7] sm:$0x3] }
 0x10b   : > { %3598 = vset.pattern.permute.xlu1 %v4061_v1  ;;  %1809 = vmatprep.subr.bf16.mxu0 %v3725_v10 }
 0x10c   : > { %680 = vperm.xlu1 %3598, %v385_v59   ;;  %2001 = vmatpush1.bf16.msra.mxu1 %v3724_v11  ;;  %v4544_v59 = vrot.slane %v576_v49, %v4516_v41 }
 0x10d   : > { %970 = vperm.xlu0 %3610, %v389_v9   ;;  %2002 = vmatprep.subr.bf16.mxu1 %v3727_v12  ;;  %v4565_v12 = vld [vmem:[%s4359_s13 + $0xe8] sm:$0xff] }
 0x10e   : > { %1810 = vmatpush1.bf16.msra.mxu0 %v3729_v13 }
 0x10f   : > { %1811 = vmatprep.subr.bf16.mxu0 %v3731_v15  ;;  %v4569_v15 = vrot.slane %v1203_v8, %v4516_v41 }
 0x110   : > { %684 = vperm.xlu1 %3598, %v4395_v31   ;;  %2003 = vmatpush1.bf16.msra.mxu1 %v3730_v16  ;;  %v4572_v16 = vrot.slane %v1203_v8, %v4511_v38 }
 0x111   : > { %978 = vperm.xlu0 %3610, %v4430_v14   ;;  %2004 = vmatprep.subr.bf16.mxu1 %v3733_v18 }
 0x112   : > { %1812 = vmatpush1.bf16.msra.mxu0 %v3735_v19 }
 0x114   : > { %3599 = vset.pattern.permute.xlu1 %v4060_v0  ;;  %2005 = vmatpush1.bf16.msra.mxu1 %v3736_v22 }
 0x115   : > { %958 = vperm.xlu1 %3599, %v4395_v31   ;;  %986 = vperm.xlu0 %3610, %v4435_v20   ;;  %v4488_v31 = vld [vmem:[%s4359_s13 + $0xb0] sm:$0xff] }
 0x119   : > { %3600 = vset.pattern.permute.xlu1 %v4062_v17  ;;  %994 = vperm.xlu0 %3610, %v4439_v21  }
 0x11a   : > { %454 = vperm.xlu1 %3600, %v387_v4  }
 0x11d   : > { %1002 = vperm.xlu0 %3610, %v4446_v23  }
 0x11e   : > { %3601 = vset.pattern.permute.xlu1 %v4061_v1 }
 0x11f   : > { %688 = vperm.xlu1 %3601, %v387_v4  }
 0x121   : > { %1010 = vperm.xlu0 %3610, %v4451_v24  }
 0x123   : > { %692 = vperm.xlu1 %3601, %v4401_v37  }
 0x125   : > { %3621 = vset.pattern.permute.xlu0 %v4062_v17 }
 0x126   : > { %499 = vperm.xlu0 %3621, %v4456_v25  }
 0x127   : > { %3602 = vset.pattern.permute.xlu1 %v4060_v0 }
 0x128   : > { %966 = vperm.xlu1 %3602, %v4401_v37  }
 0x12a   : > { %509 = vperm.xlu0 %3621, %v4462_v26  }
 0x12c   : > { %3603 = vset.pattern.permute.xlu1 %v4062_v17 }
 0x12d   : > { %464 = vperm.xlu1 %3603, %v389_v9  }
 0x12e   : > { %519 = vperm.xlu0 %3621, %v4467_v27  }
 0x131   : > { %3604 = vset.pattern.permute.xlu1 %v4061_v1 }
 0x132   : > { %696 = vperm.xlu1 %3604, %v389_v9   ;;  %529 = vperm.xlu0 %3621, %v4472_v28  }
 0x136   : > { %700 = vperm.xlu1 %3604, %v4407_v42   ;;  %539 = vperm.xlu0 %3621, %v4477_v29  }
 0x13a   : > { %3605 = vset.pattern.permute.xlu1 %v4060_v0  ;;  %549 = vperm.xlu0 %3621, %v4482_v30  }
 0x13b   : > { %974 = vperm.xlu1 %3605, %v4407_v42   ;;  %v579_v42 = vsub.s32 4, %v4507_v35 }
 0x13d   : > { %v580_v50 = vrot.slane %v411_v39, %v579_v42 }
 0x13e   : > { %3630 = vset.pattern.permute.xlu0 %v4060_v0 }
 0x13f   : > { %3606 = vset.pattern.permute.xlu1 %v4062_v17  ;;  %1018 = vperm.xlu0 %3630, %v4488_v31   ;;  %v4547_v60 = vrot.slane %v580_v50, %v4516_v41 }
 0x140   : > { %474 = vperm.xlu1 %3606, %v4430_v14  }
 0x143   : > { %1026 = vperm.xlu0 %3630, %v4495_v32  }
 0x144   : > { %3607 = vset.pattern.permute.xlu1 %v4061_v1 }
 0x145   : > { %704 = vperm.xlu1 %3607, %v4430_v14  }
 0x147   : > { %1034 = vperm.xlu0 %3630, %v4501_v33  }
 0x149   : > { %708 = vperm.xlu1 %3607, %v4413_v48  }
 0x14b   : > { %1042 = vperm.xlu0 %3630, %v4530_v51  }
 0x14d   : > { %3608 = vset.pattern.permute.xlu1 %v4060_v0 }
 0x14e   : > { %982 = vperm.xlu1 %3608, %v4413_v48   ;;  %v790_v48 = vrot.slane %v411_v39, %v789_v40 }
 0x14f   : > { %3635 = vset.pattern.permute.xlu0 %v4062_v17 }
 0x150   : > { %v4540_v58 = vrot.slane %v790_v48, %v4511_v38  ;;  %559 = vperm.xlu0 %3635, %v4565_v12  }
 0x152   : > { %3609 = vset.pattern.permute.xlu1 %v4062_v17  ;;  %v657_v36 = vpop.permute.xlu1 %656  ;;  %v931_v37 = vpop.permute.xlu0 %930 }
 0x153   : > { %484 = vperm.xlu1 %3609, %v4435_v20   ;;  %v801_v62 = vmul.f32 %v4536_v55, %v657_v36  ;;  %v802_v3 = vmul.f32 %v4540_v58, %v657_v36  ;;  %v1076_v4 = vmul.f32 %v4550_v61, %v931_v37  ;;  %v1075_v9 = vmul.f32 %v4555_v63, %v931_v37 }
 0x156   : > { %v661_v44 = vpop.permute.xlu1 %660  ;;  %v4520_v45 = vpop.permute.xlu0 %938 }
 0x157   : > { %3611 = vset.pattern.permute.xlu1 %v4061_v1  ;;  %v803_v13 = vmul.f32 %v4536_v55, %v661_v44  ;;  %v804_v18 = vmul.f32 %v4540_v58, %v661_v44  ;;  %v1080_v46 = vmul.f32 %v4550_v61, %v4520_v45 }
 0x158   : > { %712 = vperm.xlu1 %3611, %v4435_v20  }
 0x15a   : > { %v4532_v54 = vpop.permute.xlu0 %946 }
 0x15b   : > { %v935_v57 = vpop.permute.xlu1 %934 }
 0x15c   : > { %716 = vperm.xlu1 %3611, %v4418_v53   ;;  %v1077_v22 = vmul.f32 %v4555_v63, %v935_v57  ;;  %v1078_v34 = vmul.f32 %v4550_v61, %v935_v57 }
 0x15f   : > { %v415_v2 = vpop.permute.xlu0 %414 }
 0x160   : > { %v591_v5 = vmul.f32 %v4544_v59, %v415_v2  ;;  %v592_v6 = vmul.f32 %v4547_v60, %v415_v2  ;;  %3612 = vset.pattern.permute.xlu1 %v4060_v0  ;;  %v425_v7 = vpop.permute.xlu1 %424 }
 0x161   : > { %990 = vperm.xlu1 %3612, %v4418_v53   ;;  %v596_v37 = vmul.f32 %v4547_v60, %v425_v7  ;;  %v595_v48 = vmul.f32 %v4544_v59, %v425_v7 }
 0x162   : > { %v865_v10 = vadd.f32 %v801_v62, %v591_v5  ;;  %v866_v11 = vadd.f32 %v802_v3, %v592_v6  ;;  %v1079_v62 = vmul.f32 %v4555_v63, %v4520_v45 }
 0x163   : > { %v420_v14 = vpop.permute.xlu0 %419 }
 0x164   : > { %v1140_v19 = vadd.f32 %v1076_v4, %v866_v11  ;;  %v593_v53 = vmul.f32 %v4544_v59, %v420_v14  ;;  %v594_v20 = vmul.f32 %v4547_v60, %v420_v14  ;;  %v1139_v36 = vadd.f32 %v1075_v9, %v865_v10 }
 0x165   : > { %3613 = vset.pattern.permute.xlu1 %v4062_v17  ;;  %v665_v39 = vpop.permute.xlu1 %664 }
 0x166   : > { %v867_v40 = vadd.f32 %v803_v13, %v593_v53  ;;  %v868_v42 = vadd.f32 %v804_v18, %v594_v20  ;;  %v805_v43 = vmul.f32 %v4536_v55, %v665_v39  ;;  %v806_v44 = vmul.f32 %v4540_v58, %v665_v39  ;;  %494 = vperm.xlu1 %3613, %v4439_v21  }
 0x167   : > { %v430_v49 = vpop.permute.xlu0 %429  ;;  %v1216_v57 = vadd.f32 %v4572_v16, %v1140_v19  ;;  %v1215_v4 = vadd.f32 %v4569_v15, %v1139_v36  ;;  %v4601_v36 = vld [vmem:[%s4359_s13 + $0xf8] sm:$0xff] }
 0x168   : > { %v1141_v50 = vadd.f32 %v1077_v22, %v867_v40  ;;  %v1142_v52 = vadd.f32 %v1078_v34, %v868_v42  ;;  %v870_v56 = vadd.f32 %v806_v44, %v596_v37  ;;  %v869_v2 = vadd.f32 %v805_v43, %v595_v48  ;;  %569 = vperm.xlu0 %3635, %v4601_v36  }
 0x169   : > { %v669_v3 = vpop.permute.xlu1 %668  ;;  %v597_v5 = vmul.f32 %v4544_v59, %v430_v49  ;;  %v598_v6 = vmul.f32 %v4547_v60, %v430_v49  ;;  %v1280_v13 = vmax.f32 %v1216_v57, 0.0  ;;  %v1279_v19 = vmax.f32 %v1215_v4, 0.0  ;;  %v4618_v4 = vld [vmem:[%s4359_s13 + $0xf0] sm:$0xff] }
 0x16a   : > { %v807_v8 = vmul.f32 %v4536_v55, %v669_v3  ;;  %v808_v7 = vmul.f32 %v4540_v58, %v669_v3  ;;  %3614 = vset.pattern.permute.xlu1 %v4061_v1  ;;  %v1218_v9 = vadd.f32 %v4572_v16, %v1142_v52  ;;  %v1217_v45 = vadd.f32 %v4569_v15, %v1141_v50 }
 0x16b   : > { %720 = vperm.xlu1 %3614, %v4439_v21   ;;  %v440_v10 = vpop.permute.xlu0 %439  ;;  %v1144_v11 = vadd.f32 %v1080_v46, %v870_v56  ;;  %v1143_v14 = vadd.f32 %v1079_v62, %v869_v2 }
 0x16c   : > { %v1282_v18 = vmax.f32 %v1218_v9, 0.0  ;;  %v1281_v53 = vmax.f32 %v1217_v45, 0.0  ;;  %v871_v20 = vadd.f32 %v807_v8, %v597_v5  ;;  %v872_v22 = vadd.f32 %v808_v7, %v598_v6  ;;  %3639 = vset.pattern.permute.xlu0 %v4060_v0 }
 0x16d   : > { %v1220_v43 = vadd.f32 %v4572_v16, %v1144_v11  ;;  %v1219_v48 = vadd.f32 %v4569_v15, %v1143_v14  ;;  %1050 = vperm.xlu0 %3639, %v4618_v4   ;;  %v1084_v14 = vmul.f32 %v4550_v61, %v4532_v54 }
 0x16e   : > { %v943_v34 = vpop.permute.xlu1 %942  ;;  %v1344_v39 = vpack.c.bf16 %v1282_v18, %v1280_v13  ;;  %v1343_v40 = vpack.c.bf16 %v1281_v53, %v1279_v19  ;;  %v1083_v13 = vmul.f32 %v4555_v63, %v4532_v54 }
 0x16f   : > { %v1081_v37 = vmul.f32 %v4555_v63, %v943_v34  ;;  %v1082_v21 = vmul.f32 %v4550_v61, %v943_v34  ;;  %724 = vperm.xlu1 %3614, %v4456_v25   ;;  %v4606_v42 = vpop.permute.xlu0 %449  ;;  %v1284_v57 = vmax.f32 %v1220_v43, 0.0  ;;  %v1283_v2 = vmax.f32 %v1219_v48, 0.0 }
 0x170   : > { %1813 = vmatprep.mubr.bf16.mxu0 %v1344_v39  ;;  %2006 = vmatprep.mubr.bf16.mxu1 %v1344_v39 }
 0x171   : > { %v1145_v44 = vadd.f32 %v1081_v37, %v871_v20  ;;  %v1146_v46 = vadd.f32 %v1082_v21, %v872_v22  ;;  %1814 = vmatmul.mubr.bf16.vlgmr.msra.gmra.mrb[0].mxu0 %v1343_v40  ;;  %2007 = vmatmul.mubr.bf16.vlgmr.msra.gmra.mrb[0].mxu1 %v1343_v40  ;;  %v601_v20 = vmul.f32 %v4544_v59, %v440_v10 }
 0x172   : > { %v602_v22 = vmul.f32 %v4547_v60, %v440_v10 }
 0x173   : > { %3615 = vset.pattern.permute.xlu1 %v4060_v0  ;;  %v435_v49 = vpop.permute.xlu1 %434  ;;  %v1222_v50 = vadd.f32 %v4572_v16, %v1146_v46  ;;  %v1221_v52 = vadd.f32 %v4569_v15, %v1145_v44  ;;  %v4615_v56 = vpop.permute.xlu0 %459 }
 0x174   : > { %998 = vperm.xlu1 %3615, %v4456_v25   ;;  %v599_v9 = vmul.f32 %v4544_v59, %v435_v49  ;;  %v600_v45 = vmul.f32 %v4547_v60, %v435_v49 }
 0x175   : > { %v1286_v62 = vmax.f32 %v1222_v50, 0.0  ;;  %v1285_v3 = vmax.f32 %v1221_v52, 0.0 }
 0x177   : > { %v1346_v5 = vpack.c.bf16 %v1286_v62, %v1284_v57  ;;  %v1345_v6 = vpack.c.bf16 %v1285_v3, %v1283_v2  ;;  %v4628_v11 = vpop.permute.xlu0 %469 }
 0x178   : > { %3616 = vset.pattern.permute.xlu1 %v4062_v17  ;;  %v673_v8 = vpop.permute.xlu1 %672 }
 0x179   : > { %v809_v7 = vmul.f32 %v4536_v55, %v673_v8  ;;  %v810_v25 = vmul.f32 %v4540_v58, %v673_v8  ;;  %504 = vperm.xlu1 %3616, %v4446_v23   ;;  %1823 = vmatprep.mubr.bf16.mxu0 %v1346_v5 }
 0x17a   : > { %2016 = vmatprep.mubr.bf16.mxu1 %v1346_v5  ;;  %1824 = vmatmul.mubr.bf16.gmra.mrb[4].mxu0 %v1345_v6 }
 0x17b   : > { %2017 = vmatmul.mubr.bf16.gmra.mrb[4].mxu1 %v1345_v6  ;;  %v873_v18 = vadd.f32 %v809_v7, %v599_v9  ;;  %v874_v19 = vadd.f32 %v810_v25, %v600_v45  ;;  %v4640_v40 = vpop.permute.xlu0 %479 }
 0x17c   : > { %v677_v53 = vpop.permute.xlu1 %676 }
 0x17d   : > { %3617 = vset.pattern.permute.xlu1 %v4061_v1  ;;  %v811_v34 = vmul.f32 %v4536_v55, %v677_v53  ;;  %v812_v37 = vmul.f32 %v4540_v58, %v677_v53  ;;  %v1147_v21 = vadd.f32 %v1083_v13, %v873_v18  ;;  %v1148_v39 = vadd.f32 %v1084_v14, %v874_v19 }
 0x17e   : > { %728 = vperm.xlu1 %3617, %v4446_v23  }
 0x17f   : > { %v875_v43 = vadd.f32 %v811_v34, %v601_v20  ;;  %v876_v44 = vadd.f32 %v812_v37, %v602_v22  ;;  %v1224_v50 = vadd.f32 %v4572_v16, %v1148_v39  ;;  %v1223_v52 = vadd.f32 %v4569_v15, %v1147_v21  ;;  %v4648_v57 = vpop.permute.xlu0 %489 }
 0x180   : > { %v605_v37 = vmul.f32 %v4544_v59, %v4606_v42  ;;  %v606_v21 = vmul.f32 %v4547_v60, %v4606_v42 }
 0x181   : > { %v951_v54 = vpop.permute.xlu1 %950  ;;  %v1288_v3 = vmax.f32 %v1224_v50, 0.0  ;;  %v1287_v6 = vmax.f32 %v1223_v52, 0.0 }
 0x182   : > { %v1085_v46 = vmul.f32 %v4555_v63, %v951_v54  ;;  %v1086_v48 = vmul.f32 %v4550_v61, %v951_v54  ;;  %732 = vperm.xlu1 %3617, %v4462_v26  }
 0x184   : > { %v1149_v10 = vadd.f32 %v1085_v46, %v875_v43  ;;  %v1150_v49 = vadd.f32 %v1086_v48, %v876_v44  ;;  %v955_v14 = vpop.permute.xlu0 %954 }
 0x185   : > { %v1087_v20 = vmul.f32 %v4555_v63, %v955_v14  ;;  %v1088_v22 = vmul.f32 %v4550_v61, %v955_v14 }
 0x186   : > { %3618 = vset.pattern.permute.xlu1 %v4060_v0  ;;  %v445_v23 = vpop.permute.xlu1 %444  ;;  %v1226_v62 = vadd.f32 %v4572_v16, %v1150_v49  ;;  %v1225_v2 = vadd.f32 %v4569_v15, %v1149_v10 }
 0x187   : > { %1006 = vperm.xlu1 %3618, %v4462_v26   ;;  %v603_v18 = vmul.f32 %v4544_v59, %v445_v23  ;;  %v604_v26 = vmul.f32 %v4547_v60, %v445_v23 }
 0x188   : > { %v1290_v5 = vmax.f32 %v1226_v62, 0.0  ;;  %v1289_v8 = vmax.f32 %v1225_v2, 0.0 }
 0x18a   : > { %v1348_v7 = vpack.c.bf16 %v1290_v5, %v1288_v3  ;;  %v1347_v25 = vpack.c.bf16 %v1289_v8, %v1287_v6 }
 0x18b   : > { %3619 = vset.pattern.permute.xlu1 %v4062_v17  ;;  %v681_v9 = vpop.permute.xlu1 %680 }
 0x18c   : > { %v813_v45 = vmul.f32 %v4536_v55, %v681_v9  ;;  %v814_v13 = vmul.f32 %v4540_v58, %v681_v9  ;;  %514 = vperm.xlu1 %3619, %v4451_v24   ;;  %1833 = vmatprep.mubr.bf16.mxu0 %v1348_v7 }
 0x18d   : > { %2026 = vmatprep.mubr.bf16.mxu1 %v1348_v7  ;;  %1834 = vmatmul.mubr.bf16.gmra.mrb[8].mxu0 %v1347_v25 }
 0x18e   : > { %2027 = vmatmul.mubr.bf16.gmra.mrb[8].mxu1 %v1347_v25  ;;  %v877_v19 = vadd.f32 %v813_v45, %v603_v18  ;;  %v878_v53 = vadd.f32 %v814_v13, %v604_v26  ;;  %v963_v18 = vpop.permute.xlu0 %962 }
 0x18f   : > { %v685_v34 = vpop.permute.xlu1 %684 }
 0x190   : > { %3620 = vset.pattern.permute.xlu1 %v4061_v1  ;;  %v815_v39 = vmul.f32 %v4536_v55, %v685_v34  ;;  %v816_v54 = vmul.f32 %v4540_v58, %v685_v34  ;;  %v1151_v43 = vadd.f32 %v1087_v20, %v877_v19  ;;  %v1152_v44 = vadd.f32 %v1088_v22, %v878_v53 }
 0x191   : > { %736 = vperm.xlu1 %3620, %v4451_v24   ;;  %v1091_v20 = vmul.f32 %v4555_v63, %v963_v18  ;;  %v1092_v22 = vmul.f32 %v4550_v61, %v963_v18 }
 0x192   : > { %v879_v48 = vadd.f32 %v815_v39, %v605_v37  ;;  %v880_v10 = vadd.f32 %v816_v54, %v606_v21  ;;  %v1227_v52 = vadd.f32 %v4569_v15, %v1151_v43  ;;  %v1228_v42 = vadd.f32 %v4572_v16, %v1152_v44 }
 0x193   : > { %v609_v37 = vmul.f32 %v4544_v59, %v4615_v56  ;;  %v610_v21 = vmul.f32 %v4547_v60, %v4615_v56 }
 0x194   : > { %v959_v46 = vpop.permute.xlu1 %958  ;;  %v1292_v5 = vmax.f32 %v1228_v42, 0.0  ;;  %v1291_v8 = vmax.f32 %v1227_v52, 0.0 }
 0x195   : > { %v1089_v49 = vmul.f32 %v4555_v63, %v959_v46  ;;  %v1090_v50 = vmul.f32 %v4550_v61, %v959_v46  ;;  %740 = vperm.xlu1 %3620, %v4467_v27  }
 0x197   : > { %v1153_v23 = vadd.f32 %v1089_v49, %v879_v48  ;;  %v1154_v62 = vadd.f32 %v1090_v50, %v880_v10 }
 0x199   : > { %v1229_v2 = vadd.f32 %v4569_v15, %v1153_v23  ;;  %v1230_v24 = vadd.f32 %v4572_v16, %v1154_v62  ;;  %3622 = vset.pattern.permute.xlu1 %v4060_v0  ;;  %v455_v3 = vpop.permute.xlu1 %454 }
 0x19a   : > { %1014 = vperm.xlu1 %3622, %v4467_v27   ;;  %v607_v26 = vmul.f32 %v4544_v59, %v455_v3  ;;  %v608_v27 = vmul.f32 %v4547_v60, %v455_v3 }
 0x19b   : > { %v1294_v6 = vmax.f32 %v1230_v24, 0.0  ;;  %v1293_v7 = vmax.f32 %v1229_v2, 0.0 }
 0x19d   : > { %v1350_v25 = vpack.c.bf16 %v1294_v6, %v1292_v5  ;;  %v1349_v9 = vpack.c.bf16 %v1293_v7, %v1291_v8 }
 0x19e   : > { %3623 = vset.pattern.permute.xlu1 %v4062_v17  ;;  %v689_v45 = vpop.permute.xlu1 %688 }
 0x19f   : > { %v817_v13 = vmul.f32 %v4536_v55, %v689_v45  ;;  %v818_v14 = vmul.f32 %v4540_v58, %v689_v45  ;;  %524 = vperm.xlu1 %3623, %v4488_v31   ;;  %1843 = vmatprep.mubr.bf16.mxu0 %v1350_v25 }
 0x1a0   : > { %2036 = vmatprep.mubr.bf16.mxu1 %v1350_v25  ;;  %1844 = vmatmul.mubr.bf16.gmra.mrb[12].mxu0 %v1349_v9 }
 0x1a1   : > { %2037 = vmatmul.mubr.bf16.gmra.mrb[12].mxu1 %v1349_v9  ;;  %v881_v19 = vadd.f32 %v817_v13, %v607_v26  ;;  %v882_v53 = vadd.f32 %v818_v14, %v608_v27  ;;  %v971_v13 = vpop.permute.xlu0 %970 }
 0x1a2   : > { %v693_v34 = vpop.permute.xlu1 %692  ;;  %v1095_v27 = vmul.f32 %v4555_v63, %v971_v13 }
 0x1a3   : > { %3624 = vset.pattern.permute.xlu1 %v4061_v1  ;;  %v819_v39 = vmul.f32 %v4536_v55, %v693_v34  ;;  %v820_v54 = vmul.f32 %v4540_v58, %v693_v34  ;;  %v1155_v43 = vadd.f32 %v1091_v20, %v881_v19  ;;  %v1156_v44 = vadd.f32 %v1092_v22, %v882_v53 }
 0x1a4   : > { %744 = vperm.xlu1 %3624, %v4488_v31   ;;  %v1096_v19 = vmul.f32 %v4550_v61, %v971_v13  ;;  %v613_v20 = vmul.f32 %v4544_v59, %v4628_v11  ;;  %v614_v22 = vmul.f32 %v4547_v60, %v4628_v11 }
 0x1a5   : > { %v883_v48 = vadd.f32 %v819_v39, %v609_v37  ;;  %v884_v10 = vadd.f32 %v820_v54, %v610_v21  ;;  %v1231_v52 = vadd.f32 %v4569_v15, %v1155_v43  ;;  %v1232_v56 = vadd.f32 %v4572_v16, %v1156_v44 }
 0x1a7   : > { %v967_v46 = vpop.permute.xlu1 %966  ;;  %v1296_v24 = vmax.f32 %v1232_v56, 0.0  ;;  %v1295_v5 = vmax.f32 %v1231_v52, 0.0 }
 0x1a8   : > { %v1093_v49 = vmul.f32 %v4555_v63, %v967_v46  ;;  %v1094_v50 = vmul.f32 %v4550_v61, %v967_v46  ;;  %748 = vperm.xlu1 %3624, %v4472_v28  }
 0x1aa   : > { %v1157_v42 = vadd.f32 %v1093_v49, %v883_v48  ;;  %v1158_v23 = vadd.f32 %v1094_v50, %v884_v10 }
 0x1ac   : > { %v1233_v62 = vadd.f32 %v4569_v15, %v1157_v42  ;;  %v1234_v31 = vadd.f32 %v4572_v16, %v1158_v23  ;;  %3625 = vset.pattern.permute.xlu1 %v4060_v0  ;;  %v465_v2 = vpop.permute.xlu1 %464 }
 0x1ad   : > { %1022 = vperm.xlu1 %3625, %v4472_v28   ;;  %v611_v14 = vmul.f32 %v4544_v59, %v465_v2  ;;  %v612_v28 = vmul.f32 %v4547_v60, %v465_v2 }
 0x1ae   : > { %v1298_v3 = vmax.f32 %v1234_v31, 0.0  ;;  %v1297_v6 = vmax.f32 %v1233_v62, 0.0 }
 0x1b0   : > { %v1352_v8 = vpack.c.bf16 %v1298_v3, %v1296_v24  ;;  %v1351_v7 = vpack.c.bf16 %v1297_v6, %v1295_v5 }
 0x1b1   : > { %3626 = vset.pattern.permute.xlu1 %v4062_v17  ;;  %v697_v25 = vpop.permute.xlu1 %696 }
 0x1b2   : > { %v821_v9 = vmul.f32 %v4536_v55, %v697_v25  ;;  %v822_v45 = vmul.f32 %v4540_v58, %v697_v25  ;;  %534 = vperm.xlu1 %3626, %v4495_v32   ;;  %1853 = vmatprep.mubr.bf16.mxu0 %v1352_v8 }
 0x1b3   : > { %2046 = vmatprep.mubr.bf16.mxu1 %v1352_v8  ;;  %1854 = vmatmul.mubr.bf16.gmra.mrb[16].mxu0 %v1351_v7  ;;  %v979_v8 = vpop.permute.xlu0 %978 }
 0x1b4   : > { %2047 = vmatmul.mubr.bf16.gmra.mrb[16].mxu1 %v1351_v7  ;;  %v885_v18 = vadd.f32 %v821_v9, %v611_v14  ;;  %v886_v26 = vadd.f32 %v822_v45, %v612_v28  ;;  %v1099_v45 = vmul.f32 %v4555_v63, %v979_v8  ;;  %v1100_v13 = vmul.f32 %v4550_v61, %v979_v8 }
 0x1b5   : > { %v701_v53 = vpop.permute.xlu1 %700  ;;  %v617_v28 = vmul.f32 %v4544_v59, %v4640_v40  ;;  %v621_v8 = vmul.f32 %v4544_v59, %v4648_v57 }
 0x1b6   : > { %3627 = vset.pattern.permute.xlu1 %v4061_v1  ;;  %v823_v34 = vmul.f32 %v4536_v55, %v701_v53  ;;  %v824_v37 = vmul.f32 %v4540_v58, %v701_v53  ;;  %v1159_v21 = vadd.f32 %v1095_v27, %v885_v18  ;;  %v1160_v39 = vadd.f32 %v1096_v19, %v886_v26 }
 0x1b7   : > { %752 = vperm.xlu1 %3627, %v4495_v32   ;;  %v618_v18 = vmul.f32 %v4547_v60, %v4640_v40 }
 0x1b8   : > { %v887_v43 = vadd.f32 %v823_v34, %v613_v20  ;;  %v888_v44 = vadd.f32 %v824_v37, %v614_v22  ;;  %v1235_v10 = vadd.f32 %v4569_v15, %v1159_v21  ;;  %v1236_v11 = vadd.f32 %v4572_v16, %v1160_v39 }
 0x1ba   : > { %v975_v54 = vpop.permute.xlu1 %974  ;;  %v1300_v42 = vmax.f32 %v1236_v11, 0.0  ;;  %v1299_v62 = vmax.f32 %v1235_v10, 0.0 }
 0x1bb   : > { %v1097_v46 = vmul.f32 %v4555_v63, %v975_v54  ;;  %v1098_v48 = vmul.f32 %v4550_v61, %v975_v54  ;;  %756 = vperm.xlu1 %3627, %v4477_v29  }
 0x1bd   : > { %v1161_v49 = vadd.f32 %v1097_v46, %v887_v43  ;;  %v1162_v50 = vadd.f32 %v1098_v48, %v888_v44 }
 0x1bf   : > { %v1237_v52 = vadd.f32 %v4569_v15, %v1161_v49  ;;  %v1238_v32 = vadd.f32 %v4572_v16, %v1162_v50  ;;  %3628 = vset.pattern.permute.xlu1 %v4060_v0  ;;  %v475_v56 = vpop.permute.xlu1 %474 }
 0x1c0   : > { %1030 = vperm.xlu1 %3628, %v4477_v29   ;;  %v615_v7 = vmul.f32 %v4544_v59, %v475_v56  ;;  %v616_v29 = vmul.f32 %v4547_v60, %v475_v56 }
 0x1c1   : > { %v1302_v23 = vmax.f32 %v1238_v32, 0.0  ;;  %v1301_v31 = vmax.f32 %v1237_v52, 0.0  ;;  %v987_v52 = vpop.permute.xlu0 %986 }
 0x1c3   : > { %v1354_v2 = vpack.c.bf16 %v1302_v23, %v1300_v42  ;;  %v1353_v24 = vpack.c.bf16 %v1301_v31, %v1299_v62 }
 0x1c4   : > { %3629 = vset.pattern.permute.xlu1 %v4062_v17  ;;  %v705_v3 = vpop.permute.xlu1 %704 }
 0x1c5   : > { %v825_v5 = vmul.f32 %v4536_v55, %v705_v3  ;;  %v826_v6 = vmul.f32 %v4540_v58, %v705_v3  ;;  %544 = vperm.xlu1 %3629, %v4501_v33   ;;  %1863 = vmatprep.mubr.bf16.mxu0 %v1354_v2  ;;  %v995_v31 = vpop.permute.xlu0 %994  ;;  %v1103_v3 = vmul.f32 %v4555_v63, %v987_v52 }
 0x1c6   : > { %2056 = vmatprep.mubr.bf16.mxu1 %v1354_v2  ;;  %1864 = vmatmul.mubr.bf16.gmra.mrb[20].mxu0 %v1353_v24 }
 0x1c7   : > { %2057 = vmatmul.mubr.bf16.gmra.mrb[20].mxu1 %v1353_v24  ;;  %v889_v25 = vadd.f32 %v825_v5, %v615_v7  ;;  %v890_v9 = vadd.f32 %v826_v6, %v616_v29  ;;  %v1104_v5 = vmul.f32 %v4550_v61, %v987_v52  ;;  %v622_v7 = vmul.f32 %v4547_v60, %v4648_v57 }
 0x1c8   : > { %v709_v14 = vpop.permute.xlu1 %708 }
 0x1c9   : > { %3631 = vset.pattern.permute.xlu1 %v4061_v1  ;;  %v827_v26 = vmul.f32 %v4536_v55, %v709_v14  ;;  %v828_v27 = vmul.f32 %v4540_v58, %v709_v14  ;;  %v1163_v19 = vadd.f32 %v1099_v45, %v889_v25  ;;  %v1164_v53 = vadd.f32 %v1100_v13, %v890_v9  ;;  %v4769_v14 = vpop.permute.xlu0 %1002 }
 0x1ca   : > { %760 = vperm.xlu1 %3631, %v4501_v33  }
 0x1cb   : > { %v891_v22 = vadd.f32 %v827_v26, %v617_v28  ;;  %v892_v34 = vadd.f32 %v828_v27, %v618_v18  ;;  %v1239_v39 = vadd.f32 %v4569_v15, %v1163_v19  ;;  %v1240_v40 = vadd.f32 %v4572_v16, %v1164_v53 }
 0x1cd   : > { %v983_v20 = vpop.permute.xlu1 %982  ;;  %v1304_v48 = vmax.f32 %v1240_v40, 0.0  ;;  %v1303_v11 = vmax.f32 %v1239_v39, 0.0 }
 0x1ce   : > { %v1101_v37 = vmul.f32 %v4555_v63, %v983_v20  ;;  %v1102_v21 = vmul.f32 %v4550_v61, %v983_v20  ;;  %764 = vperm.xlu1 %3631, %v4482_v30  }
 0x1d0   : > { %v1165_v54 = vadd.f32 %v1101_v37, %v891_v22  ;;  %v1166_v43 = vadd.f32 %v1102_v21, %v892_v34  ;;  %v4780_v37 = vpop.permute.xlu0 %1010 }
 0x1d2   : > { %v1241_v44 = vadd.f32 %v4569_v15, %v1165_v54  ;;  %v1242_v33 = vadd.f32 %v4572_v16, %v1166_v43  ;;  %3632 = vset.pattern.permute.xlu1 %v4060_v0  ;;  %v485_v46 = vpop.permute.xlu1 %484 }
 0x1d3   : > { %1038 = vperm.xlu1 %3632, %v4482_v30   ;;  %v619_v62 = vmul.f32 %v4544_v59, %v485_v46  ;;  %v620_v30 = vmul.f32 %v4547_v60, %v485_v46  ;;  %v3737_v46 = vld [vmem:[#allocation11 + $0x40] sm:$0xff]  }
 0x1d4   : > { %v1306_v10 = vmax.f32 %v1242_v33, 0.0  ;;  %v1305_v49 = vmax.f32 %v1241_v44, 0.0  ;;  %v500_v52 = vpop.permute.xlu0 %499  ;;  %3245 = vmatprep.subr.bf16.mxu0 %v3737_v46  ;;  %v3751_v46 = vld [vmem:[#allocation11 + $0x18] sm:$0xff]  }
 0x1d6   : > { %v1356_v50 = vpack.c.bf16 %v1306_v10, %v1304_v48  ;;  %v1355_v32 = vpack.c.bf16 %v1305_v49, %v1303_v11  ;;  %v3738_v48 = vld [vmem:[#allocation11] sm:$0xff]  }
 0x1d7   : > { %3633 = vset.pattern.permute.xlu1 %v4062_v17  ;;  %v713_v56 = vpop.permute.xlu1 %712  ;;  %3246 = vmatpush3.bf16.msra.mxu0 %v3738_v48  ;;  %v3752_v48 = vld [vmem:[#allocation11 + $0x98] sm:$0xff]  }
 0x1d8   : > { %v829_v42 = vmul.f32 %v4536_v55, %v713_v56  ;;  %v830_v23 = vmul.f32 %v4540_v58, %v713_v56  ;;  %554 = vperm.xlu1 %3633, %v4530_v51   ;;  %1873 = vmatprep.mubr.bf16.mxu0 %v1356_v50  ;;  %v1108_v56 = vmul.f32 %v4550_v61, %v995_v31 }
 0x1d9   : > { %2066 = vmatprep.mubr.bf16.mxu1 %v1356_v50  ;;  %1874 = vmatmul.mubr.bf16.gmra.mrb[24].mxu0 %v1355_v32 }
 0x1da   : > { %2067 = vmatmul.mubr.bf16.gmra.mrb[24].mxu1 %v1355_v32  ;;  %v893_v2 = vadd.f32 %v829_v42, %v619_v62  ;;  %v894_v24 = vadd.f32 %v830_v23, %v620_v30  ;;  %v3740_v32 = vld [vmem:[#allocation11 + $0x80] sm:$0xff]   ;;  %v625_v30 = vmul.f32 %v4544_v59, %v500_v52 }
 0x1db   : > { %v717_v6 = vpop.permute.xlu1 %716 }
 0x1dc   : > { %3634 = vset.pattern.permute.xlu1 %v4061_v1  ;;  %v831_v29 = vmul.f32 %v4536_v55, %v717_v6  ;;  %v832_v25 = vmul.f32 %v4540_v58, %v717_v6  ;;  %v1167_v9 = vadd.f32 %v1103_v3, %v893_v2  ;;  %v1168_v45 = vadd.f32 %v1104_v5, %v894_v24  ;;  %v3741_v5 = vld [vmem:[#allocation11 + $0x48] sm:$0xff]  }
 0x1dd   : > { %768 = vperm.xlu1 %3634, %v4530_v51   ;;  %v626_v2 = vmul.f32 %v4547_v60, %v500_v52  ;;  %3247 = vmatprep.subr.bf16.mxu0 %v3741_v5  ;;  %v1112_v52 = vmul.f32 %v4550_v61, %v4769_v14 }
 0x1de   : > { %v895_v28 = vadd.f32 %v831_v29, %v621_v8  ;;  %v896_v18 = vadd.f32 %v832_v25, %v622_v7  ;;  %v1243_v57 = vadd.f32 %v4569_v15, %v1167_v9  ;;  %v1244_v19 = vadd.f32 %v4572_v16, %v1168_v45  ;;  %v3743_v29 = vld [vmem:[#allocation11 + $0x8] sm:$0xff]  }
 0x1df   : > { %v3744_v25 = vld [vmem:[#allocation11 + $0x88] sm:$0xff]   ;;  %3248 = vmatpush3.bf16.msra.mxu0 %v3743_v29 }
 0x1e0   : > { %v991_v13 = vpop.permute.xlu1 %990  ;;  %v1308_v21 = vmax.f32 %v1244_v19, 0.0  ;;  %v1307_v40 = vmax.f32 %v1243_v57, 0.0  ;;  %v3746_v57 = vld [vmem:[#allocation11 + $0xd0] sm:$0xff]  }
 0x1e1   : > { %v1105_v26 = vmul.f32 %v4555_v63, %v991_v13  ;;  %v1106_v27 = vmul.f32 %v4550_v61, %v991_v13  ;;  %772 = vperm.xlu1 %3634, %v4565_v12   ;;  %v3747_v19 = vld [vmem:[#allocation11 + $0x10] sm:$0xff]  }
 0x1e3   : > { %v1169_v53 = vadd.f32 %v1105_v26, %v895_v28  ;;  %v1170_v20 = vadd.f32 %v1106_v27, %v896_v18  ;;  %v3745_v27 = vld [vmem:[#allocation11 + $0x50] sm:$0xff]  }
 0x1e4   : > { %3249 = vmatprep.subr.bf16.mxu0 %v3745_v27 }
 0x1e5   : > { %v1245_v51 = vadd.f32 %v4569_v15, %v1169_v53  ;;  %v1246_v22 = vadd.f32 %v4572_v16, %v1170_v20  ;;  %3636 = vset.pattern.permute.xlu1 %v4060_v0  ;;  %v495_v34 = vpop.permute.xlu1 %494  ;;  %v3748_v53 = vld [vmem:[#allocation11 + $0x90] sm:$0xff]   ;;  %3250 = vmatpush3.bf16.msra.mxu0 %v3747_v19 }
 0x1e6   : > { %1046 = vperm.xlu1 %3636, %v4565_v12   ;;  %v3739_v12 = vld [vmem:[#allocation11 + $0xc0] sm:$0xff]   ;;  %v623_v49 = vmul.f32 %v4544_v59, %v495_v34  ;;  %v624_v50 = vmul.f32 %v4547_v60, %v495_v34 }
 0x1e7   : > { %v1310_v39 = vmax.f32 %v1246_v22, 0.0  ;;  %v1309_v54 = vmax.f32 %v1245_v51, 0.0  ;;  %3357 = vmatprep.subr.bf16.mxu1 %v3739_v12  ;;  %v3753_v12 = vld [vmem:[#allocation11 + $0x60] sm:$0xff]  }
 0x1e8   : > { %3358 = vmatpush3.bf16.msra.mxu1 %v3740_v32 }
 0x1e9   : > { %v1358_v43 = vpack.c.bf16 %v1310_v39, %v1308_v21  ;;  %v1357_v44 = vpack.c.bf16 %v1309_v54, %v1307_v40  ;;  %v3749_v54 = vld [vmem:[#allocation11 + $0x58] sm:$0xff]  }
 0x1ea   : > { %3637 = vset.pattern.permute.xlu1 %v4062_v17  ;;  %v721_v33 = vpop.permute.xlu1 %720  ;;  %v1107_v17 = vmul.f32 %v4555_v63, %v995_v31  ;;  %v3742_v31 = vld [vmem:[#allocation11 + $0xc8] sm:$0xff]   ;;  %3251 = vmatprep.subr.bf16.mxu0 %v3749_v54 }
 0x1eb   : > { %v833_v10 = vmul.f32 %v4536_v55, %v721_v33  ;;  %v834_v11 = vmul.f32 %v4540_v58, %v721_v33  ;;  %564 = vperm.xlu1 %3637, %v4618_v4   ;;  %1883 = vmatprep.mubr.bf16.mxu0 %v1358_v43 }
 0x1ec   : > { %2076 = vmatprep.mubr.bf16.mxu1 %v1358_v43  ;;  %1884 = vmatmul.mubr.bf16.gmra.mrb[28].mxu0 %v1357_v44  ;;  %v3750_v43 = vld [vmem:[#allocation11 + $0xd8] sm:$0xff]  }
 0x1ed   : > { %2077 = vmatmul.mubr.bf16.gmra.mrb[28].mxu1 %v1357_v44  ;;  %v897_v42 = vadd.f32 %v833_v10, %v623_v49  ;;  %v898_v23 = vadd.f32 %v834_v11, %v624_v50  ;;  %3359 = vmatprep.subr.bf16.mxu1 %v3742_v31  ;;  %v3754_v49 = vld [vmem:[#allocation11 + $0xe0] sm:$0xff]  }
 0x1ee   : > { %v725_v62 = vpop.permute.xlu1 %724  ;;  %3360 = vmatpush3.bf16.msra.mxu1 %v3744_v25  ;;  %3252 = vmatpush3.bf16.msra.mxu0 %v3751_v46  ;;  %v3761_v25 = vld [vmem:[#allocation11 + $0x70] sm:$0xff]  }
 0x1ef   : > { %3638 = vset.pattern.permute.xlu1 %v4061_v1  ;;  %v835_v24 = vmul.f32 %v4536_v55, %v725_v62  ;;  %v836_v3 = vmul.f32 %v4540_v58, %v725_v62  ;;  %v1171_v6 = vadd.f32 %v1107_v17, %v897_v42  ;;  %v1172_v8 = vadd.f32 %v1108_v56, %v898_v23  ;;  %v510_v17 = vpop.permute.xlu0 %509  ;;  %v3755_v56 = vld [vmem:[#allocation11 + $0x20] sm:$0xff]  }
 0x1f0   : > { %776 = vperm.xlu1 %3638, %v4618_v4   ;;  %3361 = vmatprep.subr.bf16.mxu1 %v3746_v57  ;;  %v1111_v42 = vmul.f32 %v4555_v63, %v4769_v14  ;;  %v630_v5 = vmul.f32 %v4547_v60, %v510_v17  ;;  %v3760_v14 = vld [vmem:[#allocation11 + $0xa8] sm:$0xff]  }
 0x1f1   : > { %v899_v9 = vadd.f32 %v835_v24, %v625_v30  ;;  %v900_v1 = vadd.f32 %v836_v3, %v626_v2  ;;  %v1248_v18 = vadd.f32 %v4572_v16, %v1172_v8  ;;  %v1247_v26 = vadd.f32 %v4569_v15, %v1171_v6  ;;  %3253 = vmatprep.subr.bf16.mxu0 %v3753_v12  ;;  %v3756_v30 = vld [vmem:[#allocation11 + $0xa0] sm:$0xff]   ;;  %v3757_v2 = vld [vmem:[#allocation11 + $0x68] sm:$0xff]  }
 0x1f2   : > { %3362 = vmatpush3.bf16.msra.mxu1 %v3748_v53  ;;  %v3758_v24 = vld [vmem:[#allocation11 + $0xe8] sm:$0xff]   ;;  %v629_v3 = vmul.f32 %v4544_v59, %v510_v17  ;;  %3254 = vmatpush3.bf16.msra.mxu0 %v3755_v56  ;;  %v3764_v53 = vld [vmem:[#allocation11 + $0xb0] sm:$0xff]  }
 0x1f3   : > { %v999_v7 = vpop.permute.xlu1 %998  ;;  %v1312_v34 = vmax.f32 %v1248_v18, 0.0  ;;  %v1311_v39 = vmax.f32 %v1247_v26, 0.0  ;;  %3363 = vmatprep.subr.bf16.mxu1 %v3750_v43  ;;  %3255 = vmatprep.subr.bf16.mxu0 %v3757_v2  ;;  %v3763_v26 = vld [vmem:[#allocation11 + $0x30] sm:$0xff]  }
 0x1f4   : > { %v1109_v45 = vmul.f32 %v4555_v63, %v999_v7  ;;  %v1110_v13 = vmul.f32 %v4550_v61, %v999_v7  ;;  %780 = vperm.xlu1 %3638, %v4601_v36   ;;  %v3759_v7 = vld [vmem:[#allocation11 + $0x28] sm:$0xff]  }
 0x1f6   : > { %v1173_v4 = vadd.f32 %v1109_v45, %v899_v9  ;;  %v1174_v28 = vadd.f32 %v1110_v13, %v900_v1  ;;  %3364 = vmatpush3.bf16.msra.mxu1 %v3752_v48  ;;  %v3762_v1 = vld [vmem:[#allocation11 + $0xf0] sm:$0xff]   ;;  %3256 = vmatpush3.bf16.msra.mxu0 %v3759_v7 }
 0x1f7   : > { %3365 = vmatprep.subr.bf16.mxu1 %v3754_v49  ;;  %3257 = vmatprep.subr.bf16.mxu0 %v3761_v25 }
 0x1f8   : > { %v1249_v20 = vadd.f32 %v4569_v15, %v1173_v4  ;;  %v1250_v51 = vadd.f32 %v4572_v16, %v1174_v28  ;;  %3640 = vset.pattern.permute.xlu1 %v4060_v0  ;;  %v505_v22 = vpop.permute.xlu1 %504 }
 0x1f9   : > { %1054 = vperm.xlu1 %3640, %v4601_v36   ;;  %v628_v10 = vmul.f32 %v4547_v60, %v505_v22  ;;  %v627_v50 = vmul.f32 %v4544_v59, %v505_v22 }
 0x1fa   : > { %v1314_v21 = vmax.f32 %v1250_v51, 0.0  ;;  %v1313_v40 = vmax.f32 %v1249_v20, 0.0  ;;  %3366 = vmatpush3.bf16.msra.mxu1 %v3756_v30  ;;  %v3765_v20 = vld [vmem:[#allocation11 + $0x78] sm:$0xff]   ;;  %3258 = vmatpush3.bf16.msra.mxu0 %v3763_v26 }
 0x1fb   : > { %3367 = vmatprep.subr.bf16.mxu1 %v3758_v24  ;;  %v3766_v51 = vld [vmem:[#allocation11 + $0xf8] sm:$0xff]   ;;  %3259 = vmatprep.subr.bf16.mxu0 %v3765_v20 }
 0x1fc   : > { %v1360_v44 = vpack.c.bf16 %v1314_v21, %v1312_v34  ;;  %v1359_v33 = vpack.c.bf16 %v1313_v40, %v1311_v39  ;;  %v520_v39 = vpop.permute.xlu0 %519  ;;  %v3767_v40 = vld [vmem:[#allocation11 + $0x38] sm:$0xff]  }
 0x1fd   : > { %v729_v0 = vpop.permute.xlu1 %728 }
 0x1fe   : > { %v837_v36 = vmul.f32 %v4536_v55, %v729_v0  ;;  %v838_v11 = vmul.f32 %v4540_v58, %v729_v0  ;;  %1893 = vmatprep.mubr.bf16.mxu0 %v1360_v44  ;;  %2086 = vmatprep.mubr.bf16.mxu1 %v1360_v44  ;;  %v3768_v0 = vld [vmem:[#allocation11 + $0xb8] sm:$0xff]  }
 0x1ff   : > { %1894 = vmatmul.mubr.bf16.gmra.mrb[32].mxu0 %v1359_v33  ;;  %2087 = vmatmul.mubr.bf16.gmra.mrb[32].mxu1 %v1359_v33 }
 0x200   : > { %v902_v32 = vadd.f32 %v838_v11, %v628_v10  ;;  %v901_v23 = vadd.f32 %v837_v36, %v627_v50  ;;  %3368 = vmatpush3.bf16.msra.mxu1 %v3760_v14  ;;  %3260 = vmatpush3.bf16.msra.mxu0 %v3767_v40  ;;  %v530_v50 = vpop.permute.xlu0 %529 }
 0x201   : > { %v733_v62 = vpop.permute.xlu1 %732  ;;  %3369 = vmatprep.subr.bf16.mxu1 %v3762_v1 }
 0x202   : > { %v839_v31 = vmul.f32 %v4536_v55, %v733_v62  ;;  %v840_v6 = vmul.f32 %v4540_v58, %v733_v62  ;;  %v1176_v8 = vadd.f32 %v1112_v52, %v902_v32  ;;  %v1175_v29 = vadd.f32 %v1111_v42, %v901_v23 }
 0x203   : > { %v1115_v52 = vmul.f32 %v4555_v63, %v4780_v37  ;;  %v1116_v32 = vmul.f32 %v4550_v61, %v4780_v37  ;;  %v633_v23 = vmul.f32 %v4544_v59, %v520_v39  ;;  %v634_v62 = vmul.f32 %v4547_v60, %v520_v39 }
 0x204   : > { %v903_v45 = vadd.f32 %v839_v31, %v629_v3  ;;  %v904_v13 = vadd.f32 %v840_v6, %v630_v5  ;;  %v1252_v18 = vadd.f32 %v4572_v16, %v1176_v8  ;;  %v1251_v19 = vadd.f32 %v4569_v15, %v1175_v29  ;;  %3370 = vmatpush3.bf16.msra.mxu1 %v3764_v53  ;;  %v4835_v5 = vpop.permute.xlu0 %539 }
 0x205   : > { %3371 = vmatprep.subr.bf16.mxu1 %v3766_v51 }
 0x206   : > { %v1007_v9 = vpop.permute.xlu1 %1006  ;;  %v1316_v54 = vmax.f32 %v1252_v18, 0.0  ;;  %v1315_v44 = vmax.f32 %v1251_v19, 0.0 }
 0x207   : > { %v1113_v4 = vmul.f32 %v4555_v63, %v1007_v9  ;;  %v1114_v28 = vmul.f32 %v4550_v61, %v1007_v9 }
 0x208   : > { %3372 = vmatpush3.bf16.msra.mxu1 %v3768_v0 }
 0x209   : > { %v1177_v27 = vadd.f32 %v1113_v4, %v903_v45  ;;  %v1178_v57 = vadd.f32 %v1114_v28, %v904_v13  ;;  %v4843_v4 = vpop.permute.xlu0 %549 }
 0x20b   : > { %v1253_v22 = vadd.f32 %v4569_v15, %v1177_v27  ;;  %v1254_v34 = vadd.f32 %v4572_v16, %v1178_v57  ;;  %v515_v21 = vpop.permute.xlu1 %514 }
 0x20c   : > { %v631_v12 = vmul.f32 %v4544_v59, %v515_v21  ;;  %v632_v49 = vmul.f32 %v4547_v60, %v515_v21 }
 0x20d   : > { %v1318_v43 = vmax.f32 %v1254_v34, 0.0  ;;  %v1317_v33 = vmax.f32 %v1253_v22, 0.0  ;;  %v1019_v22 = vpop.permute.xlu0 %1018 }
 0x20f   : > { %v1362_v46 = vpack.c.bf16 %v1318_v43, %v1316_v54  ;;  %v1361_v48 = vpack.c.bf16 %v1317_v33, %v1315_v44  ;;  %v1119_v54 = vmul.f32 %v4555_v63, %v1019_v22  ;;  %v1120_v43 = vmul.f32 %v4550_v61, %v1019_v22  ;;  %v1439_v22 = vld [vmem:[#allocation10] sm:$0xf] }
 0x210   : > { %v737_v10 = vpop.permute.xlu1 %736  ;;  %v637_v33 = vmul.f32 %v4544_v59, %v530_v50 }
 0x211   : > { %v841_v36 = vmul.f32 %v4536_v55, %v737_v10  ;;  %v842_v11 = vmul.f32 %v4540_v58, %v737_v10  ;;  %1903 = vmatprep.mubr.bf16.mxu0 %v1362_v46  ;;  %2096 = vmatprep.mubr.bf16.mxu1 %v1362_v46  ;;  %v638_v46 = vmul.f32 %v4547_v60, %v530_v50 }
 0x212   : > { %1904 = vmatmul.mubr.bf16.gmra.mrb[36].mxu0 %v1361_v48  ;;  %2097 = vmatmul.mubr.bf16.gmra.mrb[36].mxu1 %v1361_v48 }
 0x213   : > { %v905_v17 = vadd.f32 %v841_v36, %v631_v12  ;;  %v906_v56 = vadd.f32 %v842_v11, %v632_v49 }
 0x214   : > { %v741_v42 = vpop.permute.xlu1 %740 }
 0x215   : > { %v843_v30 = vmul.f32 %v4536_v55, %v741_v42  ;;  %v844_v2 = vmul.f32 %v4540_v58, %v741_v42  ;;  %v1179_v24 = vadd.f32 %v1115_v52, %v905_v17  ;;  %v1180_v3 = vadd.f32 %v1116_v32, %v906_v56 }
 0x217   : > { %v907_v6 = vadd.f32 %v843_v30, %v633_v23  ;;  %v908_v8 = vadd.f32 %v844_v2, %v634_v62  ;;  %v1256_v25 = vadd.f32 %v4572_v16, %v1180_v3  ;;  %v1255_v9 = vadd.f32 %v4569_v15, %v1179_v24 }
 0x219   : > { %v1015_v31 = vpop.permute.xlu1 %1014  ;;  %v1320_v28 = vmax.f32 %v1256_v25, 0.0  ;;  %v1319_v26 = vmax.f32 %v1255_v9, 0.0 }
 0x21a   : > { %v1117_v37 = vmul.f32 %v4555_v63, %v1015_v31  ;;  %v1118_v7 = vmul.f32 %v4550_v61, %v1015_v31 }
 0x21c   : > { %v1181_v29 = vadd.f32 %v1117_v37, %v907_v6  ;;  %v1182_v14 = vadd.f32 %v1118_v7, %v908_v8 }
 0x21e   : > { %v1257_v1 = vadd.f32 %v4569_v15, %v1181_v29  ;;  %v1258_v45 = vadd.f32 %v4572_v16, %v1182_v14  ;;  %v525_v13 = vpop.permute.xlu1 %524  ;;  %v1027_v29 = vpop.permute.xlu0 %1026 }
 0x21f   : > { %v635_v34 = vmul.f32 %v4544_v59, %v525_v13  ;;  %v636_v21 = vmul.f32 %v4547_v60, %v525_v13  ;;  %v1123_v13 = vmul.f32 %v4555_v63, %v1027_v29 }
 0x220   : > { %v1322_v18 = vmax.f32 %v1258_v45, 0.0  ;;  %v1321_v27 = vmax.f32 %v1257_v1, 0.0 }
 0x222   : > { %v1364_v57 = vpack.c.bf16 %v1322_v18, %v1320_v28  ;;  %v1363_v19 = vpack.c.bf16 %v1321_v27, %v1319_v26  ;;  %v1124_v28 = vmul.f32 %v4550_v61, %v1027_v29  ;;  %v641_v26 = vmul.f32 %v4544_v59, %v4835_v5 }
 0x223   : > { %v745_v53 = vpop.permute.xlu1 %744  ;;  %v642_v27 = vmul.f32 %v4547_v60, %v4835_v5 }
 0x224   : > { %v845_v20 = vmul.f32 %v4536_v55, %v745_v53  ;;  %v846_v51 = vmul.f32 %v4540_v58, %v745_v53  ;;  %1913 = vmatprep.mubr.bf16.mxu0 %v1364_v57  ;;  %2106 = vmatprep.mubr.bf16.mxu1 %v1364_v57 }
 0x225   : > { %1914 = vmatmul.mubr.bf16.gmra.mrb[40].mxu0 %v1363_v19  ;;  %2107 = vmatmul.mubr.bf16.gmra.mrb[40].mxu1 %v1363_v19 }
 0x226   : > { %v909_v39 = vadd.f32 %v845_v20, %v635_v34  ;;  %v910_v40 = vadd.f32 %v846_v51, %v636_v21  ;;  %v1455_v34 = vsub.s32 3, %v4507_v35  ;;  %v4885_v35 = vrot.slane %v1439_v22, %v4511_v38 }
 0x227   : > { %v749_v44 = vpop.permute.xlu1 %748 }
 0x228   : > { %v847_v48 = vmul.f32 %v4536_v55, %v749_v44  ;;  %v848_v0 = vmul.f32 %v4540_v58, %v749_v44  ;;  %v1183_v10 = vadd.f32 %v1119_v54, %v909_v39  ;;  %v1184_v36 = vadd.f32 %v1120_v43, %v910_v40 }
 0x22a   : > { %v911_v12 = vadd.f32 %v847_v48, %v637_v33  ;;  %v912_v49 = vadd.f32 %v848_v0, %v638_v46  ;;  %v1259_v17 = vadd.f32 %v4569_v15, %v1183_v10  ;;  %v1260_v56 = vadd.f32 %v4572_v16, %v1184_v36  ;;  %v1035_v0 = vpop.permute.xlu0 %1034 }
 0x22b   : > { %v4879_v46 = vrot.slane %v1439_v22, %v4516_v41  ;;  %v4882_v48 = vrot.slane %v1439_v22, %v4524_v47  ;;  %v4887_v10 = vrot.slane %v1439_v22, %v1455_v34  ;;  %v1127_v41 = vmul.f32 %v4555_v63, %v1035_v0 }
 0x22c   : > { %v1023_v11 = vpop.permute.xlu1 %1022  ;;  %v1324_v2 = vmax.f32 %v1260_v56, 0.0  ;;  %v1323_v3 = vmax.f32 %v1259_v17, 0.0  ;;  %v1128_v17 = vmul.f32 %v4550_v61, %v1035_v0 }
 0x22d   : > { %v1121_v52 = vmul.f32 %v4555_v63, %v1023_v11  ;;  %v1122_v32 = vmul.f32 %v4550_v61, %v1023_v11 }
 0x22f   : > { %v1185_v42 = vadd.f32 %v1121_v52, %v911_v12  ;;  %v1186_v23 = vadd.f32 %v1122_v32, %v912_v49 }
 0x231   : > { %v1261_v50 = vadd.f32 %v4569_v15, %v1185_v42  ;;  %v1262_v62 = vadd.f32 %v4572_v16, %v1186_v23  ;;  %v535_v30 = vpop.permute.xlu1 %534 }
 0x232   : > { %v639_v37 = vmul.f32 %v4544_v59, %v535_v30  ;;  %v640_v14 = vmul.f32 %v4547_v60, %v535_v30 }
 0x233   : > { %v1326_v24 = vmax.f32 %v1262_v62, 0.0  ;;  %v1325_v31 = vmax.f32 %v1261_v50, 0.0 }
 0x235   : > { %v1366_v6 = vpack.c.bf16 %v1326_v24, %v1324_v2  ;;  %v1365_v8 = vpack.c.bf16 %v1325_v31, %v1323_v3 }
 0x236   : > { %v753_v7 = vpop.permute.xlu1 %752 }
 0x237   : > { %v849_v25 = vmul.f32 %v4536_v55, %v753_v7  ;;  %v850_v9 = vmul.f32 %v4540_v58, %v753_v7  ;;  %1923 = vmatprep.mubr.bf16.mxu0 %v1366_v6  ;;  %2116 = vmatprep.mubr.bf16.mxu1 %v1366_v6 }
 0x238   : > { %1924 = vmatmul.mubr.bf16.gmra.mrb[44].mxu0 %v1365_v8  ;;  %2117 = vmatmul.mubr.bf16.gmra.mrb[44].mxu1 %v1365_v8 }
 0x239   : > { %v913_v1 = vadd.f32 %v849_v25, %v639_v37  ;;  %v914_v45 = vadd.f32 %v850_v9, %v640_v14 }
 0x23a   : > { %v757_v18 = vpop.permute.xlu1 %756 }
 0x23b   : > { %v851_v57 = vmul.f32 %v4536_v55, %v757_v18  ;;  %v852_v19 = vmul.f32 %v4540_v58, %v757_v18  ;;  %v1187_v53 = vadd.f32 %v1123_v13, %v913_v1  ;;  %v1188_v20 = vadd.f32 %v1124_v28, %v914_v45 }
 0x23d   : > { %v915_v21 = vadd.f32 %v851_v57, %v641_v26  ;;  %v916_v39 = vadd.f32 %v852_v19, %v642_v27  ;;  %v1263_v43 = vadd.f32 %v4569_v15, %v1187_v53  ;;  %v1264_v5 = vadd.f32 %v4572_v16, %v1188_v20 }
 0x23f   : > { %v1031_v51 = vpop.permute.xlu1 %1030  ;;  %v1328_v32 = vmax.f32 %v1264_v5, 0.0  ;;  %v1327_v47 = vmax.f32 %v1263_v43, 0.0 }
 0x240   : > { %v1125_v40 = vmul.f32 %v4555_v63, %v1031_v51  ;;  %v1126_v54 = vmul.f32 %v4550_v61, %v1031_v51 }
 0x242   : > { %v1189_v44 = vadd.f32 %v1125_v40, %v915_v21  ;;  %v1190_v33 = vadd.f32 %v1126_v54, %v916_v39 }
 0x244   : > { %v1265_v36 = vadd.f32 %v4569_v15, %v1189_v44  ;;  %v1266_v11 = vadd.f32 %v4572_v16, %v1190_v33  ;;  %v545_v12 = vpop.permute.xlu1 %544  ;;  %v1815_v49 = vpop.f32.mrb[0].mxu0 }
 0x245   : > { %v2008_v52 = vpop.f32.mrb[0].mxu1  ;;  %v1816_v56 = vadd.f32 %v1815_v49, %v4879_v46  ;;  %v643_v42 = vmul.f32 %v4544_v59, %v545_v12  ;;  %v644_v23 = vmul.f32 %v4547_v60, %v545_v12  ;;  %v1817_v50 = vpop.f32.mrb[1].mxu0 }
 0x246   : > { %v2009_v38 = vadd.f32 %v2008_v52, %v4882_v48  ;;  %v2010_v62 = vpop.f32.mrb[1].mxu1  ;;  %v1818_v30 = vadd.f32 %v1817_v50, %v4885_v35  ;;  %v1819_v24 = vpop.f32.mrb[2].mxu0  ;;  %v1330_v31 = vmax.f32 %v1266_v11, 0.0  ;;  %v1329_v6 = vmax.f32 %v1265_v36, 0.0 }
 0x247   : > { %v2011_v2 = vadd.f32 %v2010_v62, %v4887_v10  ;;  %v2012_v3 = vpop.f32.mrb[2].mxu1  ;;  %v2167_v8 = vmax.f32 %v1816_v56, 0.0  ;;  %v1820_v7 = vadd.f32 %v1819_v24, %v4879_v46  ;;  %v1821_v14 = vpop.f32.mrb[3].mxu0  ;;  %v645_v56 = vmul.f32 %v4544_v59, %v4843_v4 }
 0x248   : > { %v2169_v37 = vmax.f32 %v2009_v38, 0.0  ;;  %v2013_v29 = vadd.f32 %v2012_v3, %v4882_v48  ;;  %v2014_v25 = vpop.f32.mrb[3].mxu1  ;;  %v2168_v9 = vmax.f32 %v1818_v30, 0.0  ;;  %v1822_v45 = vadd.f32 %v1821_v14, %v4885_v35 }
 0x249   : > { %v2170_v1 = vmax.f32 %v2011_v2, 0.0  ;;  %v2015_v13 = vadd.f32 %v2014_v25, %v4887_v10  ;;  %v761_v28 = vpop.permute.xlu1 %760  ;;  %v2171_v18 = vmax.f32 %v1820_v7, 0.0  ;;  %v1368_v20 = vpack.c.bf16 %v1330_v31, %v1328_v32 }
 0x24a   : > { %v2173_v26 = vmax.f32 %v2013_v29, 0.0  ;;  %v853_v27 = vmul.f32 %v4536_v55, %v761_v28  ;;  %v854_v57 = vmul.f32 %v4540_v58, %v761_v28  ;;  %v2172_v19 = vmax.f32 %v1822_v45, 0.0 }
 0x24b   : > { %v2174_v53 = vmax.f32 %v2015_v13, 0.0  ;;  %v1367_v51 = vpack.c.bf16 %v1329_v6, %v1327_v47  ;;  %v4905_v22 = vpack.c.bf16 %v2171_v18, %v2167_v8  ;;  %1933 = vmatprep.mubr.bf16.mxu0 %v1368_v20  ;;  %2126 = vmatprep.mubr.bf16.mxu1 %v1368_v20 }
 0x24c   : > { %v4907_v34 = vpack.c.bf16 %v2173_v26, %v2169_v37  ;;  %v917_v21 = vadd.f32 %v853_v27, %v643_v42  ;;  %v918_v39 = vadd.f32 %v854_v57, %v644_v23  ;;  %v4909_v40 = vpack.c.bf16 %v2172_v19, %v2168_v9 }
 0x24d   : > { %v4911_v54 = vpack.c.bf16 %v2174_v53, %v2170_v1  ;;  %v1825_v43 = vpop.f32.mrb[4].mxu0  ;;  %v765_v5 = vpop.permute.xlu1 %764  ;;  %1934 = vmatmul.mubr.bf16.gmra.mrb[48].mxu0 %v1367_v51  ;;  %2127 = vmatmul.mubr.bf16.gmra.mrb[48].mxu1 %v1367_v51 }
 0x24e   : > { %v1191_v44 = vadd.f32 %v1127_v41, %v917_v21  ;;  %v1192_v33 = vadd.f32 %v1128_v17, %v918_v39  ;;  %v1826_v0 = vadd.f32 %v1825_v43, %v4879_v46  ;;  %v2018_v36 = vpop.f32.mrb[4].mxu1  ;;  %v1827_v11 = vpop.f32.mrb[5].mxu0  ;;  %v855_v49 = vmul.f32 %v4536_v55, %v765_v5 }
 0x24f   : > { %v2019_v12 = vadd.f32 %v2018_v36, %v4882_v48  ;;  %v856_v52 = vmul.f32 %v4540_v58, %v765_v5  ;;  %v2020_v32 = vpop.f32.mrb[5].mxu1  ;;  %v1829_v47 = vpop.f32.mrb[6].mxu0  ;;  %v646_v41 = vmul.f32 %v4547_v60, %v4843_v4  ;;  %v1828_v38 = vadd.f32 %v1827_v11, %v4885_v35 }
 0x250   : > { %v1267_v17 = vadd.f32 %v4569_v15, %v1191_v44  ;;  %v2022_v42 = vpop.f32.mrb[6].mxu1  ;;  %v1831_v23 = vpop.f32.mrb[7].mxu0  ;;  %v1268_v50 = vadd.f32 %v4572_v16, %v1192_v33  ;;  %v2175_v62 = vmax.f32 %v1826_v0, 0.0  ;;  %v2021_v2 = vadd.f32 %v2020_v32, %v4887_v10 }
 0x251   : > { %v2177_v30 = vmax.f32 %v2019_v12, 0.0  ;;  %v2024_v24 = vpop.f32.mrb[7].mxu1  ;;  %v919_v3 = vadd.f32 %v855_v49, %v645_v56  ;;  %v1830_v31 = vadd.f32 %v1829_v47, %v4879_v46  ;;  %v2023_v6 = vadd.f32 %v2022_v42, %v4882_v48  ;;  %v1043_v39 = vpop.permute.xlu0 %1042 }
 0x252   : > { %v1832_v4 = vadd.f32 %v1831_v23, %v4885_v35  ;;  %v1039_v8 = vpop.permute.xlu1 %1038  ;;  %v920_v37 = vadd.f32 %v856_v52, %v646_v41  ;;  %v2025_v7 = vadd.f32 %v2024_v24, %v4887_v10  ;;  %v2176_v25 = vmax.f32 %v1828_v38, 0.0 }
 0x253   : > { %v1129_v29 = vmul.f32 %v4555_v63, %v1039_v8  ;;  %v1130_v14 = vmul.f32 %v4550_v61, %v1039_v8  ;;  %v2179_v9 = vmax.f32 %v1830_v31, 0.0  ;;  %v2181_v1 = vmax.f32 %v2023_v6, 0.0 }
 0x254   : > { %v2180_v45 = vmax.f32 %v1832_v4, 0.0  ;;  %v2178_v13 = vmax.f32 %v2021_v2, 0.0  ;;  %v2182_v28 = vmax.f32 %v2025_v7, 0.0  ;;  %v1332_v43 = vmax.f32 %v1268_v50, 0.0 }
 0x255   : > { %v1193_v18 = vadd.f32 %v1129_v29, %v919_v3  ;;  %v1194_v26 = vadd.f32 %v1130_v14, %v920_v37  ;;  %v4931_v27 = vpack.c.bf16 %v2179_v9, %v2175_v62  ;;  %v4933_v57 = vpack.c.bf16 %v2181_v1, %v2177_v30  ;;  %v560_v47 = vpop.permute.xlu0 %559 }
 0x256   : > { %v4935_v19 = vpack.c.bf16 %v2180_v45, %v2176_v25  ;;  %v4937_v53 = vpack.c.bf16 %v2182_v28, %v2178_v13  ;;  %v1331_v44 = vmax.f32 %v1267_v17, 0.0  ;;  %v1131_v17 = vmul.f32 %v4555_v63, %v1043_v39 }
 0x257   : > { %v1269_v20 = vadd.f32 %v4569_v15, %v1193_v18  ;;  %v1270_v51 = vadd.f32 %v4572_v16, %v1194_v26  ;;  %v555_v21 = vpop.permute.xlu1 %554  ;;  %v649_v38 = vmul.f32 %v4544_v59, %v560_v47  ;;  %v650_v42 = vmul.f32 %v4547_v60, %v560_v47 }
 0x258   : > { %v647_v11 = vmul.f32 %v4544_v59, %v555_v21  ;;  %v648_v49 = vmul.f32 %v4547_v60, %v555_v21  ;;  %v1132_v62 = vmul.f32 %v4550_v61, %v1043_v39 }
 0x259   : > { %v1334_v5 = vmax.f32 %v1270_v51, 0.0  ;;  %v1333_v33 = vmax.f32 %v1269_v20, 0.0 }
 0x25b   : > { %v1370_v0 = vpack.c.bf16 %v1334_v5, %v1332_v43  ;;  %v1369_v36 = vpack.c.bf16 %v1333_v33, %v1331_v44 }
 0x25c   : > { %v769_v12 = vpop.permute.xlu1 %768 }
 0x25d   : > { %v857_v52 = vmul.f32 %v4536_v55, %v769_v12  ;;  %v858_v32 = vmul.f32 %v4540_v58, %v769_v12  ;;  %1943 = vmatprep.mubr.bf16.mxu0 %v1370_v0  ;;  %2136 = vmatprep.mubr.bf16.mxu1 %v1370_v0 }
 0x25e   : > { %1944 = vmatmul.mubr.bf16.gmra.mrb[52].mxu0 %v1369_v36  ;;  %2137 = vmatmul.mubr.bf16.gmra.mrb[52].mxu1 %v1369_v36 }
 0x25f   : > { %v921_v56 = vadd.f32 %v857_v52, %v647_v11  ;;  %v922_v41 = vadd.f32 %v858_v32, %v648_v49  ;;  %v570_v11 = vpop.permute.xlu0 %569 }
 0x260   : > { %v1835_v23 = vpop.f32.mrb[8].mxu0  ;;  %v773_v50 = vpop.permute.xlu1 %772 }
 0x261   : > { %v1836_v30 = vadd.f32 %v1835_v23, %v4879_v46  ;;  %v2028_v2 = vpop.f32.mrb[8].mxu1  ;;  %v859_v24 = vmul.f32 %v4536_v55, %v773_v50  ;;  %v1837_v3 = vpop.f32.mrb[9].mxu0  ;;  %v1195_v31 = vadd.f32 %v1131_v17, %v921_v56  ;;  %v860_v4 = vmul.f32 %v4540_v58, %v773_v50 }
 0x262   : > { %v2029_v6 = vadd.f32 %v2028_v2, %v4882_v48  ;;  %v1838_v8 = vadd.f32 %v1837_v3, %v4885_v35  ;;  %v2030_v37 = vpop.f32.mrb[9].mxu1  ;;  %v1839_v7 = vpop.f32.mrb[10].mxu0  ;;  %v1196_v29 = vadd.f32 %v1132_v62, %v922_v41 }
 0x263   : > { %v2183_v14 = vmax.f32 %v1836_v30, 0.0  ;;  %v2031_v25 = vadd.f32 %v2030_v37, %v4887_v10  ;;  %v1840_v9 = vadd.f32 %v1839_v7, %v4879_v46  ;;  %v2032_v1 = vpop.f32.mrb[10].mxu1  ;;  %v1841_v45 = vpop.f32.mrb[11].mxu0  ;;  %v923_v28 = vadd.f32 %v859_v24, %v649_v38 }
 0x264   : > { %v2185_v13 = vmax.f32 %v2029_v6, 0.0  ;;  %v924_v18 = vadd.f32 %v860_v4, %v650_v42  ;;  %v2033_v26 = vadd.f32 %v2032_v1, %v4882_v48  ;;  %v2034_v20 = vpop.f32.mrb[11].mxu1  ;;  %v2184_v51 = vmax.f32 %v1838_v8, 0.0  ;;  %v1051_v24 = vpop.permute.xlu0 %1050 }
 0x265   : > { %v2187_v21 = vmax.f32 %v1840_v9, 0.0  ;;  %v1842_v39 = vadd.f32 %v1841_v45, %v4885_v35  ;;  %v2035_v43 = vadd.f32 %v2034_v20, %v4887_v10  ;;  %v1047_v5 = vpop.permute.xlu1 %1046  ;;  %v2186_v44 = vmax.f32 %v2031_v25, 0.0 }
 0x266   : > { %v2189_v33 = vmax.f32 %v2033_v26, 0.0  ;;  %v1133_v0 = vmul.f32 %v4555_v63, %v1047_v5  ;;  %v1134_v36 = vmul.f32 %v4550_v61, %v1047_v5  ;;  %v1272_v32 = vadd.f32 %v4572_v16, %v1196_v29 }
 0x267   : > { %v4961_v12 = vpack.c.bf16 %v2187_v21, %v2183_v14  ;;  %v2188_v49 = vmax.f32 %v1842_v39, 0.0  ;;  %v2190_v52 = vmax.f32 %v2035_v43, 0.0  ;;  %v1271_v17 = vadd.f32 %v4569_v15, %v1195_v31 }
 0x268   : > { %v4964_v47 = vpack.c.bf16 %v2189_v33, %v2185_v13  ;;  %v1197_v56 = vadd.f32 %v1133_v0, %v923_v28  ;;  %v1198_v41 = vadd.f32 %v1134_v36, %v924_v18  ;;  %v1336_v30 = vmax.f32 %v1272_v32, 0.0 }
 0x269   : > { %v4967_v38 = vpack.c.bf16 %v2188_v49, %v2184_v51  ;;  %v4969_v42 = vpack.c.bf16 %v2190_v52, %v2186_v44  ;;  %v1335_v3 = vmax.f32 %v1271_v17, 0.0  ;;  %v1135_v7 = vmul.f32 %v4555_v63, %v1051_v24 }
 0x26a   : > { %v1273_v23 = vadd.f32 %v4569_v15, %v1197_v56  ;;  %v1274_v50 = vadd.f32 %v4572_v16, %v1198_v41  ;;  %v565_v62 = vpop.permute.xlu1 %564  ;;  %v1136_v45 = vmul.f32 %v4550_v61, %v1051_v24  ;;  %v653_v33 = vmul.f32 %v4544_v59, %v570_v11 }
 0x26b   : > { %v651_v31 = vmul.f32 %v4544_v59, %v565_v62  ;;  %v652_v25 = vmul.f32 %v4547_v60, %v565_v62  ;;  %v654_v0 = vmul.f32 %v4547_v60, %v570_v11 }
 0x26c   : > { %v1338_v2 = vmax.f32 %v1274_v50, 0.0  ;;  %v1337_v6 = vmax.f32 %v1273_v23, 0.0 }
 0x26e   : > { %v1372_v4 = vpack.c.bf16 %v1338_v2, %v1336_v30  ;;  %v1371_v8 = vpack.c.bf16 %v1337_v6, %v1335_v3 }
 0x26f   : > { %v777_v37 = vpop.permute.xlu1 %776 }
 0x270   : > { %v861_v29 = vmul.f32 %v4536_v55, %v777_v37  ;;  %v862_v14 = vmul.f32 %v4540_v58, %v777_v37  ;;  %1953 = vmatprep.mubr.bf16.mxu0 %v1372_v4  ;;  %2146 = vmatprep.mubr.bf16.mxu1 %v1372_v4 }
 0x271   : > { %1954 = vmatmul.mubr.bf16.gmra.mrb[56].mxu0 %v1371_v8  ;;  %2147 = vmatmul.mubr.bf16.gmra.mrb[56].mxu1 %v1371_v8 }
 0x272   : > { %v925_v9 = vadd.f32 %v861_v29, %v651_v31  ;;  %v926_v1 = vadd.f32 %v862_v14, %v652_v25 }
 0x273   : > { %v1845_v13 = vpop.f32.mrb[12].mxu0  ;;  %v781_v28 = vpop.permute.xlu1 %780 }
 0x274   : > { %v1199_v18 = vadd.f32 %v1135_v7, %v925_v9  ;;  %v1846_v26 = vadd.f32 %v1845_v13, %v4879_v46  ;;  %v2038_v20 = vpop.f32.mrb[12].mxu1  ;;  %v863_v51 = vmul.f32 %v4536_v55, %v781_v28  ;;  %v1847_v21 = vpop.f32.mrb[13].mxu0  ;;  %v864_v43 = vmul.f32 %v4540_v58, %v781_v28 }
 0x275   : > { %v2039_v39 = vadd.f32 %v2038_v20, %v4882_v48  ;;  %v2040_v5 = vpop.f32.mrb[13].mxu1  ;;  %v1849_v44 = vpop.f32.mrb[14].mxu0  ;;  %v1848_v36 = vadd.f32 %v1847_v21, %v4885_v35  ;;  %v1200_v32 = vadd.f32 %v1136_v45, %v926_v1 }
 0x276   : > { %v2042_v49 = vpop.f32.mrb[14].mxu1  ;;  %v1851_v52 = vpop.f32.mrb[15].mxu0  ;;  %v1275_v56 = vadd.f32 %v4569_v15, %v1199_v18  ;;  %v2191_v41 = vmax.f32 %v1846_v26, 0.0  ;;  %v2041_v55 = vadd.f32 %v2040_v5, %v4887_v10  ;;  %v927_v50 = vadd.f32 %v863_v51, %v653_v33 }
 0x277   : > { %v2044_v17 = vpop.f32.mrb[15].mxu1  ;;  %v2193_v23 = vmax.f32 %v2039_v39, 0.0  ;;  %v1850_v58 = vadd.f32 %v1849_v44, %v4879_v46  ;;  %v2043_v62 = vadd.f32 %v2042_v49, %v4882_v48  ;;  %v928_v30 = vadd.f32 %v864_v43, %v654_v0 }
 0x278   : > { %v1055_v59 = vpop.permute.xlu1 %1054  ;;  %v1852_v60 = vadd.f32 %v1851_v52, %v4885_v35  ;;  %v2045_v11 = vadd.f32 %v2044_v17, %v4887_v10  ;;  %v2192_v24 = vmax.f32 %v1848_v36, 0.0  ;;  %v2194_v8 = vmax.f32 %v2041_v55, 0.0 }
 0x279   : > { %v1137_v2 = vmul.f32 %v4555_v63, %v1055_v59  ;;  %v2195_v3 = vmax.f32 %v1850_v58, 0.0  ;;  %v2197_v6 = vmax.f32 %v2043_v62, 0.0  ;;  %v1138_v4 = vmul.f32 %v4550_v61, %v1055_v59 }
 0x27a   : > { %v2196_v37 = vmax.f32 %v1852_v60, 0.0  ;;  %v2198_v7 = vmax.f32 %v2045_v11, 0.0  ;;  %v1276_v29 = vadd.f32 %v4572_v16, %v1200_v32  ;;  %v1339_v61 = vmax.f32 %v1275_v56, 0.0 }
 0x27b   : > { %v1201_v31 = vadd.f32 %v1137_v2, %v927_v50  ;;  %v4995_v14 = vpack.c.bf16 %v2195_v3, %v2191_v41  ;;  %v4997_v25 = vpack.c.bf16 %v2197_v6, %v2193_v23  ;;  %v1202_v9 = vadd.f32 %v1138_v4, %v928_v30 }
 0x27c   : > { %v4999_v1 = vpack.c.bf16 %v2196_v37, %v2192_v24  ;;  %v5001_v45 = vpack.c.bf16 %v2198_v7, %v2194_v8  ;;  %v1340_v18 = vmax.f32 %v1276_v29, 0.0 }
 0x27d   : > { %v1277_v63 = vadd.f32 %v4569_v15, %v1201_v31  ;;  %v1278_v13 = vadd.f32 %v4572_v16, %v1202_v9 }
 0x27f   : > { %v1341_v28 = vmax.f32 %v1277_v63, 0.0  ;;  %v1342_v26 = vmax.f32 %v1278_v13, 0.0 }
 0x281   : > { %v1373_v20 = vpack.c.bf16 %v1341_v28, %v1339_v61  ;;  %v1374_v51 = vpack.c.bf16 %v1342_v26, %v1340_v18 }
 0x283   : > { %1963 = vmatprep.mubr.bf16.mxu0 %v1374_v51  ;;  %2156 = vmatprep.mubr.bf16.mxu1 %v1374_v51 }
 0x284   : > { %1964 = vmatmul.mubr.bf16.gmra.mrb[60].mxu0 %v1373_v20  ;;  %2157 = vmatmul.mubr.bf16.gmra.mrb[60].mxu1 %v1373_v20 }
 0x285   : > { %2654 = vmatprep.mubr.bf16.mxu0 %v4909_v40  ;;  %2815 = vmatprep.mubr.bf16.mxu1 %v4911_v54 }
 0x286   : > { %v1855_v21 = vpop.f32.mrb[16].mxu0 }
 0x287   : > { %v1856_v39 = vadd.f32 %v1855_v21, %v4879_v46  ;;  %v2048_v15 = vpop.f32.mrb[16].mxu1  ;;  %v1857_v43 = vpop.f32.mrb[17].mxu0 }
 0x288   : > { %v2049_v16 = vadd.f32 %v2048_v15, %v4882_v48  ;;  %v1858_v5 = vadd.f32 %v1857_v43, %v4885_v35  ;;  %v2050_v44 = vpop.f32.mrb[17].mxu1  ;;  %v1859_v33 = vpop.f32.mrb[18].mxu0 }
 0x289   : > { %v2051_v0 = vadd.f32 %v2050_v44, %v4887_v10  ;;  %v1860_v36 = vadd.f32 %v1859_v33, %v4879_v46  ;;  %v2052_v49 = vpop.f32.mrb[18].mxu1  ;;  %v1861_v52 = vpop.f32.mrb[19].mxu0  ;;  %v2199_v56 = vmax.f32 %v1856_v39, 0.0 }
 0x28a   : > { %v2053_v40 = vadd.f32 %v2052_v49, %v4882_v48  ;;  %v1862_v54 = vadd.f32 %v1861_v52, %v4885_v35  ;;  %v2054_v32 = vpop.f32.mrb[19].mxu1  ;;  %v2201_v17 = vmax.f32 %v2049_v16, 0.0  ;;  %v2200_v23 = vmax.f32 %v1858_v5, 0.0 }
 0x28b   : > { %v2203_v41 = vmax.f32 %v1860_v36, 0.0  ;;  %v2055_v55 = vadd.f32 %v2054_v32, %v4887_v10  ;;  %v2202_v62 = vmax.f32 %v2051_v0, 0.0 }
 0x28c   : > { %v2205_v50 = vmax.f32 %v2053_v40, 0.0  ;;  %v2204_v58 = vmax.f32 %v1862_v54, 0.0  ;;  %2655 = vmatmul.mubr.bf16.vlgmr.msra.gmra.mrb[64].mxu0 %v4905_v22  ;;  %2816 = vmatmul.mubr.bf16.vlgmr.msra.gmra.mrb[64].mxu1 %v4907_v34 }
 0x28d   : > { %v2311_v59 = vpack.c.bf16 %v2203_v41, %v2199_v56  ;;  %v2206_v30 = vmax.f32 %v2055_v55, 0.0  ;;  %2662 = vmatprep.mubr.bf16.mxu0 %v4935_v19  ;;  %2823 = vmatprep.mubr.bf16.mxu1 %v4937_v53 }
 0x28e   : > { %v2313_v60 = vpack.c.bf16 %v2205_v50, %v2201_v17  ;;  %v2312_v11 = vpack.c.bf16 %v2204_v58, %v2200_v23 }
 0x28f   : > { %v2314_v2 = vpack.c.bf16 %v2206_v30, %v2202_v62 }
 0x294   : > { %2663 = vmatmul.mubr.bf16.gmra.mrb[68].mxu0 %v4931_v27  ;;  %2824 = vmatmul.mubr.bf16.gmra.mrb[68].mxu1 %v4933_v57 }
 0x295   : > { %2670 = vmatprep.mubr.bf16.mxu0 %v4967_v38  ;;  %2831 = vmatprep.mubr.bf16.mxu1 %v4969_v42 }
 0x299   : > { %v1865_v24 = vpop.f32.mrb[20].mxu0 }
 0x29a   : > { %v1866_v22 = vadd.f32 %v1865_v24, %v4879_v46  ;;  %v2058_v3 = vpop.f32.mrb[20].mxu1  ;;  %v1867_v34 = vpop.f32.mrb[21].mxu0 }
 0x29b   : > { %v2059_v6 = vadd.f32 %v2058_v3, %v4882_v48  ;;  %v1868_v19 = vadd.f32 %v1867_v34, %v4885_v35  ;;  %v2060_v4 = vpop.f32.mrb[21].mxu1  ;;  %v1869_v53 = vpop.f32.mrb[22].mxu0 }
 0x29c   : > { %v2061_v8 = vadd.f32 %v2060_v4, %v4887_v10  ;;  %v1870_v27 = vadd.f32 %v1869_v53, %v4879_v46  ;;  %v2062_v57 = vpop.f32.mrb[22].mxu1  ;;  %v1871_v37 = vpop.f32.mrb[23].mxu0  ;;  %2671 = vmatmul.mubr.bf16.gmra.mrb[72].mxu0 %v4961_v12  ;;  %2832 = vmatmul.mubr.bf16.gmra.mrb[72].mxu1 %v4964_v47  ;;  %v2207_v31 = vmax.f32 %v1866_v22, 0.0 }
 0x29d   : > { %v2063_v38 = vadd.f32 %v2062_v57, %v4882_v48  ;;  %v1872_v42 = vadd.f32 %v1871_v37, %v4885_v35  ;;  %v2064_v7 = vpop.f32.mrb[23].mxu1  ;;  %2678 = vmatprep.mubr.bf16.mxu0 %v4999_v1  ;;  %2839 = vmatprep.mubr.bf16.mxu1 %v5001_v45  ;;  %v2209_v63 = vmax.f32 %v2059_v6, 0.0  ;;  %v2208_v13 = vmax.f32 %v1868_v19, 0.0 }
 0x29e   : > { %v2211_v29 = vmax.f32 %v1870_v27, 0.0  ;;  %v2065_v9 = vadd.f32 %v2064_v7, %v4887_v10  ;;  %v2210_v18 = vmax.f32 %v2061_v8, 0.0 }
 0x29f   : > { %v2213_v61 = vmax.f32 %v2063_v38, 0.0  ;;  %v2212_v28 = vmax.f32 %v1872_v42, 0.0 }
 0x2a0   : > { %v2315_v26 = vpack.c.bf16 %v2211_v29, %v2207_v31  ;;  %v2214_v20 = vmax.f32 %v2065_v9, 0.0 }
 0x2a1   : > { %v2317_v51 = vpack.c.bf16 %v2213_v61, %v2209_v63  ;;  %v2316_v21 = vpack.c.bf16 %v2212_v28, %v2208_v13 }
 0x2a2   : > { %v2318_v12 = vpack.c.bf16 %v2214_v20, %v2210_v18 }
 0x2a4   : > { %2679 = vmatmul.mubr.bf16.gmra.mrb[76].mxu0 %v4995_v14  ;;  %2840 = vmatmul.mubr.bf16.gmra.mrb[76].mxu1 %v4997_v25 }
 0x2a5   : > { %2686 = vmatprep.mubr.bf16.mxu0 %v2312_v11  ;;  %2847 = vmatprep.mubr.bf16.mxu1 %v2314_v2 }
 0x2ac   : > { %v1875_v47 = vpop.f32.mrb[24].mxu0  ;;  %2687 = vmatmul.mubr.bf16.gmra.mrb[80].mxu0 %v2311_v59  ;;  %2848 = vmatmul.mubr.bf16.gmra.mrb[80].mxu1 %v2313_v60 }
 0x2ad   : > { %v1876_v1 = vadd.f32 %v1875_v47, %v4879_v46  ;;  %v2068_v45 = vpop.f32.mrb[24].mxu1  ;;  %v1877_v39 = vpop.f32.mrb[25].mxu0  ;;  %2694 = vmatprep.mubr.bf16.mxu0 %v2316_v21  ;;  %2855 = vmatprep.mubr.bf16.mxu1 %v2318_v12 }
 0x2ae   : > { %v2069_v15 = vadd.f32 %v2068_v45, %v4882_v48  ;;  %v1878_v43 = vadd.f32 %v1877_v39, %v4885_v35  ;;  %v2070_v16 = vpop.f32.mrb[25].mxu1  ;;  %v1879_v5 = vpop.f32.mrb[26].mxu0 }
 0x2af   : > { %v2071_v14 = vadd.f32 %v2070_v16, %v4887_v10  ;;  %v1880_v25 = vadd.f32 %v1879_v5, %v4879_v46  ;;  %v2072_v44 = vpop.f32.mrb[26].mxu1  ;;  %v1881_v33 = vpop.f32.mrb[27].mxu0  ;;  %v2215_v52 = vmax.f32 %v1876_v1, 0.0 }
 0x2b0   : > { %v2073_v0 = vadd.f32 %v2072_v44, %v4882_v48  ;;  %v1882_v36 = vadd.f32 %v1881_v33, %v4885_v35  ;;  %v2074_v49 = vpop.f32.mrb[27].mxu1  ;;  %v2217_v32 = vmax.f32 %v2069_v15, 0.0  ;;  %v2216_v56 = vmax.f32 %v1878_v43, 0.0 }
 0x2b1   : > { %v2219_v40 = vmax.f32 %v1880_v25, 0.0  ;;  %v2075_v54 = vadd.f32 %v2074_v49, %v4887_v10  ;;  %v2218_v17 = vmax.f32 %v2071_v14, 0.0 }
 0x2b2   : > { %v2221_v41 = vmax.f32 %v2073_v0, 0.0  ;;  %v2220_v55 = vmax.f32 %v1882_v36, 0.0 }
 0x2b3   : > { %v2319_v23 = vpack.c.bf16 %v2219_v40, %v2215_v52  ;;  %v2222_v50 = vmax.f32 %v2075_v54, 0.0 }
 0x2b4   : > { %v2321_v58 = vpack.c.bf16 %v2221_v41, %v2217_v32  ;;  %v2320_v62 = vpack.c.bf16 %v2220_v55, %v2216_v56  ;;  %2695 = vmatmul.mubr.bf16.gmra.mrb[84].mxu0 %v2315_v26  ;;  %2856 = vmatmul.mubr.bf16.gmra.mrb[84].mxu1 %v2317_v51 }
 0x2b5   : > { %v2322_v59 = vpack.c.bf16 %v2222_v50, %v2218_v17 }
 0x2b6   : > { %2702 = vmatprep.mubr.bf16.mxu0 %v2320_v62 }
 0x2b7   : > { %2863 = vmatprep.mubr.bf16.mxu1 %v2322_v59 }
 0x2bc   : > { %2703 = vmatmul.mubr.bf16.gmra.mrb[88].mxu0 %v2319_v23  ;;  %2864 = vmatmul.mubr.bf16.gmra.mrb[88].mxu1 %v2321_v58 }
 0x2bf   : > { %v1885_v30 = vpop.f32.mrb[28].mxu0 }
 0x2c0   : > { %v1886_v60 = vadd.f32 %v1885_v30, %v4879_v46  ;;  %v2078_v11 = vpop.f32.mrb[28].mxu1  ;;  %v1887_v2 = vpop.f32.mrb[29].mxu0 }
 0x2c1   : > { %v2079_v24 = vadd.f32 %v2078_v11, %v4882_v48  ;;  %v1888_v22 = vadd.f32 %v1887_v2, %v4885_v35  ;;  %v2080_v3 = vpop.f32.mrb[29].mxu1  ;;  %v1889_v34 = vpop.f32.mrb[30].mxu0 }
 0x2c2   : > { %v2081_v6 = vadd.f32 %v2080_v3, %v4887_v10  ;;  %v1890_v19 = vadd.f32 %v1889_v34, %v4879_v46  ;;  %v2082_v4 = vpop.f32.mrb[30].mxu1  ;;  %v1891_v53 = vpop.f32.mrb[31].mxu0  ;;  %v2223_v37 = vmax.f32 %v1886_v60, 0.0 }
 0x2c3   : > { %v2083_v8 = vadd.f32 %v2082_v4, %v4882_v48  ;;  %v1892_v27 = vadd.f32 %v1891_v53, %v4885_v35  ;;  %v2084_v57 = vpop.f32.mrb[31].mxu1  ;;  %v2225_v7 = vmax.f32 %v2079_v24, 0.0  ;;  %v2224_v31 = vmax.f32 %v1888_v22, 0.0 }
 0x2c4   : > { %v2227_v38 = vmax.f32 %v1890_v19, 0.0  ;;  %v2085_v42 = vadd.f32 %v2084_v57, %v4887_v10  ;;  %v2226_v63 = vmax.f32 %v2081_v6, 0.0 }
 0x2c5   : > { %v2229_v29 = vmax.f32 %v2083_v8, 0.0  ;;  %v2228_v9 = vmax.f32 %v1892_v27, 0.0 }
 0x2c6   : > { %v2323_v13 = vpack.c.bf16 %v2227_v38, %v2223_v37  ;;  %v2230_v61 = vmax.f32 %v2085_v42, 0.0 }
 0x2c7   : > { %v2325_v28 = vpack.c.bf16 %v2229_v29, %v2225_v7  ;;  %v2324_v18 = vpack.c.bf16 %v2228_v9, %v2224_v31 }
 0x2c8   : > { %v2326_v26 = vpack.c.bf16 %v2230_v61, %v2226_v63 }
 0x2c9   : > { %2710 = vmatprep.mubr.bf16.mxu0 %v2324_v18 }
 0x2ca   : > { %2871 = vmatprep.mubr.bf16.mxu1 %v2326_v26  ;;  %2711 = vmatmul.mubr.bf16.gmra.mrb[92].mxu0 %v2323_v13 }
 0x2cb   : > { %2872 = vmatmul.mubr.bf16.gmra.mrb[92].mxu1 %v2325_v28 }
 0x2d2   : > { %v1895_v20 = vpop.f32.mrb[32].mxu0  ;;  %v2088_v51 = vpop.f32.mrb[32].mxu1 }
 0x2d3   : > { %v1896_v21 = vadd.f32 %v1895_v20, %v4879_v46  ;;  %v2089_v12 = vadd.f32 %v2088_v51, %v4882_v48  ;;  %v1897_v47 = vpop.f32.mrb[33].mxu0  ;;  %v2090_v1 = vpop.f32.mrb[33].mxu1 }
 0x2d4   : > { %v1898_v45 = vadd.f32 %v1897_v47, %v4885_v35  ;;  %v2091_v39 = vadd.f32 %v2090_v1, %v4887_v10  ;;  %v1899_v15 = vpop.f32.mrb[34].mxu0  ;;  %v2092_v43 = vpop.f32.mrb[34].mxu1 }
 0x2d5   : > { %v1900_v16 = vadd.f32 %v1899_v15, %v4879_v46  ;;  %v2093_v5 = vadd.f32 %v2092_v43, %v4882_v48  ;;  %v1901_v14 = vpop.f32.mrb[35].mxu0  ;;  %v2094_v25 = vpop.f32.mrb[35].mxu1  ;;  %v2231_v0 = vmax.f32 %v1896_v21, 0.0  ;;  %v2233_v36 = vmax.f32 %v2089_v12, 0.0 }
 0x2d6   : > { %v1902_v44 = vadd.f32 %v1901_v14, %v4885_v35  ;;  %v2095_v33 = vadd.f32 %v2094_v25, %v4887_v10  ;;  %v2232_v40 = vmax.f32 %v1898_v45, 0.0  ;;  %v2234_v54 = vmax.f32 %v2091_v39, 0.0 }
 0x2d7   : > { %v2235_v49 = vmax.f32 %v1900_v16, 0.0  ;;  %v2237_v52 = vmax.f32 %v2093_v5, 0.0 }
 0x2d8   : > { %v2236_v32 = vmax.f32 %v1902_v44, 0.0  ;;  %v2238_v56 = vmax.f32 %v2095_v33, 0.0 }
 0x2d9   : > { %v2327_v41 = vpack.c.bf16 %v2235_v49, %v2231_v0  ;;  %v2329_v55 = vpack.c.bf16 %v2237_v52, %v2233_v36 }
 0x2da   : > { %v2328_v17 = vpack.c.bf16 %v2236_v32, %v2232_v40  ;;  %v2330_v23 = vpack.c.bf16 %v2238_v56, %v2234_v54 }
 0x2dc   : > { %2718 = vmatprep.mubr.bf16.mxu0 %v2328_v17  ;;  %2879 = vmatprep.mubr.bf16.mxu1 %v2330_v23 }
 0x2dd   : > { %2719 = vmatmul.mubr.bf16.gmra.mrb[96].mxu0 %v2327_v41  ;;  %2880 = vmatmul.mubr.bf16.gmra.mrb[96].mxu1 %v2329_v55 }
 0x2e5   : > { %v1905_v50 = vpop.f32.mrb[36].mxu0  ;;  %v2098_v58 = vpop.f32.mrb[36].mxu1 }
 0x2e6   : > { %v1906_v62 = vadd.f32 %v1905_v50, %v4879_v46  ;;  %v2099_v59 = vadd.f32 %v2098_v58, %v4882_v48  ;;  %v1907_v30 = vpop.f32.mrb[37].mxu0  ;;  %v2100_v60 = vpop.f32.mrb[37].mxu1 }
 0x2e7   : > { %v1908_v11 = vadd.f32 %v1907_v30, %v4885_v35  ;;  %v2101_v2 = vadd.f32 %v2100_v60, %v4887_v10  ;;  %v1909_v24 = vpop.f32.mrb[38].mxu0  ;;  %v2102_v22 = vpop.f32.mrb[38].mxu1 }
 0x2e8   : > { %v1910_v3 = vadd.f32 %v1909_v24, %v4879_v46  ;;  %v2103_v34 = vadd.f32 %v2102_v22, %v4882_v48  ;;  %v1911_v6 = vpop.f32.mrb[39].mxu0  ;;  %v2104_v19 = vpop.f32.mrb[39].mxu1  ;;  %v2239_v8 = vmax.f32 %v1906_v62, 0.0  ;;  %v2241_v27 = vmax.f32 %v2099_v59, 0.0 }
 0x2e9   : > { %v1912_v4 = vadd.f32 %v1911_v6, %v4885_v35  ;;  %v2105_v53 = vadd.f32 %v2104_v19, %v4887_v10  ;;  %v2240_v38 = vmax.f32 %v1908_v11, 0.0  ;;  %v2242_v42 = vmax.f32 %v2101_v2, 0.0 }
 0x2ea   : > { %v2243_v57 = vmax.f32 %v1910_v3, 0.0  ;;  %v2245_v37 = vmax.f32 %v2103_v34, 0.0 }
 0x2eb   : > { %v2244_v7 = vmax.f32 %v1912_v4, 0.0  ;;  %v2246_v31 = vmax.f32 %v2105_v53, 0.0 }
 0x2ec   : > { %v2331_v29 = vpack.c.bf16 %v2243_v57, %v2239_v8  ;;  %v2333_v9 = vpack.c.bf16 %v2245_v37, %v2241_v27 }
 0x2ed   : > { %v2332_v63 = vpack.c.bf16 %v2244_v7, %v2240_v38  ;;  %v2334_v13 = vpack.c.bf16 %v2246_v31, %v2242_v42 }
 0x2ef   : > { %2726 = vmatprep.mubr.bf16.mxu0 %v2332_v63  ;;  %2887 = vmatprep.mubr.bf16.mxu1 %v2334_v13 }
 0x2f0   : > { %2727 = vmatmul.mubr.bf16.gmra.mrb[100].mxu0 %v2331_v29  ;;  %2888 = vmatmul.mubr.bf16.gmra.mrb[100].mxu1 %v2333_v9 }
 0x2f8   : > { %v1915_v61 = vpop.f32.mrb[40].mxu0  ;;  %v2108_v28 = vpop.f32.mrb[40].mxu1 }
 0x2f9   : > { %v1916_v18 = vadd.f32 %v1915_v61, %v4879_v46  ;;  %v2109_v26 = vadd.f32 %v2108_v28, %v4882_v48  ;;  %v1917_v20 = vpop.f32.mrb[41].mxu0  ;;  %v2110_v51 = vpop.f32.mrb[41].mxu1 }
 0x2fa   : > { %v1918_v21 = vadd.f32 %v1917_v20, %v4885_v35  ;;  %v2111_v12 = vadd.f32 %v2110_v51, %v4887_v10  ;;  %v1919_v47 = vpop.f32.mrb[42].mxu0  ;;  %v2112_v1 = vpop.f32.mrb[42].mxu1 }
 0x2fb   : > { %v1920_v45 = vadd.f32 %v1919_v47, %v4879_v46  ;;  %v2113_v39 = vadd.f32 %v2112_v1, %v4882_v48  ;;  %v1921_v15 = vpop.f32.mrb[43].mxu0  ;;  %v2114_v43 = vpop.f32.mrb[43].mxu1  ;;  %v2247_v14 = vmax.f32 %v1916_v18, 0.0  ;;  %v2249_v25 = vmax.f32 %v2109_v26, 0.0 }
 0x2fc   : > { %v1922_v16 = vadd.f32 %v1921_v15, %v4885_v35  ;;  %v2115_v5 = vadd.f32 %v2114_v43, %v4887_v10  ;;  %v2248_v0 = vmax.f32 %v1918_v21, 0.0  ;;  %v2250_v36 = vmax.f32 %v2111_v12, 0.0 }
 0x2fd   : > { %v2251_v44 = vmax.f32 %v1920_v45, 0.0  ;;  %v2253_v33 = vmax.f32 %v2113_v39, 0.0 }
 0x2fe   : > { %v2252_v49 = vmax.f32 %v1922_v16, 0.0  ;;  %v2254_v52 = vmax.f32 %v2115_v5, 0.0 }
 0x2ff   : > { %v2335_v40 = vpack.c.bf16 %v2251_v44, %v2247_v14  ;;  %v2337_v54 = vpack.c.bf16 %v2253_v33, %v2249_v25 }
 0x300   : > { %v2336_v32 = vpack.c.bf16 %v2252_v49, %v2248_v0  ;;  %v2338_v56 = vpack.c.bf16 %v2254_v52, %v2250_v36 }
 0x302   : > { %2734 = vmatprep.mubr.bf16.mxu0 %v2336_v32  ;;  %2895 = vmatprep.mubr.bf16.mxu1 %v2338_v56 }
 0x303   : > { %2735 = vmatmul.mubr.bf16.gmra.mrb[104].mxu0 %v2335_v40  ;;  %2896 = vmatmul.mubr.bf16.gmra.mrb[104].mxu1 %v2337_v54 }
 0x30b   : > { %v1925_v41 = vpop.f32.mrb[44].mxu0  ;;  %v2118_v55 = vpop.f32.mrb[44].mxu1 }
 0x30c   : > { %v1926_v17 = vadd.f32 %v1925_v41, %v4879_v46  ;;  %v2119_v23 = vadd.f32 %v2118_v55, %v4882_v48  ;;  %v1927_v50 = vpop.f32.mrb[45].mxu0  ;;  %v2120_v58 = vpop.f32.mrb[45].mxu1 }
 0x30d   : > { %v1928_v62 = vadd.f32 %v1927_v50, %v4885_v35  ;;  %v2121_v59 = vadd.f32 %v2120_v58, %v4887_v10  ;;  %v1929_v30 = vpop.f32.mrb[46].mxu0  ;;  %v2122_v60 = vpop.f32.mrb[46].mxu1 }
 0x30e   : > { %v1930_v11 = vadd.f32 %v1929_v30, %v4879_v46  ;;  %v2123_v2 = vadd.f32 %v2122_v60, %v4882_v48  ;;  %v1931_v24 = vpop.f32.mrb[47].mxu0  ;;  %v2124_v22 = vpop.f32.mrb[47].mxu1  ;;  %v2255_v6 = vmax.f32 %v1926_v17, 0.0  ;;  %v2257_v19 = vmax.f32 %v2119_v23, 0.0 }
 0x30f   : > { %v1932_v3 = vadd.f32 %v1931_v24, %v4885_v35  ;;  %v2125_v34 = vadd.f32 %v2124_v22, %v4887_v10  ;;  %v2256_v8 = vmax.f32 %v1928_v62, 0.0  ;;  %v2258_v27 = vmax.f32 %v2121_v59, 0.0 }
 0x310   : > { %v2259_v4 = vmax.f32 %v1930_v11, 0.0  ;;  %v2261_v53 = vmax.f32 %v2123_v2, 0.0 }
 0x311   : > { %v2260_v57 = vmax.f32 %v1932_v3, 0.0  ;;  %v2262_v37 = vmax.f32 %v2125_v34, 0.0 }
 0x312   : > { %v2339_v38 = vpack.c.bf16 %v2259_v4, %v2255_v6  ;;  %v2341_v42 = vpack.c.bf16 %v2261_v53, %v2257_v19 }
 0x313   : > { %v2340_v7 = vpack.c.bf16 %v2260_v57, %v2256_v8  ;;  %v2342_v31 = vpack.c.bf16 %v2262_v37, %v2258_v27 }
 0x315   : > { %2742 = vmatprep.mubr.bf16.mxu0 %v2340_v7  ;;  %2903 = vmatprep.mubr.bf16.mxu1 %v2342_v31 }
 0x316   : > { %2743 = vmatmul.mubr.bf16.gmra.mrb[108].mxu0 %v2339_v38  ;;  %2904 = vmatmul.mubr.bf16.gmra.mrb[108].mxu1 %v2341_v42 }
 0x320   : > { %v1935_v29 = vpop.f32.mrb[48].mxu0  ;;  %v2128_v9 = vpop.f32.mrb[48].mxu1 }
 0x321   : > { %v1936_v63 = vadd.f32 %v1935_v29, %v4879_v46  ;;  %v2129_v13 = vadd.f32 %v2128_v9, %v4882_v48  ;;  %v1937_v61 = vpop.f32.mrb[49].mxu0  ;;  %v2130_v28 = vpop.f32.mrb[49].mxu1 }
 0x322   : > { %v1938_v18 = vadd.f32 %v1937_v61, %v4885_v35  ;;  %v2131_v26 = vadd.f32 %v2130_v28, %v4887_v10  ;;  %v1939_v20 = vpop.f32.mrb[50].mxu0  ;;  %v2132_v51 = vpop.f32.mrb[50].mxu1 }
 0x323   : > { %v1940_v21 = vadd.f32 %v1939_v20, %v4879_v46  ;;  %v2133_v12 = vadd.f32 %v2132_v51, %v4882_v48  ;;  %v1941_v47 = vpop.f32.mrb[51].mxu0  ;;  %v2134_v1 = vpop.f32.mrb[51].mxu1  ;;  %v2263_v15 = vmax.f32 %v1936_v63, 0.0  ;;  %v2265_v43 = vmax.f32 %v2129_v13, 0.0 }
 0x324   : > { %v1942_v45 = vadd.f32 %v1941_v47, %v4885_v35  ;;  %v2135_v39 = vadd.f32 %v2134_v1, %v4887_v10  ;;  %v2264_v14 = vmax.f32 %v1938_v18, 0.0  ;;  %v2266_v25 = vmax.f32 %v2131_v26, 0.0 }
 0x325   : > { %v2267_v16 = vmax.f32 %v1940_v21, 0.0  ;;  %v2269_v5 = vmax.f32 %v2133_v12, 0.0 }
 0x326   : > { %v2268_v44 = vmax.f32 %v1942_v45, 0.0  ;;  %v2270_v33 = vmax.f32 %v2135_v39, 0.0 }
 0x327   : > { %v2343_v0 = vpack.c.bf16 %v2267_v16, %v2263_v15  ;;  %v2345_v36 = vpack.c.bf16 %v2269_v5, %v2265_v43 }
 0x328   : > { %v2344_v49 = vpack.c.bf16 %v2268_v44, %v2264_v14  ;;  %v2346_v52 = vpack.c.bf16 %v2270_v33, %v2266_v25 }
 0x32a   : > { %2750 = vmatprep.mubr.bf16.mxu0 %v2344_v49  ;;  %2911 = vmatprep.mubr.bf16.mxu1 %v2346_v52 }
 0x32b   : > { %2751 = vmatmul.mubr.bf16.gmra.mrb[112].mxu0 %v2343_v0  ;;  %2912 = vmatmul.mubr.bf16.gmra.mrb[112].mxu1 %v2345_v36 }
 0x331   : > { %v1945_v40 = vpop.f32.mrb[52].mxu0  ;;  %v2138_v54 = vpop.f32.mrb[52].mxu1 }
 0x332   : > { %v1946_v32 = vadd.f32 %v1945_v40, %v4879_v46  ;;  %v2139_v56 = vadd.f32 %v2138_v54, %v4882_v48  ;;  %v1947_v41 = vpop.f32.mrb[53].mxu0  ;;  %v2140_v55 = vpop.f32.mrb[53].mxu1 }
 0x333   : > { %v1948_v17 = vadd.f32 %v1947_v41, %v4885_v35  ;;  %v2141_v23 = vadd.f32 %v2140_v55, %v4887_v10  ;;  %v1949_v50 = vpop.f32.mrb[54].mxu0  ;;  %v2142_v58 = vpop.f32.mrb[54].mxu1 }
 0x334   : > { %v1950_v62 = vadd.f32 %v1949_v50, %v4879_v46  ;;  %v2143_v59 = vadd.f32 %v2142_v58, %v4882_v48  ;;  %v1951_v30 = vpop.f32.mrb[55].mxu0  ;;  %v2144_v60 = vpop.f32.mrb[55].mxu1  ;;  %v2271_v24 = vmax.f32 %v1946_v32, 0.0  ;;  %v2273_v22 = vmax.f32 %v2139_v56, 0.0 }
 0x335   : > { %v1952_v11 = vadd.f32 %v1951_v30, %v4885_v35  ;;  %v2145_v2 = vadd.f32 %v2144_v60, %v4887_v10  ;;  %v2272_v6 = vmax.f32 %v1948_v17, 0.0  ;;  %v2274_v19 = vmax.f32 %v2141_v23, 0.0 }
 0x336   : > { %v2275_v3 = vmax.f32 %v1950_v62, 0.0  ;;  %v2277_v34 = vmax.f32 %v2143_v59, 0.0 }
 0x337   : > { %v2276_v4 = vmax.f32 %v1952_v11, 0.0  ;;  %v2278_v53 = vmax.f32 %v2145_v2, 0.0 }
 0x338   : > { %v2347_v8 = vpack.c.bf16 %v2275_v3, %v2271_v24  ;;  %v2349_v27 = vpack.c.bf16 %v2277_v34, %v2273_v22 }
 0x339   : > { %v2348_v57 = vpack.c.bf16 %v2276_v4, %v2272_v6  ;;  %v2350_v37 = vpack.c.bf16 %v2278_v53, %v2274_v19 }
 0x33b   : > { %2758 = vmatprep.mubr.bf16.mxu0 %v2348_v57  ;;  %2919 = vmatprep.mubr.bf16.mxu1 %v2350_v37 }
 0x33c   : > { %2759 = vmatmul.mubr.bf16.gmra.mrb[116].mxu0 %v2347_v8  ;;  %2920 = vmatmul.mubr.bf16.gmra.mrb[116].mxu1 %v2349_v27  ;;  %v5117_v8 = vld [vmem:[#allocation13] ss:$0 sm:$0xff] }
 0x344   : > { %v1955_v38 = vpop.f32.mrb[56].mxu0  ;;  %v2148_v42 = vpop.f32.mrb[56].mxu1 }
 0x345   : > { %v1956_v7 = vadd.f32 %v1955_v38, %v4879_v46  ;;  %v2149_v31 = vadd.f32 %v2148_v42, %v4882_v48  ;;  %v1957_v29 = vpop.f32.mrb[57].mxu0  ;;  %v2150_v9 = vpop.f32.mrb[57].mxu1 }
 0x346   : > { %v1958_v63 = vadd.f32 %v1957_v29, %v4885_v35  ;;  %v2151_v13 = vadd.f32 %v2150_v9, %v4887_v10  ;;  %v1959_v61 = vpop.f32.mrb[58].mxu0  ;;  %v2152_v28 = vpop.f32.mrb[58].mxu1 }
 0x347   : > { %v1960_v18 = vadd.f32 %v1959_v61, %v4879_v46  ;;  %v2153_v26 = vadd.f32 %v2152_v28, %v4882_v48  ;;  %v1961_v20 = vpop.f32.mrb[59].mxu0  ;;  %v2154_v51 = vpop.f32.mrb[59].mxu1  ;;  %v2279_v47 = vmax.f32 %v1956_v7, 0.0  ;;  %v2281_v1 = vmax.f32 %v2149_v31, 0.0 }
 0x348   : > { %v1962_v21 = vadd.f32 %v1961_v20, %v4885_v35  ;;  %v2155_v12 = vadd.f32 %v2154_v51, %v4887_v10  ;;  %v2280_v15 = vmax.f32 %v1958_v63, 0.0  ;;  %v2282_v43 = vmax.f32 %v2151_v13, 0.0 }
 0x349   : > { %v2283_v45 = vmax.f32 %v1960_v18, 0.0  ;;  %v2285_v39 = vmax.f32 %v2153_v26, 0.0 }
 0x34a   : > { %v2284_v16 = vmax.f32 %v1962_v21, 0.0  ;;  %v2286_v5 = vmax.f32 %v2155_v12, 0.0 }
 0x34b   : > { %v2351_v14 = vpack.c.bf16 %v2283_v45, %v2279_v47  ;;  %v2353_v25 = vpack.c.bf16 %v2285_v39, %v2281_v1 }
 0x34c   : > { %v2352_v44 = vpack.c.bf16 %v2284_v16, %v2280_v15  ;;  %v2354_v33 = vpack.c.bf16 %v2286_v5, %v2282_v43 }
 0x34e   : > { %2766 = vmatprep.mubr.bf16.mxu0 %v2352_v44  ;;  %2927 = vmatprep.mubr.bf16.mxu1 %v2354_v33 }
 0x34f   : > { %2767 = vmatmul.mubr.bf16.gmra.mrb[120].mxu0 %v2351_v14  ;;  %2928 = vmatmul.mubr.bf16.gmra.mrb[120].mxu1 %v2353_v25 }
 0x357   : > { %v1965_v0 = vpop.f32.mrb[60].mxu0  ;;  %v2158_v36 = vpop.f32.mrb[60].mxu1 }
 0x358   : > { %v1966_v49 = vadd.f32 %v1965_v0, %v4879_v46  ;;  %v2159_v52 = vadd.f32 %v2158_v36, %v4882_v48  ;;  %v1967_v40 = vpop.f32.mrb[61].mxu0  ;;  %v2160_v54 = vpop.f32.mrb[61].mxu1 }
 0x359   : > { %v1968_v32 = vadd.f32 %v1967_v40, %v4885_v35  ;;  %v2161_v56 = vadd.f32 %v2160_v54, %v4887_v10  ;;  %v1969_v41 = vpop.f32.mrb[62].mxu0  ;;  %v2162_v55 = vpop.f32.mrb[62].mxu1 }
 0x35a   : > { %v1970_v17 = vadd.f32 %v1969_v41, %v4879_v46  ;;  %v2163_v23 = vadd.f32 %v2162_v55, %v4882_v48  ;;  %v1971_v50 = vpop.f32.mrb[63].mxu0  ;;  %v2164_v58 = vpop.f32.mrb[63].mxu1  ;;  %v2287_v30 = vmax.f32 %v1966_v49, 0.0  ;;  %v2289_v60 = vmax.f32 %v2159_v52, 0.0 }
 0x35b   : > { %v1972_v62 = vadd.f32 %v1971_v50, %v4885_v35  ;;  %v2165_v59 = vadd.f32 %v2164_v58, %v4887_v10  ;;  %v2288_v24 = vmax.f32 %v1968_v32, 0.0  ;;  %v2290_v22 = vmax.f32 %v2161_v56, 0.0 }
 0x35c   : > { %v2291_v11 = vmax.f32 %v1970_v17, 0.0  ;;  %v2293_v2 = vmax.f32 %v2163_v23, 0.0 }
 0x35d   : > { %v2292_v3 = vmax.f32 %v1972_v62, 0.0  ;;  %v2294_v34 = vmax.f32 %v2165_v59, 0.0 }
 0x35e   : > { %v2355_v6 = vpack.c.bf16 %v2291_v11, %v2287_v30  ;;  %v2357_v19 = vpack.c.bf16 %v2293_v2, %v2289_v60 }
 0x35f   : > { %v2356_v4 = vpack.c.bf16 %v2292_v3, %v2288_v24  ;;  %v2358_v46 = vpack.c.bf16 %v2294_v34, %v2290_v22  ;;  %v3261_v53 = vpop.f32.mrb[64].mxu0  ;;  %v3373_v48 = vpop.f32.mrb[64].mxu1 }
 0x360   : > { %v3262_v27 = vpop.f32.mrb[65].mxu0  ;;  %v3374_v35 = vpop.f32.mrb[65].mxu1 }
 0x361   : > { %v3263_v10 = vadd.f32 %v3262_v27, %v3261_v53  ;;  %v3375_v57 = vadd.f32 %v3374_v35, %v3373_v48  ;;  %v3264_v37 = vpop.f32.mrb[66].mxu0  ;;  %2774 = vmatprep.mubr.bf16.mxu0 %v2356_v4  ;;  %v3376_v38 = vpop.f32.mrb[66].mxu1  ;;  %2935 = vmatprep.mubr.bf16.mxu1 %v2358_v46 }
 0x362   : > { %v3265_v42 = vpop.f32.mrb[67].mxu0  ;;  %2775 = vmatmul.mubr.bf16.gmra.mrb[124].mxu0 %v2355_v6  ;;  %v3377_v7 = vpop.f32.mrb[67].mxu1  ;;  %2936 = vmatmul.mubr.bf16.gmra.mrb[124].mxu1 %v2357_v19 }
 0x363   : > { %v2657_v31 = vadd.f32 %v3263_v10, %v5117_v8  ;;  %v3266_v29 = vadd.f32 %v3265_v42, %v3264_v37  ;;  %v3378_v9 = vadd.f32 %v3377_v7, %v3376_v38 }
 0x365   : > { %v2818_v63 = vadd.f32 %v3375_v57, %v2657_v31  ;;  %v2660_v13 = vadd.f32 %v3266_v29, %v5117_v8 }
 0x367   : > { %2944 = vst [vmem:[%s5123_s8] sm:$0xff] %v2818_v63  ;;  %v2821_v61 = vadd.f32 %v3378_v9, %v2660_v13  ;;  %v3267_v28 = vpop.f32.mrb[68].mxu0  ;;  %v3379_v18 = vpop.f32.mrb[68].mxu1 }
 0x368   : > { %v3268_v26 = vpop.f32.mrb[69].mxu0  ;;  %v3380_v20 = vpop.f32.mrb[69].mxu1 }
 0x369   : > { %2945 = vst [vmem:[%s5123_s8 + $0x8] sm:$0xff] %v2821_v61  ;;  %v3269_v51 = vadd.f32 %v3268_v26, %v3267_v28  ;;  %v3381_v21 = vadd.f32 %v3380_v20, %v3379_v18  ;;  %v3270_v12 = vpop.f32.mrb[70].mxu0  ;;  %v3382_v47 = vpop.f32.mrb[70].mxu1 }
 0x36a   : > { %v3271_v1 = vpop.f32.mrb[71].mxu0  ;;  %v3383_v45 = vpop.f32.mrb[71].mxu1 }
 0x36b   : > { %v2665_v39 = vadd.f32 %v3269_v51, %v5117_v8  ;;  %v3272_v15 = vadd.f32 %v3271_v1, %v3270_v12  ;;  %v3384_v43 = vadd.f32 %v3383_v45, %v3382_v47 }
 0x36d   : > { %v2826_v16 = vadd.f32 %v3381_v21, %v2665_v39  ;;  %v2668_v5 = vadd.f32 %v3272_v15, %v5117_v8 }
 0x36f   : > { %2946 = vst [vmem:[%s5123_s8 + $0x10] sm:$0xff] %v2826_v16  ;;  %v2829_v14 = vadd.f32 %v3384_v43, %v2668_v5  ;;  %v3273_v25 = vpop.f32.mrb[72].mxu0  ;;  %v3385_v44 = vpop.f32.mrb[72].mxu1 }
 0x370   : > { %v3274_v33 = vpop.f32.mrb[73].mxu0  ;;  %v3386_v0 = vpop.f32.mrb[73].mxu1 }
 0x371   : > { %2947 = vst [vmem:[%s5123_s8 + $0x18] sm:$0xff] %v2829_v14  ;;  %v3275_v36 = vadd.f32 %v3274_v33, %v3273_v25  ;;  %v3387_v49 = vadd.f32 %v3386_v0, %v3385_v44  ;;  %v3276_v52 = vpop.f32.mrb[74].mxu0  ;;  %v3388_v40 = vpop.f32.mrb[74].mxu1 }
 0x372   : > { %v3277_v54 = vpop.f32.mrb[75].mxu0  ;;  %v3389_v32 = vpop.f32.mrb[75].mxu1 }
 0x373   : > { %v2673_v56 = vadd.f32 %v3275_v36, %v5117_v8  ;;  %v3278_v41 = vadd.f32 %v3277_v54, %v3276_v52  ;;  %v3390_v55 = vadd.f32 %v3389_v32, %v3388_v40 }
 0x375   : > { %v2834_v17 = vadd.f32 %v3387_v49, %v2673_v56  ;;  %v2676_v23 = vadd.f32 %v3278_v41, %v5117_v8 }
 0x377   : > { %2948 = vst [vmem:[%s5123_s8 + $0x20] sm:$0xff] %v2834_v17  ;;  %v2837_v50 = vadd.f32 %v3390_v55, %v2676_v23  ;;  %v3279_v58 = vpop.f32.mrb[76].mxu0  ;;  %v3391_v62 = vpop.f32.mrb[76].mxu1 }
 0x378   : > { %v3280_v59 = vpop.f32.mrb[77].mxu0  ;;  %v3392_v30 = vpop.f32.mrb[77].mxu1 }
 0x379   : > { %2949 = vst [vmem:[%s5123_s8 + $0x28] sm:$0xff] %v2837_v50  ;;  %v3281_v60 = vadd.f32 %v3280_v59, %v3279_v58  ;;  %v3393_v11 = vadd.f32 %v3392_v30, %v3391_v62  ;;  %v3282_v2 = vpop.f32.mrb[78].mxu0  ;;  %v3394_v24 = vpop.f32.mrb[78].mxu1 }
 0x37a   : > { %v3283_v22 = vpop.f32.mrb[79].mxu0  ;;  %v3395_v3 = vpop.f32.mrb[79].mxu1 }
 0x37b   : > { %v2681_v34 = vadd.f32 %v3281_v60, %v5117_v8  ;;  %v3284_v6 = vadd.f32 %v3283_v22, %v3282_v2  ;;  %v3396_v19 = vadd.f32 %v3395_v3, %v3394_v24 }
 0x37d   : > { %v2842_v4 = vadd.f32 %v3393_v11, %v2681_v34  ;;  %v2684_v46 = vadd.f32 %v3284_v6, %v5117_v8 }
 0x37f   : > { %2950 = vst [vmem:[%s5123_s8 + $0x30] sm:$0xff] %v2842_v4  ;;  %v2845_v53 = vadd.f32 %v3396_v19, %v2684_v46  ;;  %v3285_v48 = vpop.f32.mrb[80].mxu0  ;;  %v3397_v27 = vpop.f32.mrb[80].mxu1 }
 0x380   : > { %v3286_v35 = vpop.f32.mrb[81].mxu0  ;;  %v3398_v10 = vpop.f32.mrb[81].mxu1 }
 0x381   : > { %2951 = vst [vmem:[%s5123_s8 + $0x38] sm:$0xff] %v2845_v53  ;;  %v3287_v57 = vadd.f32 %v3286_v35, %v3285_v48  ;;  %v3399_v37 = vadd.f32 %v3398_v10, %v3397_v27  ;;  %v3288_v38 = vpop.f32.mrb[82].mxu0  ;;  %v3400_v42 = vpop.f32.mrb[82].mxu1 }
 0x382   : > { %v3289_v7 = vpop.f32.mrb[83].mxu0  ;;  %v3401_v31 = vpop.f32.mrb[83].mxu1 }
 0x383   : > { %v2689_v29 = vadd.f32 %v3287_v57, %v5117_v8  ;;  %v3290_v9 = vadd.f32 %v3289_v7, %v3288_v38  ;;  %v3402_v63 = vadd.f32 %v3401_v31, %v3400_v42 }
 0x385   : > { %v2850_v13 = vadd.f32 %v3399_v37, %v2689_v29  ;;  %v2692_v61 = vadd.f32 %v3290_v9, %v5117_v8 }
 0x387   : > { %2952 = vst [vmem:[%s5123_s8 + $0x40] sm:$0xff] %v2850_v13  ;;  %v2853_v28 = vadd.f32 %v3402_v63, %v2692_v61  ;;  %v3291_v18 = vpop.f32.mrb[84].mxu0  ;;  %v3403_v26 = vpop.f32.mrb[84].mxu1 }
 0x388   : > { %v3292_v20 = vpop.f32.mrb[85].mxu0  ;;  %v3404_v51 = vpop.f32.mrb[85].mxu1 }
 0x389   : > { %2953 = vst [vmem:[%s5123_s8 + $0x48] sm:$0xff] %v2853_v28  ;;  %v3293_v21 = vadd.f32 %v3292_v20, %v3291_v18  ;;  %v3405_v12 = vadd.f32 %v3404_v51, %v3403_v26  ;;  %v3294_v47 = vpop.f32.mrb[86].mxu0  ;;  %v3406_v1 = vpop.f32.mrb[86].mxu1 }
 0x38a   : > { %v3295_v45 = vpop.f32.mrb[87].mxu0  ;;  %v3407_v39 = vpop.f32.mrb[87].mxu1 }
 0x38b   : > { %v2697_v15 = vadd.f32 %v3293_v21, %v5117_v8  ;;  %v3296_v43 = vadd.f32 %v3295_v45, %v3294_v47  ;;  %v3408_v16 = vadd.f32 %v3407_v39, %v3406_v1 }
 0x38d   : > { %v2858_v5 = vadd.f32 %v3405_v12, %v2697_v15  ;;  %v2700_v14 = vadd.f32 %v3296_v43, %v5117_v8 }
 0x38f   : > { %2954 = vst [vmem:[%s5123_s8 + $0x50] sm:$0xff] %v2858_v5  ;;  %v2861_v25 = vadd.f32 %v3408_v16, %v2700_v14  ;;  %v3297_v44 = vpop.f32.mrb[88].mxu0  ;;  %v3409_v33 = vpop.f32.mrb[88].mxu1 }
 0x390   : > { %v3298_v0 = vpop.f32.mrb[89].mxu0  ;;  %v3410_v36 = vpop.f32.mrb[89].mxu1 }
 0x391   : > { %2955 = vst [vmem:[%s5123_s8 + $0x58] sm:$0xff] %v2861_v25  ;;  %v3299_v49 = vadd.f32 %v3298_v0, %v3297_v44  ;;  %v3411_v52 = vadd.f32 %v3410_v36, %v3409_v33  ;;  %v3300_v40 = vpop.f32.mrb[90].mxu0  ;;  %v3412_v54 = vpop.f32.mrb[90].mxu1 }
 0x392   : > { %v3301_v32 = vpop.f32.mrb[91].mxu0  ;;  %v3413_v56 = vpop.f32.mrb[91].mxu1 }
 0x393   : > { %v2705_v41 = vadd.f32 %v3299_v49, %v5117_v8  ;;  %v3302_v55 = vadd.f32 %v3301_v32, %v3300_v40  ;;  %v3414_v17 = vadd.f32 %v3413_v56, %v3412_v54 }
 0x395   : > { %v2866_v23 = vadd.f32 %v3411_v52, %v2705_v41  ;;  %v2708_v50 = vadd.f32 %v3302_v55, %v5117_v8 }
 0x397   : > { %2956 = vst [vmem:[%s5123_s8 + $0x60] sm:$0xff] %v2866_v23  ;;  %v2869_v58 = vadd.f32 %v3414_v17, %v2708_v50 }
 0x399   : > { %2957 = vst [vmem:[%s5123_s8 + $0x68] sm:$0xff] %v2869_v58 }
 0x39d   : > { %v3303_v62 = vpop.f32.mrb[92].mxu0 }
 0x39e   : > { %v3415_v59 = vpop.f32.mrb[92].mxu1  ;;  %v3304_v30 = vpop.f32.mrb[93].mxu0 }
 0x39f   : > { %v3305_v60 = vadd.f32 %v3304_v30, %v3303_v62  ;;  %v3416_v11 = vpop.f32.mrb[93].mxu1  ;;  %v3306_v2 = vpop.f32.mrb[94].mxu0 }
 0x3a0   : > { %v3417_v24 = vadd.f32 %v3416_v11, %v3415_v59  ;;  %v3418_v22 = vpop.f32.mrb[94].mxu1  ;;  %v3307_v3 = vpop.f32.mrb[95].mxu0 }
 0x3a1   : > { %v2713_v34 = vadd.f32 %v3305_v60, %v5117_v8  ;;  %v3308_v6 = vadd.f32 %v3307_v3, %v3306_v2  ;;  %v3419_v19 = vpop.f32.mrb[95].mxu1 }
 0x3a2   : > { %v3420_v4 = vadd.f32 %v3419_v19, %v3418_v22 }
 0x3a3   : > { %v2874_v46 = vadd.f32 %v3417_v24, %v2713_v34  ;;  %v2716_v53 = vadd.f32 %v3308_v6, %v5117_v8 }
 0x3a5   : > { %2958 = vst [vmem:[%s5123_s8 + $0x70] sm:$0xff] %v2874_v46  ;;  %v2877_v48 = vadd.f32 %v3420_v4, %v2716_v53 }
 0x3a7   : > { %2959 = vst [vmem:[%s5123_s8 + $0x78] sm:$0xff] %v2877_v48 }
 0x3b0   : > { %v3309_v27 = vpop.f32.mrb[96].mxu0  ;;  %v3421_v35 = vpop.f32.mrb[96].mxu1 }
 0x3b1   : > { %v3310_v10 = vpop.f32.mrb[97].mxu0  ;;  %v3422_v57 = vpop.f32.mrb[97].mxu1 }
 0x3b2   : > { %v3311_v37 = vadd.f32 %v3310_v10, %v3309_v27  ;;  %v3423_v38 = vadd.f32 %v3422_v57, %v3421_v35  ;;  %v3312_v42 = vpop.f32.mrb[98].mxu0  ;;  %v3424_v7 = vpop.f32.mrb[98].mxu1 }
 0x3b3   : > { %v3313_v31 = vpop.f32.mrb[99].mxu0  ;;  %v3425_v29 = vpop.f32.mrb[99].mxu1 }
 0x3b4   : > { %v2721_v9 = vadd.f32 %v3311_v37, %v5117_v8  ;;  %v3314_v63 = vadd.f32 %v3313_v31, %v3312_v42  ;;  %v3426_v13 = vadd.f32 %v3425_v29, %v3424_v7 }
 0x3b6   : > { %v2882_v61 = vadd.f32 %v3423_v38, %v2721_v9  ;;  %v2724_v28 = vadd.f32 %v3314_v63, %v5117_v8 }
 0x3b8   : > { %2960 = vst [vmem:[%s5123_s8 + $0x80] sm:$0xff] %v2882_v61  ;;  %v2885_v18 = vadd.f32 %v3426_v13, %v2724_v28 }
 0x3ba   : > { %2961 = vst [vmem:[%s5123_s8 + $0x88] sm:$0xff] %v2885_v18 }
 0x3c3   : > { %v3315_v26 = vpop.f32.mrb[100].mxu0  ;;  %v3427_v20 = vpop.f32.mrb[100].mxu1 }
 0x3c4   : > { %v3316_v51 = vpop.f32.mrb[101].mxu0  ;;  %v3428_v21 = vpop.f32.mrb[101].mxu1 }
 0x3c5   : > { %v3317_v12 = vadd.f32 %v3316_v51, %v3315_v26  ;;  %v3429_v47 = vadd.f32 %v3428_v21, %v3427_v20  ;;  %v3318_v1 = vpop.f32.mrb[102].mxu0  ;;  %v3430_v45 = vpop.f32.mrb[102].mxu1 }
 0x3c6   : > { %v3319_v39 = vpop.f32.mrb[103].mxu0  ;;  %v3431_v15 = vpop.f32.mrb[103].mxu1 }
 0x3c7   : > { %v2729_v43 = vadd.f32 %v3317_v12, %v5117_v8  ;;  %v3320_v16 = vadd.f32 %v3319_v39, %v3318_v1  ;;  %v3432_v5 = vadd.f32 %v3431_v15, %v3430_v45 }
 0x3c9   : > { %v2890_v14 = vadd.f32 %v3429_v47, %v2729_v43  ;;  %v2732_v25 = vadd.f32 %v3320_v16, %v5117_v8 }
 0x3cb   : > { %2962 = vst [vmem:[%s5123_s8 + $0x90] sm:$0xff] %v2890_v14  ;;  %v2893_v44 = vadd.f32 %v3432_v5, %v2732_v25 }
 0x3cd   : > { %2963 = vst [vmem:[%s5123_s8 + $0x98] sm:$0xff] %v2893_v44 }
 0x3d6   : > { %v3321_v33 = vpop.f32.mrb[104].mxu0  ;;  %v3433_v0 = vpop.f32.mrb[104].mxu1 }
 0x3d7   : > { %v3322_v36 = vpop.f32.mrb[105].mxu0  ;;  %v3434_v49 = vpop.f32.mrb[105].mxu1 }
 0x3d8   : > { %v3323_v52 = vadd.f32 %v3322_v36, %v3321_v33  ;;  %v3435_v40 = vadd.f32 %v3434_v49, %v3433_v0  ;;  %v3324_v54 = vpop.f32.mrb[106].mxu0  ;;  %v3436_v32 = vpop.f32.mrb[106].mxu1 }
 0x3d9   : > { %v3325_v56 = vpop.f32.mrb[107].mxu0  ;;  %v3437_v41 = vpop.f32.mrb[107].mxu1 }
 0x3da   : > { %v2737_v55 = vadd.f32 %v3323_v52, %v5117_v8  ;;  %v3326_v17 = vadd.f32 %v3325_v56, %v3324_v54  ;;  %v3438_v23 = vadd.f32 %v3437_v41, %v3436_v32 }
 0x3dc   : > { %v2898_v50 = vadd.f32 %v3435_v40, %v2737_v55  ;;  %v2740_v58 = vadd.f32 %v3326_v17, %v5117_v8 }
 0x3de   : > { %2964 = vst [vmem:[%s5123_s8 + $0xa0] sm:$0xff] %v2898_v50  ;;  %v2901_v62 = vadd.f32 %v3438_v23, %v2740_v58 }
 0x3e0   : > { %2965 = vst [vmem:[%s5123_s8 + $0xa8] sm:$0xff] %v2901_v62 }
 0x3e9   : > { %v3327_v59 = vpop.f32.mrb[108].mxu0  ;;  %v3439_v30 = vpop.f32.mrb[108].mxu1 }
 0x3ea   : > { %v3328_v60 = vpop.f32.mrb[109].mxu0  ;;  %v3440_v11 = vpop.f32.mrb[109].mxu1 }
 0x3eb   : > { %v3329_v2 = vadd.f32 %v3328_v60, %v3327_v59  ;;  %v3441_v24 = vadd.f32 %v3440_v11, %v3439_v30  ;;  %v3330_v22 = vpop.f32.mrb[110].mxu0  ;;  %v3442_v3 = vpop.f32.mrb[110].mxu1 }
 0x3ec   : > { %v3331_v34 = vpop.f32.mrb[111].mxu0  ;;  %v3443_v6 = vpop.f32.mrb[111].mxu1 }
 0x3ed   : > { %v2745_v19 = vadd.f32 %v3329_v2, %v5117_v8  ;;  %v3332_v4 = vadd.f32 %v3331_v34, %v3330_v22  ;;  %v3444_v46 = vadd.f32 %v3443_v6, %v3442_v3 }
 0x3ef   : > { %v2906_v53 = vadd.f32 %v3441_v24, %v2745_v19  ;;  %v2748_v48 = vadd.f32 %v3332_v4, %v5117_v8 }
 0x3f1   : > { %2966 = vst [vmem:[%s5123_s8 + $0xb0] sm:$0xff] %v2906_v53  ;;  %v2909_v27 = vadd.f32 %v3444_v46, %v2748_v48 }
 0x3f3   : > { %2967 = vst [vmem:[%s5123_s8 + $0xb8] sm:$0xff] %v2909_v27 }
 0x3fe   : > { %v3333_v35 = vpop.f32.mrb[112].mxu0  ;;  %v3445_v10 = vpop.f32.mrb[112].mxu1 }
 0x3ff   : > { %v3334_v57 = vpop.f32.mrb[113].mxu0  ;;  %v3446_v37 = vpop.f32.mrb[113].mxu1 }
 0x400   : > { %v3335_v38 = vadd.f32 %v3334_v57, %v3333_v35  ;;  %v3447_v42 = vadd.f32 %v3446_v37, %v3445_v10  ;;  %v3336_v7 = vpop.f32.mrb[114].mxu0  ;;  %v3448_v31 = vpop.f32.mrb[114].mxu1 }
 0x401   : > { %v3337_v29 = vpop.f32.mrb[115].mxu0  ;;  %v3449_v9 = vpop.f32.mrb[115].mxu1 }
 0x402   : > { %v2753_v63 = vadd.f32 %v3335_v38, %v5117_v8  ;;  %v3338_v13 = vadd.f32 %v3337_v29, %v3336_v7  ;;  %v3450_v61 = vadd.f32 %v3449_v9, %v3448_v31 }
 0x404   : > { %v2914_v28 = vadd.f32 %v3447_v42, %v2753_v63  ;;  %v2756_v18 = vadd.f32 %v3338_v13, %v5117_v8 }
 0x406   : > { %2968 = vst [vmem:[%s5123_s8 + $0xc0] sm:$0xff] %v2914_v28  ;;  %v2917_v26 = vadd.f32 %v3450_v61, %v2756_v18 }
 0x408   : > { %2969 = vst [vmem:[%s5123_s8 + $0xc8] sm:$0xff] %v2917_v26 }
 0x40f   : > { %v3339_v20 = vpop.f32.mrb[116].mxu0  ;;  %v3451_v51 = vpop.f32.mrb[116].mxu1 }
 0x410   : > { %v3340_v21 = vpop.f32.mrb[117].mxu0  ;;  %v3452_v12 = vpop.f32.mrb[117].mxu1 }
 0x411   : > { %v3341_v47 = vadd.f32 %v3340_v21, %v3339_v20  ;;  %v3453_v1 = vadd.f32 %v3452_v12, %v3451_v51  ;;  %v3342_v45 = vpop.f32.mrb[118].mxu0  ;;  %v3454_v39 = vpop.f32.mrb[118].mxu1 }
 0x412   : > { %v3343_v15 = vpop.f32.mrb[119].mxu0  ;;  %v3455_v43 = vpop.f32.mrb[119].mxu1 }
 0x413   : > { %v2761_v16 = vadd.f32 %v3341_v47, %v5117_v8  ;;  %v3344_v5 = vadd.f32 %v3343_v15, %v3342_v45  ;;  %v3456_v14 = vadd.f32 %v3455_v43, %v3454_v39 }
 0x415   : > { %v2922_v25 = vadd.f32 %v3453_v1, %v2761_v16  ;;  %v2764_v44 = vadd.f32 %v3344_v5, %v5117_v8 }
 0x417   : > { %2970 = vst [vmem:[%s5123_s8 + $0xd0] sm:$0xff] %v2922_v25  ;;  %v2925_v33 = vadd.f32 %v3456_v14, %v2764_v44 }
 0x419   : > { %2971 = vst [vmem:[%s5123_s8 + $0xd8] sm:$0xff] %v2925_v33 }
 0x422   : > { %v3345_v0 = vpop.f32.mrb[120].mxu0  ;;  %v3457_v36 = vpop.f32.mrb[120].mxu1 }
 0x423   : > { %v3346_v49 = vpop.f32.mrb[121].mxu0  ;;  %v3458_v52 = vpop.f32.mrb[121].mxu1 }
 0x424   : > { %v3347_v40 = vadd.f32 %v3346_v49, %v3345_v0  ;;  %v3459_v54 = vadd.f32 %v3458_v52, %v3457_v36  ;;  %v3348_v32 = vpop.f32.mrb[122].mxu0  ;;  %v3460_v56 = vpop.f32.mrb[122].mxu1 }
 0x425   : > { %v3349_v41 = vpop.f32.mrb[123].mxu0  ;;  %v3461_v55 = vpop.f32.mrb[123].mxu1 }
 0x426   : > { %v2769_v17 = vadd.f32 %v3347_v40, %v5117_v8  ;;  %v3350_v23 = vadd.f32 %v3349_v41, %v3348_v32  ;;  %v3462_v50 = vadd.f32 %v3461_v55, %v3460_v56 }
 0x428   : > { %v2930_v58 = vadd.f32 %v3459_v54, %v2769_v17  ;;  %v2772_v62 = vadd.f32 %v3350_v23, %v5117_v8 }
 0x42a   : > { %2972 = vst [vmem:[%s5123_s8 + $0xe0] sm:$0xff] %v2930_v58  ;;  %v2933_v59 = vadd.f32 %v3462_v50, %v2772_v62 }
 0x42c   : > { %2973 = vst [vmem:[%s5123_s8 + $0xe8] sm:$0xff] %v2933_v59 }
 0x435   : > { %v3351_v30 = vpop.f32.mrb[124].mxu0  ;;  %v3463_v60 = vpop.f32.mrb[124].mxu1 }
 0x436   : > { %v3352_v11 = vpop.f32.mrb[125].mxu0  ;;  %v3464_v2 = vpop.f32.mrb[125].mxu1 }
 0x437   : > { %v3353_v24 = vadd.f32 %v3352_v11, %v3351_v30  ;;  %v3465_v22 = vadd.f32 %v3464_v2, %v3463_v60  ;;  %v3354_v3 = vpop.f32.mrb[126].mxu0  ;;  %v3466_v34 = vpop.f32.mrb[126].mxu1 }
 0x438   : > { %v3355_v6 = vpop.f32.mrb[127].mxu0  ;;  %v3467_v19 = vpop.f32.mrb[127].mxu1 }
 0x439   : > { %v2777_v4 = vadd.f32 %v3353_v24, %v5117_v8  ;;  %v3356_v46 = vadd.f32 %v3355_v6, %v3354_v3  ;;  %v3468_v53 = vadd.f32 %v3467_v19, %v3466_v34 }
 0x43b   : > { %v2938_v48 = vadd.f32 %v3465_v22, %v2777_v4  ;;  %v2780_v27 = vadd.f32 %v3356_v46, %v5117_v8 }
 0x43d   : > { %2974 = vst [vmem:[%s5123_s8 + $0xf0] sm:$0xff] %v2938_v48  ;;  %v2941_v35 = vadd.f32 %v3468_v53, %v2780_v27 }
 0x43f   : > { %2975 = vst [vmem:[%s5123_s8 + $0xf8] sm:$0xff] %v2941_v35 }
 0x440   : > { %3980 = shalt.err (!%p3977_p7)
}
 0x441   : > { %s3981_s1 = scalar_lea.hbm %s5190_s19, 4096  ;;  %s3985_s13 = scalar_lea.hbm %s5244_s7, 12288 }
 0x442   : > { %p3982_p13 = scmp.ne.s32.totalorder %s5190_s19, %s3981_s1  ;;  %p3986_p8 = scmp.lt.u32.totalorder %s5190_s19, %s5244_s7 }
 0x443   : > { %p3987_p10 = scmp.lt.u32.totalorder %s3985_s13, %s3981_s1  ;;  %p3989_p5 = scmp.lt.u32.totalorder %s3981_s1, %s5190_s19 }
 0x444   : > { %p3983_p0 = pnand %p3982_p13, %p5266_p12 }
 0x445   : > { %p3988_p11 = por %p3987_p10, %p3986_p8 }
 0x446   : > { %p3984_p2 = pneg %p3983_p0 }
 0x447   : > { %p3990_p4 = por %p3989_p5, %p3988_p11 }
 0x449   : > { %p3991_p6 = pnand %p3990_p4, %p3984_p2 }
 0x44b   : > { %3994 = shalt.err (!%p3991_p6)
}
 0x44c   : > { %s4064_s12 = smov 128   ;;  %s4065_s14 = smov 8  }
 0x44d   : > { %3495 = dma.vmem_to_hbm [thread:$0]  (%p5266_p12), %s5192_s9, 4096, %s5190_s19, %s2977_s22, %s4064_s12, %s4064_s12, %s4065_s14  }
 0x44e PF: > { %p3537_p9 = scmp.ge.s32.totalorder %s4045_s27, 2  ;;  %s3005_s28 = sand.u32 1, %s4033_s24  }
 0x44f   : > { %p5267_p1 = scmp.ne.s32.totalorder %s5257_s29, 0  ;;  %s3006_s30 = scalar_lea.sflag [#allocation4], %s3005_s28 }
 0x451   : > { %p3521_p3 = pnand %p3537_p9, %p5267_p1 }
 0x453   : > { %4028 = dma.done.wait (!%p3521_p3), %s3006_s30, 4096  }
 0x454   : > { %4030 = vsyncadd (!%p3521_p3), %s3006_s30, 4294963200  ;;  %p23_p7 = scmp.ge.s32.totalorder %s4274_s11, 5   ;;  %s5268_s24 = smov %s4037_s25 }
 0x455   : > { %s5269_s25 = smov %s4041_s26  ;;  %s5270_s26 = smov %s4285_s16 }
 0x456   : > { %s5271_s27 = smov %s4274_s11  ;;  %25 = sbr.rel (!%p23_p7) target bundleno = 10 (0xa), region = 117 }
 0x45d   :  { %3011 = vsyncpa [#allocation3], 1 }
 0x45e   :  { %3013 = vsyncpa [#allocation3 + $0x1], 1 }
 0x45f   :  { %3014 = vsyncpa [#allocation6], 1 }
 0x460   :  { %3015 = vsyncpa [#allocation9], 1 }
 0x461   :  { %3016 = vsyncpa [#allocation12], 1 }
 0x462   :  { %3017 = vsyncpa [#allocation4], 1 }
 0x463   :  { %3019 = vsyncpa [#allocation4 + $0x1], 1 }

</bundles_post_ra>
